<compile_context>
chip_gen: v7x
topology: tpu7x:2x2x1
jax: 0.10.0
libtpu: 0.0.40
codegen_flags: <defaults>
</compile_context>

<pallas_src>
import functools

import jax
import jax.numpy as jnp
from jax import lax
from jax.experimental import pallas as pl
from jax.experimental.pallas import tpu as pltpu


def _round_up(x, m):
    return (x + m - 1) // m * m


# ----------------------------------------------------------------------------
# Pallas kernel: one (batch, row-tile) per grid step, double-buffered halo DMA.
# ----------------------------------------------------------------------------
def _aspp_kernel(x_hbm, bimg_ref, w1_ref, b1_ref, w3_ref, b3_ref, wproj_ref,
                 out_ref, xs_ref, dma_sem,
                 *, TH, W, pad, Cin_p, Cout_p, rates):
    b = pl.program_id(0)
    t = pl.program_id(1)
    n_tiles = pl.num_programs(1)
    hslab = TH + 2 * pad
    slot = t % 2

    def issue(tile_idx, slot_idx):
        row0 = tile_idx * TH
        pltpu.make_async_copy(x_hbm.at[b, pl.ds(row0, hslab)],
                              xs_ref.at[slot_idx],
                              dma_sem.at[slot_idx]).start()

    # Prime: the current tile's slab is fetched here only at t == 0; for t > 0 it
    # was already prefetched by the previous row-tile step of this image.
    @pl.when(t == 0)
    def _():
        issue(0, 0)

    # Prefetch the next row-tile's slab before blocking on the current one.
    @pl.when(t + 1 < n_tiles)
    def _():
        issue(t + 1, 1 - slot)

    # Wait for the current slab.
    pltpu.make_async_copy(x_hbm.at[b, pl.ds(t * TH, hslab)],
                          xs_ref.at[slot], dma_sem.at[slot]).wait()

    bf16 = jnp.bfloat16

    def proj(y, bi):
        # fused projection: branch output against its wproj row-slab (scale folded)
        return jnp.dot(y.astype(bf16),
                       wproj_ref[bi * Cout_p:(bi + 1) * Cout_p, :],
                       preferred_element_type=jnp.float32)

    # --- branch 0: 1x1 conv (scale folded) -> +bias -> ReLU -> projection ---
    x0 = xs_ref[slot, pad:pad + TH, pad:pad + W, :].reshape(TH * W, Cin_p)
    y0 = jnp.dot(x0, w1_ref[...], preferred_element_type=jnp.float32)
    y0 = jnp.maximum(y0 + b1_ref[...], 0.0)
    acc = proj(y0, 0)

    # --- dilated 3x3 branches: 9 per-tap MXU matmuls (K = Cin_p), f32 accumulate ---
    for ri, r in enumerate(rates):
        yb = None
        for ky in range(3):
            dy = (ky - 1) * r
            for kx in range(3):
                dx = (kx - 1) * r
                ti = ky * 3 + kx
                tap = xs_ref[slot,
                             pad + dy:pad + dy + TH,
                             pad + dx:pad + dx + W, :].reshape(TH * W, Cin_p)
                p = jnp.dot(tap, w3_ref[ri, ti * Cin_p:(ti + 1) * Cin_p, :],
                            preferred_element_type=jnp.float32)
                yb = p if yb is None else yb + p
        yb = jnp.maximum(yb + b3_ref[ri:ri + 1, :], 0.0)
        acc = acc + proj(yb, 1 + ri)

    # --- per-image projection bias (= folded proj-BN bias + pooling-branch
    #     contribution, precomputed in the wrapper) -> ReLU -> Sigmoid ---
    z = jax.nn.sigmoid(jnp.maximum(acc + bimg_ref[0], 0.0))
    out_ref[0] = z.reshape(TH, W, Cout_p).astype(out_ref.dtype)


# ----------------------------------------------------------------------------
# Wrapper: weight folding / padding, BlockSpecs, pallas_call.
# ----------------------------------------------------------------------------
@functools.partial(jax.jit, static_argnames=("rates", "tile_h"))
def aspp_pallas(x_nchw, params, rates, tile_h=32):
    """ASPP forward. x_nchw: (N, Cin, H, W) float32. Returns (N, Cout, H, W)."""
    f32, bf16 = jnp.float32, jnp.bfloat16
    N, Cin, H, W = x_nchw.shape
    Cout = params["w1"].shape[1]
    R = len(rates)
    NB = R + 2
    pad = max(rates)
    Cin_p = _round_up(Cin, 128)
    Cout_p = _round_up(Cout, 128)
    TH = min(tile_h, H)
    assert H % TH == 0, "H must be divisible by tile_h"  # TODO(synk): ragged last row-tile
    n_tiles = H // TH
    Wp = W + 2 * pad
    hslab = TH + 2 * pad
    # NOTE: W should ideally be a multiple of 8 to keep the (TH,W,C)->(TH*W,C)
    # reshape and the output block store sublane-aligned.

    # NCHW -> NHWC, padded bf16 copy of the image for the in-kernel halo DMA.
    # TODO(synk): DMA unpadded rows into a zero-initialised VMEM slab inside the
    # kernel to drop this extra padded HBM copy of x.
    x = jnp.transpose(x_nchw, (0, 2, 3, 1)).astype(f32)
    x_pad = jnp.pad(x, ((0, 0), (pad, pad), (pad, pad), (0, Cin_p - Cin))).astype(bf16)

    # --- fold BN scale into the conv weights; pad channels lane-dense (x128) ---
    w1 = jnp.pad(params["w1"] * params["s1"][0],
                 ((0, Cin_p - Cin), (0, Cout_p - Cout))).astype(bf16)      # (Cin_p,Cout_p)

    w3 = []
    for ri in range(R):
        w = params["w3"][ri] * params["s3"][ri]                            # (3,3,Cin,Cout)
        w = jnp.pad(w, ((0, 0), (0, 0), (0, Cin_p - Cin), (0, Cout_p - Cout)))
        w3.append(w.reshape(9 * Cin_p, Cout_p))                            # tap-major
    w3 = jnp.stack(w3).astype(bf16)                                        # (R,9*Cin_p,Cout_p)

    wproj_s = (params["wproj"] * params["sproj"][0]).reshape(NB, Cout, Cout)
    wproj_k = jnp.pad(wproj_s[:R + 1], ((0, 0), (0, Cout_p - Cout), (0, Cout_p - Cout)))
    wproj_k = wproj_k.reshape((R + 1) * Cout_p, Cout_p).astype(bf16)

    def pad_vec(v):
        return jnp.pad(v.astype(f32).reshape(-1, Cout), ((0, 0), (0, Cout_p - Cout)))

    b1 = pad_vec(params["b1"])                                             # (1, Cout_p)
    b3 = pad_vec(params["b3"])                                             # (R, Cout_p)

    # --- pooling branch hoisted to the wrapper (f32): per-image projected bias ---
    xmean = jnp.mean(x, axis=(1, 2))                                       # (N, Cin)
    yp = jnp.maximum(xmean @ (params["wp"] * params["sp"][0]) + params["bp"], 0.0)
    bias_img = yp @ (params["wproj"][(R + 1) * Cout:] * params["sproj"][0]) + params["bproj"]
    bias_img = jnp.pad(bias_img, ((0, 0), (0, Cout_p - Cout)))[:, None, :]  # (N,1,Cout_p)

    kernel = functools.partial(_aspp_kernel, TH=TH, W=W, pad=pad,
                               Cin_p=Cin_p, Cout_p=Cout_p, rates=tuple(rates))

    def vmem_full():
        # whole-array VMEM resident: not pipelined -> single-buffered weights.
        return pl.BlockSpec(memory_space=pltpu.MemorySpace.VMEM)

    # VMEM residency estimate -> explicit scoped-VMEM limit with headroom.
    resident = (2 * hslab * Wp * Cin_p * 2                          # halo slab x2 buffers
                + (w1.size + w3.size + wproj_k.size) * 2            # bf16 weights
                + (b1.size + b3.size) * 4
                + 2 * TH * W * Cout_p * 4                           # output block x2
                + TH * W * (Cin_p * 2 + 3 * Cout_p * 4))            # matmul temporaries
    vmem_limit = int(min(128 * 1024 * 1024, max(32 * 1024 * 1024, 1.5 * resident)))

    flops = 2 * N * H * W * (Cin_p * Cout_p * (1 + 9 * R) + (R + 1) * Cout_p * Cout_p)
    bytes_accessed = (N * n_tiles * hslab * Wp * Cin_p * 2          # halo-amplified input
                      + (w1.size + w3.size + wproj_k.size) * 2
                      + (b1.size + b3.size + bias_img.size) * 4
                      + N * H * W * Cout_p * 4)
    cost = pl.CostEstimate(flops=flops, transcendentals=N * H * W * Cout_p,
                           bytes_accessed=bytes_accessed)

    out = pl.pallas_call(
        kernel,
        out_shape=jax.ShapeDtypeStruct((N, H, W, Cout_p), jnp.float32),
        grid_spec=pltpu.PrefetchScalarGridSpec(
            num_scalar_prefetch=0,
            grid=(N, n_tiles),
            in_specs=[
                pl.BlockSpec(memory_space=pl.ANY),                      # x_pad stays in HBM
                pl.BlockSpec((1, 1, Cout_p), lambda b, t: (b, 0, 0)),   # per-image proj bias
                vmem_full(), vmem_full(),                               # w1, b1
                vmem_full(), vmem_full(),                               # w3, b3
                vmem_full(),                                            # wproj
            ],
            out_specs=pl.BlockSpec((1, TH, W, Cout_p), lambda b, t: (b, t, 0, 0)),
            scratch_shapes=[pltpu.VMEM((2, hslab, Wp, Cin_p), bf16),    # double-buffered slab
                            pltpu.SemaphoreType.DMA((2,))],
        ),
        compiler_params=pltpu.CompilerParams(
            dimension_semantics=("parallel", "arbitrary"),
            vmem_limit_bytes=vmem_limit),
        cost_estimate=cost,
    )(x_pad, bias_img, w1, b1, w3, b3, wproj_k)

    # TODO(synk): emit bf16 / NHWC output when the consumer allows it (saves an
    # activation round trip); f32 NCHW kept here to match the torch API.
    return jnp.transpose(out[..., :Cout], (0, 3, 1, 2))


# ----------------------------------------------------------------------------
# Deterministic parameter construction (folded BN) + pure-JAX reference.
# ----------------------------------------------------------------------------
def _fold_bn(key, cout, eps=1e-5):
    k1, k2, k3, k4 = jax.random.split(key, 4)
    gamma = 0.5 + jax.random.uniform(k1, (cout,), jnp.float32)
    beta = 0.1 * jax.random.normal(k2, (cout,), jnp.float32)
    mean = 0.1 * jax.random.normal(k3, (cout,), jnp.float32)
    var = 0.5 + jax.random.uniform(k4, (cout,), jnp.float32)
    scale = gamma / jnp.sqrt(var + eps)
    bias = beta - mean * scale
    return scale[None, :], bias[None, :]


def make_params(key, cin, cout, rates):
    R = len(rates)
    nb = R + 2
    keys = jax.random.split(key, 6 + R)

    w1 = 0.1 * jax.random.normal(keys[0], (cin, cout), jnp.float32)
    s1, b1 = _fold_bn(keys[1], cout)

    w3, s3, b3 = [], [], []
    for ri in range(R):
        kw, kb = jax.random.split(keys[2 + ri])
        w3.append(0.1 * jax.random.normal(kw, (3, 3, cin, cout), jnp.float32))
        s, b = _fold_bn(kb, cout)
        s3.append(s[0]); b3.append(b[0])
    s3 = jnp.stack(s3); b3 = jnp.stack(b3)

    wp = 0.1 * jax.random.normal(keys[2 + R], (cin, cout), jnp.float32)
    sp, bp = _fold_bn(keys[3 + R], cout)

    wproj = 0.1 * jax.random.normal(keys[4 + R], (nb * cout, cout), jnp.float32)
    sproj, bproj = _fold_bn(keys[5 + R], cout)

    return dict(w1=w1, s1=s1, b1=b1, w3=w3, s3=s3, b3=b3,
                wp=wp, sp=sp, bp=bp, wproj=wproj, sproj=sproj, bproj=bproj)


def aspp_reference(x_nchw, params, rates, operand_dtype=jnp.float32):
    """Pure-JAX (lax.conv) reference in NHWC, mirroring the torch forward.

    BN scale is folded into the conv weights (mathematically identical) so that
    operand_dtype=bf16 reproduces the kernel's bf16-operand / f32-accumulate math
    for a tight check; operand_dtype=f32 is the plain torch-semantics reference.
    """
    x = jnp.transpose(x_nchw, (0, 2, 3, 1)).astype(jnp.float32)
    N, H, W, Cin = x.shape
    Cout = params["w1"].shape[1]
    dn = ("NHWC", "HWIO", "NHWC")
    prec = lax.Precision.HIGHEST if operand_dtype == jnp.float32 else lax.Precision.DEFAULT

    def conv(inp, w, dil, padding):
        return lax.conv_general_dilated(
            inp.astype(operand_dtype), w.astype(operand_dtype),
            window_strides=(1, 1), padding=padding, rhs_dilation=(dil, dil),
            dimension_numbers=dn, preferred_element_type=jnp.float32, precision=prec)

    res = []
    w1 = (params["w1"] * params["s1"][0]).reshape(1, 1, Cin, Cout)
    res.append(jnp.maximum(conv(x, w1, 1, [(0, 0), (0, 0)]) + params["b1"], 0.0))

    for ri, r in enumerate(rates):
        w3 = params["w3"][ri] * params["s3"][ri]
        res.append(jnp.maximum(conv(x, w3, r, [(r, r), (r, r)]) + params["b3"][ri], 0.0))

    xm = jnp.mean(x, axis=(1, 2), keepdims=True)                        # (N,1,1,Cin) f32
    wp = (params["wp"] * params["sp"][0]).reshape(1, 1, Cin, Cout)
    yp = jnp.maximum(conv(xm, wp, 1, [(0, 0), (0, 0)]) + params["bp"], 0.0)
    res.append(jnp.broadcast_to(yp, (N, H, W, Cout)))                   # 1x1 bilinear -> HxW

    cat = jnp.concatenate(res, axis=-1)
    wproj = (params["wproj"] * params["sproj"][0]).reshape(1, 1, cat.shape[-1], Cout)
    z = jnp.maximum(conv(cat, wproj, 1, [(0, 0), (0, 0)]) + params["bproj"], 0.0)
    z = jax.nn.sigmoid(z)
    return jnp.transpose(z, (0, 3, 1, 2))


if __name__ == "__main__":
    key = jax.random.PRNGKey(0)
    kx, kp = jax.random.split(key)

    N, Cin, H, W = 2, 4, 16, 16
    Cout = 8
    rates = (2, 4)

    x = jax.random.normal(kx, (N, Cin, H, W), jnp.float32)
    params = make_params(kp, Cin, Cout, rates)

    # tile_h=8 -> 2 row tiles per image, exercising the double-buffered halo DMA.
    out = jax.block_until_ready(aspp_pallas(x, params, rates=rates, tile_h=8))
    assert out.shape == (N, Cout, H, W)

    # Matched-precision check (bf16 operands, f32 accumulation, scale-folded
    # weights) -> tight tolerance. Plain f32 reference -> loose tolerance
    # absorbing bf16 operand rounding.
    ref_bf = jax.block_until_ready(aspp_reference(x, params, rates, operand_dtype=jnp.bfloat16))
    ref_32 = jax.block_until_ready(aspp_reference(x, params, rates))
    err_bf = float(jnp.max(jnp.abs(out - ref_bf)))
    err_32 = float(jnp.max(jnp.abs(out - ref_32)))
    assert err_bf < 5e-3, f"mismatch vs matched-precision reference: {err_bf}"
    assert err_32 < 2e-2, f"mismatch vs f32 reference: {err_32}"

    print("KERNEL_OK")
</pallas_src>

<mosaic_0001>
module attributes {stable_mosaic.version = 11 : i64} {
  func.func @_aspp_kernel(%arg0: i32, %arg1: i32, %arg2: memref<2x24x24x128xbf16, #tpu.memory_space<any>>, %arg3: memref<1x1x128xf32, #tpu.memory_space<vmem>>, %arg4: memref<128x128xbf16, #tpu.memory_space<vmem>>, %arg5: memref<1x128xf32, #tpu.memory_space<vmem>>, %arg6: memref<2x1152x128xbf16, #tpu.memory_space<vmem>>, %arg7: memref<2x128xf32, #tpu.memory_space<vmem>>, %arg8: memref<384x128xbf16, #tpu.memory_space<vmem>>, %arg9: memref<1x8x16x128xf32, #tpu.memory_space<vmem>>, %arg10: memref<2x16x24x128xbf16, #tpu.memory_space<vmem>>, %arg11: memref<2x!tpu.dma_semaphore, #tpu.memory_space<semaphore_mem>>) attributes {dimension_semantics = [#tpu.dimension_semantics<parallel>, #tpu.dimension_semantics<arbitrary>], iteration_bounds = array<i64: 2, 2>, scalar_prefetch = 0 : i64, scratch_operands = 2 : i64, tpu.core_type = #tpu.core_type<tc>, window_params = [{}, {transform_indices = @transform_1, window_bounds = array<i64: 1, 1, 128>}, {pipeline_mode = #tpu.pipeline_mode<synchronous>, transform_indices = @transform_2, window_bounds = array<i64: 128, 128>}, {pipeline_mode = #tpu.pipeline_mode<synchronous>, transform_indices = @transform_3, window_bounds = array<i64: 1, 128>}, {pipeline_mode = #tpu.pipeline_mode<synchronous>, transform_indices = @transform_4, window_bounds = array<i64: 2, 1152, 128>}, {pipeline_mode = #tpu.pipeline_mode<synchronous>, transform_indices = @transform_5, window_bounds = array<i64: 2, 128>}, {pipeline_mode = #tpu.pipeline_mode<synchronous>, transform_indices = @transform_6, window_bounds = array<i64: 384, 128>}, {transform_indices = @transform_7, window_bounds = array<i64: 1, 8, 16, 128>}]} {
    %c2_i32 = arith.constant 2 : i32
    %c0_i32 = arith.constant 0 : i32
    %0 = arith.cmpi eq, %c2_i32, %c0_i32 : i32
    %c1_i32 = arith.constant 1 : i32
    %1 = arith.select %0, %c1_i32, %c2_i32 : i32
    %2 = arith.remsi %arg1, %1 : i32
    %c0_i32_0 = arith.constant 0 : i32
    %3 = arith.cmpi ne, %2, %c0_i32_0 : i32
    %c0_i32_1 = arith.constant 0 : i32
    %4 = arith.cmpi slt, %2, %c0_i32_1 : i32
    %c0_i32_2 = arith.constant 0 : i32
    %5 = arith.cmpi slt, %1, %c0_i32_2 : i32
    %6 = arith.xori %4, %5 : i1
    %7 = arith.andi %6, %3 : i1
    %8 = arith.addi %2, %1 : i32
    %9 = arith.select %7, %8, %2 : i32
    %c0_i32_3 = arith.constant 0 : i32
    %10 = arith.cmpi eq, %arg1, %c0_i32_3 : i32
    %11 = arith.extui %10 : i1 to i32
    %c0_i32_4 = arith.constant 0 : i32
    %12 = arith.cmpi ne, %11, %c0_i32_4 : i32
    scf.if %12 {
      %c0_i32_157 = arith.constant 0 : i32
      %c0_i32_158 = arith.constant 0 : i32
      %c0_i32_159 = arith.constant 0 : i32
      %c0_i32_160 = arith.constant 0 : i32
      %c0_i32_161 = arith.constant 0 : i32
      %213 = tpu.memref_slice %arg2[%arg0, %c0_i32_159, %c0_i32_160, %c0_i32_161] : memref<2x24x24x128xbf16, #tpu.memory_space<any>> -> memref<1x16x24x128xbf16, #tpu.memory_space<any>>
      %214 = tpu.memref_squeeze %213 : memref<1x16x24x128xbf16, #tpu.memory_space<any>> -> memref<16x24x128xbf16, #tpu.memory_space<any>>
      %c0_i32_162 = arith.constant 0 : i32
      %c0_i32_163 = arith.constant 0 : i32
      %c0_i32_164 = arith.constant 0 : i32
      %215 = tpu.memref_slice %arg10[%c0_i32_157, %c0_i32_162, %c0_i32_163, %c0_i32_164] : memref<2x16x24x128xbf16, #tpu.memory_space<vmem>> -> memref<1x16x24x128xbf16, #tpu.memory_space<vmem>>
      %216 = tpu.memref_squeeze %215 : memref<1x16x24x128xbf16, #tpu.memory_space<vmem>> -> memref<16x24x128xbf16, #tpu.memory_space<vmem>>
      %217 = tpu.memref_slice %arg11[%c0_i32_158] : memref<2x!tpu.dma_semaphore, #tpu.memory_space<semaphore_mem>> -> memref<1x!tpu.dma_semaphore, #tpu.memory_space<semaphore_mem>>
      %218 = tpu.memref_squeeze %217 : memref<1x!tpu.dma_semaphore, #tpu.memory_space<semaphore_mem>> -> memref<!tpu.dma_semaphore, #tpu.memory_space<semaphore_mem>>
      tpu.enqueue_dma source(%214 : memref<16x24x128xbf16, #tpu.memory_space<any>>) target(%216 : memref<16x24x128xbf16, #tpu.memory_space<vmem>>) target_semaphore(%218 : memref<!tpu.dma_semaphore, #tpu.memory_space<semaphore_mem>>)
    } else {
    }
    %c1_i32_5 = arith.constant 1 : i32
    %13 = arith.addi %arg1, %c1_i32_5 : i32
    %c2_i32_6 = arith.constant 2 : i32
    %14 = arith.cmpi slt, %13, %c2_i32_6 : i32
    %15 = arith.extui %14 : i1 to i32
    %c0_i32_7 = arith.constant 0 : i32
    %16 = arith.cmpi ne, %15, %c0_i32_7 : i32
    scf.if %16 {
      %c1_i32_157 = arith.constant 1 : i32
      %213 = arith.addi %arg1, %c1_i32_157 : i32
      %c1_i32_158 = arith.constant 1 : i32
      %214 = arith.subi %c1_i32_158, %9 : i32
      %c8_i32_159 = arith.constant 8 : i32
      %215 = arith.muli %213, %c8_i32_159 : i32
      %c0_i32_160 = arith.constant 0 : i32
      %c0_i32_161 = arith.constant 0 : i32
      %216 = tpu.memref_slice %arg2[%arg0, %215, %c0_i32_160, %c0_i32_161] : memref<2x24x24x128xbf16, #tpu.memory_space<any>> -> memref<1x16x24x128xbf16, #tpu.memory_space<any>>
      %217 = tpu.memref_squeeze %216 : memref<1x16x24x128xbf16, #tpu.memory_space<any>> -> memref<16x24x128xbf16, #tpu.memory_space<any>>
      %c0_i32_162 = arith.constant 0 : i32
      %c0_i32_163 = arith.constant 0 : i32
      %c0_i32_164 = arith.constant 0 : i32
      %218 = tpu.memref_slice %arg10[%214, %c0_i32_162, %c0_i32_163, %c0_i32_164] : memref<2x16x24x128xbf16, #tpu.memory_space<vmem>> -> memref<1x16x24x128xbf16, #tpu.memory_space<vmem>>
      %219 = tpu.memref_squeeze %218 : memref<1x16x24x128xbf16, #tpu.memory_space<vmem>> -> memref<16x24x128xbf16, #tpu.memory_space<vmem>>
      %220 = tpu.memref_slice %arg11[%214] : memref<2x!tpu.dma_semaphore, #tpu.memory_space<semaphore_mem>> -> memref<1x!tpu.dma_semaphore, #tpu.memory_space<semaphore_mem>>
      %221 = tpu.memref_squeeze %220 : memref<1x!tpu.dma_semaphore, #tpu.memory_space<semaphore_mem>> -> memref<!tpu.dma_semaphore, #tpu.memory_space<semaphore_mem>>
      tpu.enqueue_dma source(%217 : memref<16x24x128xbf16, #tpu.memory_space<any>>) target(%219 : memref<16x24x128xbf16, #tpu.memory_space<vmem>>) target_semaphore(%221 : memref<!tpu.dma_semaphore, #tpu.memory_space<semaphore_mem>>)
    } else {
    }
    %c8_i32 = arith.constant 8 : i32
    %17 = arith.muli %arg1, %c8_i32 : i32
    %c0_i32_8 = arith.constant 0 : i32
    %c0_i32_9 = arith.constant 0 : i32
    %18 = tpu.memref_slice %arg2[%arg0, %17, %c0_i32_8, %c0_i32_9] : memref<2x24x24x128xbf16, #tpu.memory_space<any>> -> memref<1x16x24x128xbf16, #tpu.memory_space<any>>
    %19 = tpu.memref_squeeze %18 : memref<1x16x24x128xbf16, #tpu.memory_space<any>> -> memref<16x24x128xbf16, #tpu.memory_space<any>>
    %c0_i32_10 = arith.constant 0 : i32
    %c0_i32_11 = arith.constant 0 : i32
    %c0_i32_12 = arith.constant 0 : i32
    %20 = tpu.memref_slice %arg10[%9, %c0_i32_10, %c0_i32_11, %c0_i32_12] : memref<2x16x24x128xbf16, #tpu.memory_space<vmem>> -> memref<1x16x24x128xbf16, #tpu.memory_space<vmem>>
    %21 = tpu.memref_squeeze %20 : memref<1x16x24x128xbf16, #tpu.memory_space<vmem>> -> memref<16x24x128xbf16, #tpu.memory_space<vmem>>
    %22 = tpu.memref_slice %arg11[%9] : memref<2x!tpu.dma_semaphore, #tpu.memory_space<semaphore_mem>> -> memref<1x!tpu.dma_semaphore, #tpu.memory_space<semaphore_mem>>
    %23 = tpu.memref_squeeze %22 : memref<1x!tpu.dma_semaphore, #tpu.memory_space<semaphore_mem>> -> memref<!tpu.dma_semaphore, #tpu.memory_space<semaphore_mem>>
    tpu.wait_dma2 semaphore(%23 : memref<!tpu.dma_semaphore, #tpu.memory_space<semaphore_mem>>) src(%19 : memref<16x24x128xbf16, #tpu.memory_space<any>>) dst(%21 : memref<16x24x128xbf16, #tpu.memory_space<vmem>>)
    %24 = arith.index_cast %9 : i32 to index
    %c4 = arith.constant 4 : index
    %c4_13 = arith.constant 4 : index
    %c0 = arith.constant 0 : index
    %25 = vector.load %arg10[%24, %c4, %c4_13, %c0] : memref<2x16x24x128xbf16, #tpu.memory_space<vmem>>, vector<1x8x16x128xbf16>
    %26 = vector.shape_cast %25 : vector<1x8x16x128xbf16> to vector<8x16x128xbf16>
    %27 = vector.shape_cast %26 : vector<8x16x128xbf16> to vector<128x128xbf16>
    %c0_14 = arith.constant 0 : index
    %c0_15 = arith.constant 0 : index
    %28 = vector.load %arg4[%c0_14, %c0_15] : memref<128x128xbf16, #tpu.memory_space<vmem>>, vector<128x128xbf16>
    %cst = arith.constant dense<0.000000e+00> : vector<128x128xf32>
    %29 = tpu.matmul %27, %28, %cst {dimension_numbers = #tpu.dot_dimension_numbers<[1], [0], [0], [1], [0, 0, 1, 1], [], []>} : vector<128x128xbf16>, vector<128x128xbf16>, vector<128x128xf32> -> vector<128x128xf32>
    %c0_16 = arith.constant 0 : index
    %c0_17 = arith.constant 0 : index
    %30 = vector.load %arg5[%c0_16, %c0_17] : memref<1x128xf32, #tpu.memory_space<vmem>>, vector<1x128xf32>
    %31 = vector.broadcast %30 : vector<1x128xf32> to vector<128x128xf32>
    %32 = arith.addf %29, %31 : vector<128x128xf32>
    %cst_18 = arith.constant 0.000000e+00 : f32
    %33 = vector.broadcast %cst_18 : f32 to vector<128x128xf32>
    %34 = arith.maximumf %32, %33 : vector<128x128xf32>
    %35 = arith.truncf %34 : vector<128x128xf32> to vector<128x128xbf16>
    %c0_19 = arith.constant 0 : index
    %c0_20 = arith.constant 0 : index
    %36 = vector.load %arg8[%c0_19, %c0_20] : memref<384x128xbf16, #tpu.memory_space<vmem>>, vector<128x128xbf16>
    %cst_21 = arith.constant dense<0.000000e+00> : vector<128x128xf32>
    %37 = tpu.matmul %35, %36, %cst_21 {dimension_numbers = #tpu.dot_dimension_numbers<[1], [0], [0], [1], [0, 0, 1, 1], [], []>} : vector<128x128xbf16>, vector<128x128xbf16>, vector<128x128xf32> -> vector<128x128xf32>
    %38 = arith.index_cast %9 : i32 to index
    %c2 = arith.constant 2 : index
    %c2_22 = arith.constant 2 : index
    %c0_23 = arith.constant 0 : index
    %39 = vector.load %arg10[%38, %c2, %c2_22, %c0_23] : memref<2x16x24x128xbf16, #tpu.memory_space<vmem>>, vector<1x8x16x128xbf16>
    %40 = vector.shape_cast %39 : vector<1x8x16x128xbf16> to vector<8x16x128xbf16>
    %41 = vector.shape_cast %40 : vector<8x16x128xbf16> to vector<128x128xbf16>
    %c0_24 = arith.constant 0 : index
    %c0_25 = arith.constant 0 : index
    %c0_26 = arith.constant 0 : index
    %42 = vector.load %arg6[%c0_24, %c0_25, %c0_26] : memref<2x1152x128xbf16, #tpu.memory_space<vmem>>, vector<1x128x128xbf16>
    %43 = vector.shape_cast %42 : vector<1x128x128xbf16> to vector<128x128xbf16>
    %cst_27 = arith.constant dense<0.000000e+00> : vector<128x128xf32>
    %44 = tpu.matmul %41, %43, %cst_27 {dimension_numbers = #tpu.dot_dimension_numbers<[1], [0], [0], [1], [0, 0, 1, 1], [], []>} : vector<128x128xbf16>, vector<128x128xbf16>, vector<128x128xf32> -> vector<128x128xf32>
    %45 = arith.index_cast %9 : i32 to index
    %c2_28 = arith.constant 2 : index
    %c4_29 = arith.constant 4 : index
    %c0_30 = arith.constant 0 : index
    %46 = vector.load %arg10[%45, %c2_28, %c4_29, %c0_30] : memref<2x16x24x128xbf16, #tpu.memory_space<vmem>>, vector<1x8x16x128xbf16>
    %47 = vector.shape_cast %46 : vector<1x8x16x128xbf16> to vector<8x16x128xbf16>
    %48 = vector.shape_cast %47 : vector<8x16x128xbf16> to vector<128x128xbf16>
    %c0_31 = arith.constant 0 : index
    %c128 = arith.constant 128 : index
    %c0_32 = arith.constant 0 : index
    %49 = vector.load %arg6[%c0_31, %c128, %c0_32] : memref<2x1152x128xbf16, #tpu.memory_space<vmem>>, vector<1x128x128xbf16>
    %50 = vector.shape_cast %49 : vector<1x128x128xbf16> to vector<128x128xbf16>
    %cst_33 = arith.constant dense<0.000000e+00> : vector<128x128xf32>
    %51 = tpu.matmul %48, %50, %cst_33 {dimension_numbers = #tpu.dot_dimension_numbers<[1], [0], [0], [1], [0, 0, 1, 1], [], []>} : vector<128x128xbf16>, vector<128x128xbf16>, vector<128x128xf32> -> vector<128x128xf32>
    %52 = arith.addf %44, %51 : vector<128x128xf32>
    %53 = arith.index_cast %9 : i32 to index
    %c2_34 = arith.constant 2 : index
    %c6 = arith.constant 6 : index
    %c0_35 = arith.constant 0 : index
    %54 = vector.load %arg10[%53, %c2_34, %c6, %c0_35] : memref<2x16x24x128xbf16, #tpu.memory_space<vmem>>, vector<1x8x16x128xbf16>
    %55 = vector.shape_cast %54 : vector<1x8x16x128xbf16> to vector<8x16x128xbf16>
    %56 = vector.shape_cast %55 : vector<8x16x128xbf16> to vector<128x128xbf16>
    %c0_36 = arith.constant 0 : index
    %c256 = arith.constant 256 : index
    %c0_37 = arith.constant 0 : index
    %57 = vector.load %arg6[%c0_36, %c256, %c0_37] : memref<2x1152x128xbf16, #tpu.memory_space<vmem>>, vector<1x128x128xbf16>
    %58 = vector.shape_cast %57 : vector<1x128x128xbf16> to vector<128x128xbf16>
    %cst_38 = arith.constant dense<0.000000e+00> : vector<128x128xf32>
    %59 = tpu.matmul %56, %58, %cst_38 {dimension_numbers = #tpu.dot_dimension_numbers<[1], [0], [0], [1], [0, 0, 1, 1], [], []>} : vector<128x128xbf16>, vector<128x128xbf16>, vector<128x128xf32> -> vector<128x128xf32>
    %60 = arith.addf %52, %59 : vector<128x128xf32>
    %61 = arith.index_cast %9 : i32 to index
    %c4_39 = arith.constant 4 : index
    %c2_40 = arith.constant 2 : index
    %c0_41 = arith.constant 0 : index
    %62 = vector.load %arg10[%61, %c4_39, %c2_40, %c0_41] : memref<2x16x24x128xbf16, #tpu.memory_space<vmem>>, vector<1x8x16x128xbf16>
    %63 = vector.shape_cast %62 : vector<1x8x16x128xbf16> to vector<8x16x128xbf16>
    %64 = vector.shape_cast %63 : vector<8x16x128xbf16> to vector<128x128xbf16>
    %c0_42 = arith.constant 0 : index
    %c384 = arith.constant 384 : index
    %c0_43 = arith.constant 0 : index
    %65 = vector.load %arg6[%c0_42, %c384, %c0_43] : memref<2x1152x128xbf16, #tpu.memory_space<vmem>>, vector<1x128x128xbf16>
    %66 = vector.shape_cast %65 : vector<1x128x128xbf16> to vector<128x128xbf16>
    %cst_44 = arith.constant dense<0.000000e+00> : vector<128x128xf32>
    %67 = tpu.matmul %64, %66, %cst_44 {dimension_numbers = #tpu.dot_dimension_numbers<[1], [0], [0], [1], [0, 0, 1, 1], [], []>} : vector<128x128xbf16>, vector<128x128xbf16>, vector<128x128xf32> -> vector<128x128xf32>
    %68 = arith.addf %60, %67 : vector<128x128xf32>
    %69 = arith.index_cast %9 : i32 to index
    %c4_45 = arith.constant 4 : index
    %c4_46 = arith.constant 4 : index
    %c0_47 = arith.constant 0 : index
    %70 = vector.load %arg10[%69, %c4_45, %c4_46, %c0_47] : memref<2x16x24x128xbf16, #tpu.memory_space<vmem>>, vector<1x8x16x128xbf16>
    %71 = vector.shape_cast %70 : vector<1x8x16x128xbf16> to vector<8x16x128xbf16>
    %72 = vector.shape_cast %71 : vector<8x16x128xbf16> to vector<128x128xbf16>
    %c0_48 = arith.constant 0 : index
    %c512 = arith.constant 512 : index
    %c0_49 = arith.constant 0 : index
    %73 = vector.load %arg6[%c0_48, %c512, %c0_49] : memref<2x1152x128xbf16, #tpu.memory_space<vmem>>, vector<1x128x128xbf16>
    %74 = vector.shape_cast %73 : vector<1x128x128xbf16> to vector<128x128xbf16>
    %cst_50 = arith.constant dense<0.000000e+00> : vector<128x128xf32>
    %75 = tpu.matmul %72, %74, %cst_50 {dimension_numbers = #tpu.dot_dimension_numbers<[1], [0], [0], [1], [0, 0, 1, 1], [], []>} : vector<128x128xbf16>, vector<128x128xbf16>, vector<128x128xf32> -> vector<128x128xf32>
    %76 = arith.addf %68, %75 : vector<128x128xf32>
    %77 = arith.index_cast %9 : i32 to index
    %c4_51 = arith.constant 4 : index
    %c6_52 = arith.constant 6 : index
    %c0_53 = arith.constant 0 : index
    %78 = vector.load %arg10[%77, %c4_51, %c6_52, %c0_53] : memref<2x16x24x128xbf16, #tpu.memory_space<vmem>>, vector<1x8x16x128xbf16>
    %79 = vector.shape_cast %78 : vector<1x8x16x128xbf16> to vector<8x16x128xbf16>
    %80 = vector.shape_cast %79 : vector<8x16x128xbf16> to vector<128x128xbf16>
    %c0_54 = arith.constant 0 : index
    %c640 = arith.constant 640 : index
    %c0_55 = arith.constant 0 : index
    %81 = vector.load %arg6[%c0_54, %c640, %c0_55] : memref<2x1152x128xbf16, #tpu.memory_space<vmem>>, vector<1x128x128xbf16>
    %82 = vector.shape_cast %81 : vector<1x128x128xbf16> to vector<128x128xbf16>
    %cst_56 = arith.constant dense<0.000000e+00> : vector<128x128xf32>
    %83 = tpu.matmul %80, %82, %cst_56 {dimension_numbers = #tpu.dot_dimension_numbers<[1], [0], [0], [1], [0, 0, 1, 1], [], []>} : vector<128x128xbf16>, vector<128x128xbf16>, vector<128x128xf32> -> vector<128x128xf32>
    %84 = arith.addf %76, %83 : vector<128x128xf32>
    %85 = arith.index_cast %9 : i32 to index
    %c6_57 = arith.constant 6 : index
    %c2_58 = arith.constant 2 : index
    %c0_59 = arith.constant 0 : index
    %86 = vector.load %arg10[%85, %c6_57, %c2_58, %c0_59] : memref<2x16x24x128xbf16, #tpu.memory_space<vmem>>, vector<1x8x16x128xbf16>
    %87 = vector.shape_cast %86 : vector<1x8x16x128xbf16> to vector<8x16x128xbf16>
    %88 = vector.shape_cast %87 : vector<8x16x128xbf16> to vector<128x128xbf16>
    %c0_60 = arith.constant 0 : index
    %c768 = arith.constant 768 : index
    %c0_61 = arith.constant 0 : index
    %89 = vector.load %arg6[%c0_60, %c768, %c0_61] : memref<2x1152x128xbf16, #tpu.memory_space<vmem>>, vector<1x128x128xbf16>
    %90 = vector.shape_cast %89 : vector<1x128x128xbf16> to vector<128x128xbf16>
    %cst_62 = arith.constant dense<0.000000e+00> : vector<128x128xf32>
    %91 = tpu.matmul %88, %90, %cst_62 {dimension_numbers = #tpu.dot_dimension_numbers<[1], [0], [0], [1], [0, 0, 1, 1], [], []>} : vector<128x128xbf16>, vector<128x128xbf16>, vector<128x128xf32> -> vector<128x128xf32>
    %92 = arith.addf %84, %91 : vector<128x128xf32>
    %93 = arith.index_cast %9 : i32 to index
    %c6_63 = arith.constant 6 : index
    %c4_64 = arith.constant 4 : index
    %c0_65 = arith.constant 0 : index
    %94 = vector.load %arg10[%93, %c6_63, %c4_64, %c0_65] : memref<2x16x24x128xbf16, #tpu.memory_space<vmem>>, vector<1x8x16x128xbf16>
    %95 = vector.shape_cast %94 : vector<1x8x16x128xbf16> to vector<8x16x128xbf16>
    %96 = vector.shape_cast %95 : vector<8x16x128xbf16> to vector<128x128xbf16>
    %c0_66 = arith.constant 0 : index
    %c896 = arith.constant 896 : index
    %c0_67 = arith.constant 0 : index
    %97 = vector.load %arg6[%c0_66, %c896, %c0_67] : memref<2x1152x128xbf16, #tpu.memory_space<vmem>>, vector<1x128x128xbf16>
    %98 = vector.shape_cast %97 : vector<1x128x128xbf16> to vector<128x128xbf16>
    %cst_68 = arith.constant dense<0.000000e+00> : vector<128x128xf32>
    %99 = tpu.matmul %96, %98, %cst_68 {dimension_numbers = #tpu.dot_dimension_numbers<[1], [0], [0], [1], [0, 0, 1, 1], [], []>} : vector<128x128xbf16>, vector<128x128xbf16>, vector<128x128xf32> -> vector<128x128xf32>
    %100 = arith.addf %92, %99 : vector<128x128xf32>
    %101 = arith.index_cast %9 : i32 to index
    %c6_69 = arith.constant 6 : index
    %c6_70 = arith.constant 6 : index
    %c0_71 = arith.constant 0 : index
    %102 = vector.load %arg10[%101, %c6_69, %c6_70, %c0_71] : memref<2x16x24x128xbf16, #tpu.memory_space<vmem>>, vector<1x8x16x128xbf16>
    %103 = vector.shape_cast %102 : vector<1x8x16x128xbf16> to vector<8x16x128xbf16>
    %104 = vector.shape_cast %103 : vector<8x16x128xbf16> to vector<128x128xbf16>
    %c0_72 = arith.constant 0 : index
    %c1024 = arith.constant 1024 : index
    %c0_73 = arith.constant 0 : index
    %105 = vector.load %arg6[%c0_72, %c1024, %c0_73] : memref<2x1152x128xbf16, #tpu.memory_space<vmem>>, vector<1x128x128xbf16>
    %106 = vector.shape_cast %105 : vector<1x128x128xbf16> to vector<128x128xbf16>
    %cst_74 = arith.constant dense<0.000000e+00> : vector<128x128xf32>
    %107 = tpu.matmul %104, %106, %cst_74 {dimension_numbers = #tpu.dot_dimension_numbers<[1], [0], [0], [1], [0, 0, 1, 1], [], []>} : vector<128x128xbf16>, vector<128x128xbf16>, vector<128x128xf32> -> vector<128x128xf32>
    %108 = arith.addf %100, %107 : vector<128x128xf32>
    %c0_75 = arith.constant 0 : index
    %c0_76 = arith.constant 0 : index
    %109 = vector.load %arg7[%c0_75, %c0_76] : memref<2x128xf32, #tpu.memory_space<vmem>>, vector<1x128xf32>
    %110 = vector.broadcast %109 : vector<1x128xf32> to vector<128x128xf32>
    %111 = arith.addf %108, %110 : vector<128x128xf32>
    %cst_77 = arith.constant 0.000000e+00 : f32
    %112 = vector.broadcast %cst_77 : f32 to vector<128x128xf32>
    %113 = arith.maximumf %111, %112 : vector<128x128xf32>
    %114 = arith.truncf %113 : vector<128x128xf32> to vector<128x128xbf16>
    %c128_78 = arith.constant 128 : index
    %c0_79 = arith.constant 0 : index
    %115 = vector.load %arg8[%c128_78, %c0_79] : memref<384x128xbf16, #tpu.memory_space<vmem>>, vector<128x128xbf16>
    %cst_80 = arith.constant dense<0.000000e+00> : vector<128x128xf32>
    %116 = tpu.matmul %114, %115, %cst_80 {dimension_numbers = #tpu.dot_dimension_numbers<[1], [0], [0], [1], [0, 0, 1, 1], [], []>} : vector<128x128xbf16>, vector<128x128xbf16>, vector<128x128xf32> -> vector<128x128xf32>
    %117 = arith.addf %37, %116 : vector<128x128xf32>
    %118 = arith.index_cast %9 : i32 to index
    %c0_81 = arith.constant 0 : index
    %c0_82 = arith.constant 0 : index
    %c0_83 = arith.constant 0 : index
    %119 = vector.load %arg10[%118, %c0_81, %c0_82, %c0_83] : memref<2x16x24x128xbf16, #tpu.memory_space<vmem>>, vector<1x8x16x128xbf16>
    %120 = vector.shape_cast %119 : vector<1x8x16x128xbf16> to vector<8x16x128xbf16>
    %121 = vector.shape_cast %120 : vector<8x16x128xbf16> to vector<128x128xbf16>
    %c1 = arith.constant 1 : index
    %c0_84 = arith.constant 0 : index
    %c0_85 = arith.constant 0 : index
    %122 = vector.load %arg6[%c1, %c0_84, %c0_85] : memref<2x1152x128xbf16, #tpu.memory_space<vmem>>, vector<1x128x128xbf16>
    %123 = vector.shape_cast %122 : vector<1x128x128xbf16> to vector<128x128xbf16>
    %cst_86 = arith.constant dense<0.000000e+00> : vector<128x128xf32>
    %124 = tpu.matmul %121, %123, %cst_86 {dimension_numbers = #tpu.dot_dimension_numbers<[1], [0], [0], [1], [0, 0, 1, 1], [], []>} : vector<128x128xbf16>, vector<128x128xbf16>, vector<128x128xf32> -> vector<128x128xf32>
    %125 = arith.index_cast %9 : i32 to index
    %c0_87 = arith.constant 0 : index
    %c4_88 = arith.constant 4 : index
    %c0_89 = arith.constant 0 : index
    %126 = vector.load %arg10[%125, %c0_87, %c4_88, %c0_89] : memref<2x16x24x128xbf16, #tpu.memory_space<vmem>>, vector<1x8x16x128xbf16>
    %127 = vector.shape_cast %126 : vector<1x8x16x128xbf16> to vector<8x16x128xbf16>
    %128 = vector.shape_cast %127 : vector<8x16x128xbf16> to vector<128x128xbf16>
    %c1_90 = arith.constant 1 : index
    %c128_91 = arith.constant 128 : index
    %c0_92 = arith.constant 0 : index
    %129 = vector.load %arg6[%c1_90, %c128_91, %c0_92] : memref<2x1152x128xbf16, #tpu.memory_space<vmem>>, vector<1x128x128xbf16>
    %130 = vector.shape_cast %129 : vector<1x128x128xbf16> to vector<128x128xbf16>
    %cst_93 = arith.constant dense<0.000000e+00> : vector<128x128xf32>
    %131 = tpu.matmul %128, %130, %cst_93 {dimension_numbers = #tpu.dot_dimension_numbers<[1], [0], [0], [1], [0, 0, 1, 1], [], []>} : vector<128x128xbf16>, vector<128x128xbf16>, vector<128x128xf32> -> vector<128x128xf32>
    %132 = arith.addf %124, %131 : vector<128x128xf32>
    %133 = arith.index_cast %9 : i32 to index
    %c0_94 = arith.constant 0 : index
    %c8 = arith.constant 8 : index
    %c0_95 = arith.constant 0 : index
    %134 = vector.load %arg10[%133, %c0_94, %c8, %c0_95] : memref<2x16x24x128xbf16, #tpu.memory_space<vmem>>, vector<1x8x16x128xbf16>
    %135 = vector.shape_cast %134 : vector<1x8x16x128xbf16> to vector<8x16x128xbf16>
    %136 = vector.shape_cast %135 : vector<8x16x128xbf16> to vector<128x128xbf16>
    %c1_96 = arith.constant 1 : index
    %c256_97 = arith.constant 256 : index
    %c0_98 = arith.constant 0 : index
    %137 = vector.load %arg6[%c1_96, %c256_97, %c0_98] : memref<2x1152x128xbf16, #tpu.memory_space<vmem>>, vector<1x128x128xbf16>
    %138 = vector.shape_cast %137 : vector<1x128x128xbf16> to vector<128x128xbf16>
    %cst_99 = arith.constant dense<0.000000e+00> : vector<128x128xf32>
    %139 = tpu.matmul %136, %138, %cst_99 {dimension_numbers = #tpu.dot_dimension_numbers<[1], [0], [0], [1], [0, 0, 1, 1], [], []>} : vector<128x128xbf16>, vector<128x128xbf16>, vector<128x128xf32> -> vector<128x128xf32>
    %140 = arith.addf %132, %139 : vector<128x128xf32>
    %141 = arith.index_cast %9 : i32 to index
    %c4_100 = arith.constant 4 : index
    %c0_101 = arith.constant 0 : index
    %c0_102 = arith.constant 0 : index
    %142 = vector.load %arg10[%141, %c4_100, %c0_101, %c0_102] : memref<2x16x24x128xbf16, #tpu.memory_space<vmem>>, vector<1x8x16x128xbf16>
    %143 = vector.shape_cast %142 : vector<1x8x16x128xbf16> to vector<8x16x128xbf16>
    %144 = vector.shape_cast %143 : vector<8x16x128xbf16> to vector<128x128xbf16>
    %c1_103 = arith.constant 1 : index
    %c384_104 = arith.constant 384 : index
    %c0_105 = arith.constant 0 : index
    %145 = vector.load %arg6[%c1_103, %c384_104, %c0_105] : memref<2x1152x128xbf16, #tpu.memory_space<vmem>>, vector<1x128x128xbf16>
    %146 = vector.shape_cast %145 : vector<1x128x128xbf16> to vector<128x128xbf16>
    %cst_106 = arith.constant dense<0.000000e+00> : vector<128x128xf32>
    %147 = tpu.matmul %144, %146, %cst_106 {dimension_numbers = #tpu.dot_dimension_numbers<[1], [0], [0], [1], [0, 0, 1, 1], [], []>} : vector<128x128xbf16>, vector<128x128xbf16>, vector<128x128xf32> -> vector<128x128xf32>
    %148 = arith.addf %140, %147 : vector<128x128xf32>
    %149 = arith.index_cast %9 : i32 to index
    %c4_107 = arith.constant 4 : index
    %c4_108 = arith.constant 4 : index
    %c0_109 = arith.constant 0 : index
    %150 = vector.load %arg10[%149, %c4_107, %c4_108, %c0_109] : memref<2x16x24x128xbf16, #tpu.memory_space<vmem>>, vector<1x8x16x128xbf16>
    %151 = vector.shape_cast %150 : vector<1x8x16x128xbf16> to vector<8x16x128xbf16>
    %152 = vector.shape_cast %151 : vector<8x16x128xbf16> to vector<128x128xbf16>
    %c1_110 = arith.constant 1 : index
    %c512_111 = arith.constant 512 : index
    %c0_112 = arith.constant 0 : index
    %153 = vector.load %arg6[%c1_110, %c512_111, %c0_112] : memref<2x1152x128xbf16, #tpu.memory_space<vmem>>, vector<1x128x128xbf16>
    %154 = vector.shape_cast %153 : vector<1x128x128xbf16> to vector<128x128xbf16>
    %cst_113 = arith.constant dense<0.000000e+00> : vector<128x128xf32>
    %155 = tpu.matmul %152, %154, %cst_113 {dimension_numbers = #tpu.dot_dimension_numbers<[1], [0], [0], [1], [0, 0, 1, 1], [], []>} : vector<128x128xbf16>, vector<128x128xbf16>, vector<128x128xf32> -> vector<128x128xf32>
    %156 = arith.addf %148, %155 : vector<128x128xf32>
    %157 = arith.index_cast %9 : i32 to index
    %c4_114 = arith.constant 4 : index
    %c8_115 = arith.constant 8 : index
    %c0_116 = arith.constant 0 : index
    %158 = vector.load %arg10[%157, %c4_114, %c8_115, %c0_116] : memref<2x16x24x128xbf16, #tpu.memory_space<vmem>>, vector<1x8x16x128xbf16>
    %159 = vector.shape_cast %158 : vector<1x8x16x128xbf16> to vector<8x16x128xbf16>
    %160 = vector.shape_cast %159 : vector<8x16x128xbf16> to vector<128x128xbf16>
    %c1_117 = arith.constant 1 : index
    %c640_118 = arith.constant 640 : index
    %c0_119 = arith.constant 0 : index
    %161 = vector.load %arg6[%c1_117, %c640_118, %c0_119] : memref<2x1152x128xbf16, #tpu.memory_space<vmem>>, vector<1x128x128xbf16>
    %162 = vector.shape_cast %161 : vector<1x128x128xbf16> to vector<128x128xbf16>
    %cst_120 = arith.constant dense<0.000000e+00> : vector<128x128xf32>
    %163 = tpu.matmul %160, %162, %cst_120 {dimension_numbers = #tpu.dot_dimension_numbers<[1], [0], [0], [1], [0, 0, 1, 1], [], []>} : vector<128x128xbf16>, vector<128x128xbf16>, vector<128x128xf32> -> vector<128x128xf32>
    %164 = arith.addf %156, %163 : vector<128x128xf32>
    %165 = arith.index_cast %9 : i32 to index
    %c8_121 = arith.constant 8 : index
    %c0_122 = arith.constant 0 : index
    %c0_123 = arith.constant 0 : index
    %166 = vector.load %arg10[%165, %c8_121, %c0_122, %c0_123] : memref<2x16x24x128xbf16, #tpu.memory_space<vmem>>, vector<1x8x16x128xbf16>
    %167 = vector.shape_cast %166 : vector<1x8x16x128xbf16> to vector<8x16x128xbf16>
    %168 = vector.shape_cast %167 : vector<8x16x128xbf16> to vector<128x128xbf16>
    %c1_124 = arith.constant 1 : index
    %c768_125 = arith.constant 768 : index
    %c0_126 = arith.constant 0 : index
    %169 = vector.load %arg6[%c1_124, %c768_125, %c0_126] : memref<2x1152x128xbf16, #tpu.memory_space<vmem>>, vector<1x128x128xbf16>
    %170 = vector.shape_cast %169 : vector<1x128x128xbf16> to vector<128x128xbf16>
    %cst_127 = arith.constant dense<0.000000e+00> : vector<128x128xf32>
    %171 = tpu.matmul %168, %170, %cst_127 {dimension_numbers = #tpu.dot_dimension_numbers<[1], [0], [0], [1], [0, 0, 1, 1], [], []>} : vector<128x128xbf16>, vector<128x128xbf16>, vector<128x128xf32> -> vector<128x128xf32>
    %172 = arith.addf %164, %171 : vector<128x128xf32>
    %173 = arith.index_cast %9 : i32 to index
    %c8_128 = arith.constant 8 : index
    %c4_129 = arith.constant 4 : index
    %c0_130 = arith.constant 0 : index
    %174 = vector.load %arg10[%173, %c8_128, %c4_129, %c0_130] : memref<2x16x24x128xbf16, #tpu.memory_space<vmem>>, vector<1x8x16x128xbf16>
    %175 = vector.shape_cast %174 : vector<1x8x16x128xbf16> to vector<8x16x128xbf16>
    %176 = vector.shape_cast %175 : vector<8x16x128xbf16> to vector<128x128xbf16>
    %c1_131 = arith.constant 1 : index
    %c896_132 = arith.constant 896 : index
    %c0_133 = arith.constant 0 : index
    %177 = vector.load %arg6[%c1_131, %c896_132, %c0_133] : memref<2x1152x128xbf16, #tpu.memory_space<vmem>>, vector<1x128x128xbf16>
    %178 = vector.shape_cast %177 : vector<1x128x128xbf16> to vector<128x128xbf16>
    %cst_134 = arith.constant dense<0.000000e+00> : vector<128x128xf32>
    %179 = tpu.matmul %176, %178, %cst_134 {dimension_numbers = #tpu.dot_dimension_numbers<[1], [0], [0], [1], [0, 0, 1, 1], [], []>} : vector<128x128xbf16>, vector<128x128xbf16>, vector<128x128xf32> -> vector<128x128xf32>
    %180 = arith.addf %172, %179 : vector<128x128xf32>
    %181 = arith.index_cast %9 : i32 to index
    %c8_135 = arith.constant 8 : index
    %c8_136 = arith.constant 8 : index
    %c0_137 = arith.constant 0 : index
    %182 = vector.load %arg10[%181, %c8_135, %c8_136, %c0_137] : memref<2x16x24x128xbf16, #tpu.memory_space<vmem>>, vector<1x8x16x128xbf16>
    %183 = vector.shape_cast %182 : vector<1x8x16x128xbf16> to vector<8x16x128xbf16>
    %184 = vector.shape_cast %183 : vector<8x16x128xbf16> to vector<128x128xbf16>
    %c1_138 = arith.constant 1 : index
    %c1024_139 = arith.constant 1024 : index
    %c0_140 = arith.constant 0 : index
    %185 = vector.load %arg6[%c1_138, %c1024_139, %c0_140] : memref<2x1152x128xbf16, #tpu.memory_space<vmem>>, vector<1x128x128xbf16>
    %186 = vector.shape_cast %185 : vector<1x128x128xbf16> to vector<128x128xbf16>
    %cst_141 = arith.constant dense<0.000000e+00> : vector<128x128xf32>
    %187 = tpu.matmul %184, %186, %cst_141 {dimension_numbers = #tpu.dot_dimension_numbers<[1], [0], [0], [1], [0, 0, 1, 1], [], []>} : vector<128x128xbf16>, vector<128x128xbf16>, vector<128x128xf32> -> vector<128x128xf32>
    %188 = arith.addf %180, %187 : vector<128x128xf32>
    %c1_142 = arith.constant 1 : index
    %c0_143 = arith.constant 0 : index
    %189 = vector.load %arg7[%c1_142, %c0_143] : memref<2x128xf32, #tpu.memory_space<vmem>>, vector<1x128xf32>
    %190 = vector.broadcast %189 : vector<1x128xf32> to vector<128x128xf32>
    %191 = arith.addf %188, %190 : vector<128x128xf32>
    %cst_144 = arith.constant 0.000000e+00 : f32
    %192 = vector.broadcast %cst_144 : f32 to vector<128x128xf32>
    %193 = arith.maximumf %191, %192 : vector<128x128xf32>
    %194 = arith.truncf %193 : vector<128x128xf32> to vector<128x128xbf16>
    %c256_145 = arith.constant 256 : index
    %c0_146 = arith.constant 0 : index
    %195 = vector.load %arg8[%c256_145, %c0_146] : memref<384x128xbf16, #tpu.memory_space<vmem>>, vector<128x128xbf16>
    %cst_147 = arith.constant dense<0.000000e+00> : vector<128x128xf32>
    %196 = tpu.matmul %194, %195, %cst_147 {dimension_numbers = #tpu.dot_dimension_numbers<[1], [0], [0], [1], [0, 0, 1, 1], [], []>} : vector<128x128xbf16>, vector<128x128xbf16>, vector<128x128xf32> -> vector<128x128xf32>
    %197 = arith.addf %117, %196 : vector<128x128xf32>
    %c0_148 = arith.constant 0 : index
    %c0_149 = arith.constant 0 : index
    %c0_150 = arith.constant 0 : index
    %198 = vector.load %arg3[%c0_148, %c0_149, %c0_150] : memref<1x1x128xf32, #tpu.memory_space<vmem>>, vector<1x1x128xf32>
    %199 = vector.shape_cast %198 : vector<1x1x128xf32> to vector<1x128xf32>
    %200 = vector.broadcast %199 : vector<1x128xf32> to vector<128x128xf32>
    %201 = arith.addf %197, %200 : vector<128x128xf32>
    %cst_151 = arith.constant 0.000000e+00 : f32
    %202 = vector.broadcast %cst_151 : f32 to vector<128x128xf32>
    %203 = arith.maximumf %201, %202 : vector<128x128xf32>
    %204 = arith.negf %203 : vector<128x128xf32>
    %205 = math.exp %204 : vector<128x128xf32>
    %cst_152 = arith.constant 1.000000e+00 : f32
    %206 = vector.broadcast %cst_152 : f32 to vector<128x128xf32>
    %207 = arith.addf %206, %205 : vector<128x128xf32>
    %208 = arith.divf %206, %207 : vector<128x128xf32>
    %209 = vector.shape_cast %208 : vector<128x128xf32> to vector<8x16x128xf32>
    %c0_153 = arith.constant 0 : index
    %c0_154 = arith.constant 0 : index
    %c0_155 = arith.constant 0 : index
    %c0_156 = arith.constant 0 : index
    %210 = vector.load %arg9[%c0_153, %c0_154, %c0_155, %c0_156] : memref<1x8x16x128xf32, #tpu.memory_space<vmem>>, vector<1x8x16x128xf32>
    %211 = vector.shape_cast %210 : vector<1x8x16x128xf32> to vector<8x16x128xf32>
    %212 = vector.shape_cast %209 : vector<8x16x128xf32> to vector<1x8x16x128xf32>
    tpu.vector_store %arg9[%c0_153, %c0_154, %c0_155, %c0_156], %212 {strides = array<i32>} : memref<1x8x16x128xf32, #tpu.memory_space<vmem>>, vector<1x8x16x128xf32>,
    return
  }
  func.func @transform_1(%arg0: i32, %arg1: i32) -> (i32, i32, i32) {
    %c0_i32 = arith.constant 0 : i32
    %c0_i32_0 = arith.constant 0 : i32
    %c0_i32_1 = arith.constant 0 : i32
    return %arg0, %c0_i32, %c0_i32_0 : i32, i32, i32
  }
  func.func @transform_2(%arg0: i32, %arg1: i32) -> (i32, i32) {
    %c0_i32 = arith.constant 0 : i32
    %c0_i32_0 = arith.constant 0 : i32
    %c0_i32_1 = arith.constant 0 : i32
    return %c0_i32, %c0_i32_0 : i32, i32
  }
  func.func @transform_3(%arg0: i32, %arg1: i32) -> (i32, i32) {
    %c0_i32 = arith.constant 0 : i32
    %c0_i32_0 = arith.constant 0 : i32
    %c0_i32_1 = arith.constant 0 : i32
    return %c0_i32, %c0_i32_0 : i32, i32
  }
  func.func @transform_4(%arg0: i32, %arg1: i32) -> (i32, i32, i32) {
    %c0_i32 = arith.constant 0 : i32
    %c0_i32_0 = arith.constant 0 : i32
    %c0_i32_1 = arith.constant 0 : i32
    %c0_i32_2 = arith.constant 0 : i32
    return %c0_i32, %c0_i32_0, %c0_i32_1 : i32, i32, i32
  }
  func.func @transform_5(%arg0: i32, %arg1: i32) -> (i32, i32) {
    %c0_i32 = arith.constant 0 : i32
    %c0_i32_0 = arith.constant 0 : i32
    %c0_i32_1 = arith.constant 0 : i32
    return %c0_i32, %c0_i32_0 : i32, i32
  }
  func.func @transform_6(%arg0: i32, %arg1: i32) -> (i32, i32) {
    %c0_i32 = arith.constant 0 : i32
    %c0_i32_0 = arith.constant 0 : i32
    %c0_i32_1 = arith.constant 0 : i32
    return %c0_i32, %c0_i32_0 : i32, i32
  }
  func.func @transform_7(%arg0: i32, %arg1: i32) -> (i32, i32, i32, i32) {
    %c0_i32 = arith.constant 0 : i32
    %c0_i32_0 = arith.constant 0 : i32
    %c0_i32_1 = arith.constant 0 : i32
    return %arg0, %arg1, %c0_i32, %c0_i32_0 : i32, i32, i32, i32
  }
}

</mosaic_0001>

<bundles_post_ra>
// kernel: aspp_pallas.1
= control target key start
LH: loop header
LB: loop body
LE: loop exit
PB: predicated region body
PF: predicated region fallthrough
CT: control target
= control target key end

     0   :  { %s9067_s24 = smov 0   ;;  %s9069_s25 = smov 0   ;;  %s11211_s0 = inlined_call_operand.vmem [shape: bf16[2,24,24,128], index: 0, kind: input, shape index: {}]   ;;  %s11212_s1 = inlined_call_operand.vmem [shape: f32[2,1,128], index: 1, kind: input, shape index: {}]   ;;  %s11213_s2 = inlined_call_operand.vmem [shape: bf16[128,128], index: 2, kind: input, shape index: {}]   ;;  %s11214_s3 = inlined_call_operand.vmem [shape: f32[1,128], index: 3, kind: input, shape index: {}]   ;;  %s11215_s4 = inlined_call_operand.vmem [shape: bf16[2,1152,128], index: 4, kind: input, shape index: {}]   ;;  %s11216_s5 = inlined_call_operand.vmem [shape: f32[2,128], index: 5, kind: input, shape index: {}]   ;;  %s11217_s6 = inlined_call_operand.vmem [shape: bf16[384,128], index: 6, kind: input, shape index: {}]   ;;  %s11218_s7 = inlined_call_operand.vmem [shape: f32[2,16,16,128], index: 7, kind: output, shape index: {}]  }
   0x1   :  { %s9071_s26 = smov 0   ;;  %s9073_s27 = smov 0  }
   0x2   :  { %s9075_s28 = smov 0  }
   0x3 LB: > { %s26_s29 = sadd.s32 1, %s9017_s26  ;;  %s29_s30 = sadd.s32 1, %s9021_s27  ;;  %s9025_s28 = sphi %s9075_s28, %s17_s28   ;;  %s9021_s27 = sphi %s9073_s27, %s11369_s27   ;;  %s9017_s26 = sphi %s9071_s26, %s11368_s26   ;;  %s9013_s25 = sphi %s9069_s25, %s11367_s25   ;;  %s9009_s24 = sphi %s9067_s24, %s11366_s24  }
   0x4   : > { %p27_p0 = scmp.ge.s32.totalorder %s26_s29, 2  ;;  %p6431_p1 = scmp.ge.s32.totalorder %s9025_s28, 1 }
   0x5   : > { %p225_p2 = scmp.lt.s32.totalorder %s9025_s28, 5 }
   0x6   : > { %s11371_s29 = smov (%p27_p0, %s26_s29), 0  ;;  %s11373_s30 = smov (!%p27_p0, %s29_s30), %s9021_s27 }
   0x7   : > { %p226_p3 = pnand %p6431_p1, %p225_p2  ;;  %p31_p4 = scmp.ge.s32.totalorder %s11373_s30, 2 }
   0x9   : > { %s11375_s30 = smov (%p31_p4, %s11373_s30), 0  ;;  %229 = sbr.rel (%p226_p3) target bundleno = 1107 (0x453), region = 44 }
   0xa   : > { %11254 = sst [smem:[#allocation7_spill]] %s11375_s30 }
  0x10   : > { %p258_p5 = scmp.lt.s32.totalorder %s9013_s25, 1  ;;  %s6432_s8 = sshll.u32 %s9009_s24, 3 }
  0x11   : > { %p264_p6 = scmp.lt.s32.totalorder %s6432_s8, 15  ;;  %p273_p7 = scmp.lt.s32.totalorder %s9009_s24, 0 }
  0x12   : > { %s9105_s9 = scalar_select %p258_p5, %s9013_s25, 1 }
  0x13   : > { %s11377_s8 = smov (!%p264_p6, %s6432_s8), 15  ;;  %s274_s15 = ssub.s32 0, %s9009_s24 }
  0x14   : > { %s260_s12 = scalar_lea.vmem %s11212_s1, %s9105_s9  ;;  %s6434_s13 = sshll.u32 %s9105_s9, 5 }
  0x15   : > { %s6433_s14 = sshll.u32 %s11377_s8, 1  ;;  %s6436_s17 = smin.u32 %s9009_s24, %s274_s15 }
  0x16   : > { %s268_s16 = sadd.s32 %s6434_s13, %s6433_s14  ;;  %s276_s19 = sand.u32 1, %s6436_s17  }
  0x17   : > { %s6435_s18 = sshll.u32 %s268_s16, 3  ;;  %s277_s23 = ssub.s32 0, %s276_s19 }
  0x18   : > { %s9117_s22 = scalar_lea.vmem %s11218_s7, %s6435_s18  ;;  %s11379_s23 = smov (!%p273_p7, %s277_s23), %s276_s19 }
  0x19   : > { %p6438_p8 = scmp.lt.s32.totalorder %s11379_s23, 0  ;;  %s283_s30 = sadd.s32 2, %s11379_s23 }
  0x1a   : > { %p6439_p9 = scmp.ne.s32.totalorder %s9009_s24, 0 }
  0x1b   : > { %s11381_s30 = smov (!%p6438_p8, %s283_s30), %s11379_s23  ;;  %s7282_s8 = smul.u32 (!%p6439_p9), 288, %s9013_s25 }
  0x1c   : > { %288 = sbr.rel (%p6439_p9) target bundleno = 44 (0x2c), region = 48 }
  0x1d   : > { %s9126_s13 = scalar_lea.vmem (!%p6439_p9), %s11211_s0, %s7282_s8 }
  0x1e   : > { %v324_v0 = vld [vmem:[%s9126_s13] sm:$0xff] (!%p6439_p9)  ;;  %v326_v1 = vld [vmem:[%s9126_s13 + $0x8] sm:$0xff] (!%p6439_p9)  ;;  %v328_v2 = vld [vmem:[%s9126_s13 + $0x10] sm:$0xff] (!%p6439_p9) }
  0x1f   : > { %325 = vst [vmem:[#allocation2] sm:$0xff] (!%p6439_p9), %v324_v0  ;;  %327 = vst [vmem:[#allocation2 + $0x8] sm:$0xff] (!%p6439_p9), %v326_v1  ;;  %v330_v3 = vld [vmem:[%s9126_s13 + $0x18] sm:$0xff] (!%p6439_p9)  ;;  %v332_v4 = vld [vmem:[%s9126_s13 + $0x20] sm:$0xff] (!%p6439_p9) }
  0x20   : > { %329 = vst [vmem:[#allocation2 + $0x10] sm:$0xff] (!%p6439_p9), %v328_v2  ;;  %v334_v5 = vld [vmem:[%s9126_s13 + $0x28] sm:$0xff] (!%p6439_p9)  ;;  %331 = vst [vmem:[#allocation2 + $0x18] sm:$0xff] (!%p6439_p9), %v330_v3  ;;  %v336_v6 = vld [vmem:[%s9126_s13 + $0x30] sm:$0xff] (!%p6439_p9) }
  0x21   : > { %333 = vst [vmem:[#allocation2 + $0x20] sm:$0xff] (!%p6439_p9), %v332_v4  ;;  %335 = vst [vmem:[#allocation2 + $0x28] sm:$0xff] (!%p6439_p9), %v334_v5  ;;  %v338_v7 = vld [vmem:[%s9126_s13 + $0x38] sm:$0xff] (!%p6439_p9)  ;;  %v340_v8 = vld [vmem:[%s9126_s13 + $0x40] sm:$0xff] (!%p6439_p9) }
  0x22   : > { %337 = vst [vmem:[#allocation2 + $0x30] sm:$0xff] (!%p6439_p9), %v336_v6  ;;  %339 = vst [vmem:[#allocation2 + $0x38] sm:$0xff] (!%p6439_p9), %v338_v7  ;;  %v342_v9 = vld [vmem:[%s9126_s13 + $0x48] sm:$0xff] (!%p6439_p9)  ;;  %v344_v10 = vld [vmem:[%s9126_s13 + $0x50] sm:$0xff] (!%p6439_p9) }
  0x23   : > { %341 = vst [vmem:[#allocation2 + $0x40] sm:$0xff] %v340_v8  ;;  %v346_v11 = vld [vmem:[%s9126_s13 + $0x58] sm:$0xff]  ;;  %343 = vst [vmem:[#allocation2 + $0x48] sm:$0xff] %v342_v9  ;;  %v348_v12 = vld [vmem:[%s9126_s13 + $0x60] sm:$0xff] }
  0x24   : > { %345 = vst [vmem:[#allocation2 + $0x50] sm:$0xff] %v344_v10  ;;  %347 = vst [vmem:[#allocation2 + $0x58] sm:$0xff] %v346_v11  ;;  %v350_v13 = vld [vmem:[%s9126_s13 + $0x68] sm:$0xff]  ;;  %v352_v14 = vld [vmem:[%s9126_s13 + $0x70] sm:$0xff] }
  0x25   : > { %349 = vst [vmem:[#allocation2 + $0x60] sm:$0xff] %v348_v12  ;;  %351 = vst [vmem:[#allocation2 + $0x68] sm:$0xff] %v350_v13  ;;  %v354_v15 = vld [vmem:[%s9126_s13 + $0x78] sm:$0xff]  ;;  %v356_v16 = vld [vmem:[%s9126_s13 + $0x80] sm:$0xff] }
  0x26   : > { %353 = vst [vmem:[#allocation2 + $0x70] sm:$0xff] %v352_v14  ;;  %v358_v17 = vld [vmem:[%s9126_s13 + $0x88] sm:$0xff]  ;;  %355 = vst [vmem:[#allocation2 + $0x78] sm:$0xff] %v354_v15  ;;  %v360_v18 = vld [vmem:[%s9126_s13 + $0x90] sm:$0xff] }
  0x27   : > { %357 = vst [vmem:[#allocation2 + $0x80] sm:$0xff] %v356_v16  ;;  %359 = vst [vmem:[#allocation2 + $0x88] sm:$0xff] %v358_v17  ;;  %v362_v19 = vld [vmem:[%s9126_s13 + $0x98] sm:$0xff]  ;;  %v364_v20 = vld [vmem:[%s9126_s13 + $0xa0] sm:$0xff] }
  0x28   : > { %361 = vst [vmem:[#allocation2 + $0x90] sm:$0xff] %v360_v18  ;;  %363 = vst [vmem:[#allocation2 + $0x98] sm:$0xff] %v362_v19  ;;  %v366_v21 = vld [vmem:[%s9126_s13 + $0xa8] sm:$0xff]  ;;  %v368_v22 = vld [vmem:[%s9126_s13 + $0xb0] sm:$0xff] }
  0x29   : > { %365 = vst [vmem:[#allocation2 + $0xa0] sm:$0xff] %v364_v20  ;;  %v370_v23 = vld [vmem:[%s9126_s13 + $0xb8] sm:$0xff]  ;;  %367 = vst [vmem:[#allocation2 + $0xa8] sm:$0xff] %v366_v21 }
  0x2a   : > { %369 = vst [vmem:[#allocation2 + $0xb0] sm:$0xff] %v368_v22  ;;  %371 = vst [vmem:[#allocation2 + $0xb8] sm:$0xff] %v370_v23 }
  0x2b   : > { %379 = vsyncadd [#allocation3], 3072 }
  0x2c PF: > { %s380_s14 = sadd.s32 1, %s9009_s24 }
  0x2d   : > { %p6441_p10 = scmp.ge.s32.totalorder %s380_s14, 2 }
  0x2e   : > { %s385_s15 = ssub.s32 (!%p6441_p10), 1, %s11381_s30  ;;  %s6341_s16 = smul.u32 (!%p6441_p10), 24, %s9009_s24 }
  0x2f   : > { %384 = sbr.rel (%p6441_p10) target bundleno = 67 (0x43), region = 86 }
  0x30   : > { %s6342_s17 = smul.u32 (!%p6441_p10), 72, %s9013_s25  ;;  %s395_s25 = scalar_lea.sflag (!%p6441_p10), [#allocation3], %s385_s15 }
  0x31   : > { %s7283_s18 = smul.u32 (!%p6441_p10), 192, %s385_s15 }
  0x32   : > { %s6343_s19 = sadd.s32 (!%p6441_p10), %s6342_s17, %s6341_s16 }
  0x33   : > { %s6442_s20 = sshll.u32 (!%p6441_p10), %s6343_s19, 2  ;;  %s9166_s24 = scalar_lea.vmem (!%p6441_p10), [#allocation2], %s7283_s18 }
  0x34   : > { %s9161_s8 = scalar_lea.vmem (!%p6441_p10), %s11211_s0, %s6442_s20 }
  0x35   : > { %v6444_v24 = vld [vmem:[%s9161_s8 + $0x60] sm:$0xff] (!%p6441_p10)  ;;  %v6445_v25 = vld [vmem:[%s9161_s8 + $0x68] sm:$0xff] (!%p6441_p10)  ;;  %v6446_v26 = vld [vmem:[%s9161_s8 + $0x70] sm:$0xff] (!%p6441_p10) }
  0x36   : > { %429 = vst [vmem:[%s9166_s24] sm:$0xff] %v6444_v24  ;;  %431 = vst [vmem:[%s9166_s24 + $0x8] sm:$0xff] %v6445_v25  ;;  %v6447_v27 = vld [vmem:[%s9161_s8 + $0x78] sm:$0xff]  ;;  %v6448_v28 = vld [vmem:[%s9161_s8 + $0x80] sm:$0xff] }
  0x37   : > { %433 = vst [vmem:[%s9166_s24 + $0x10] sm:$0xff] %v6446_v26  ;;  %v6449_v29 = vld [vmem:[%s9161_s8 + $0x88] sm:$0xff]  ;;  %435 = vst [vmem:[%s9166_s24 + $0x18] sm:$0xff] %v6447_v27  ;;  %v6450_v30 = vld [vmem:[%s9161_s8 + $0x90] sm:$0xff] }
  0x38   : > { %437 = vst [vmem:[%s9166_s24 + $0x20] sm:$0xff] %v6448_v28  ;;  %439 = vst [vmem:[%s9166_s24 + $0x28] sm:$0xff] %v6449_v29  ;;  %v6451_v31 = vld [vmem:[%s9161_s8 + $0x98] sm:$0xff]  ;;  %v6452_v32 = vld [vmem:[%s9161_s8 + $0xa0] sm:$0xff] }
  0x39   : > { %441 = vst [vmem:[%s9166_s24 + $0x30] sm:$0xff] %v6450_v30  ;;  %443 = vst [vmem:[%s9166_s24 + $0x38] sm:$0xff] %v6451_v31  ;;  %v6453_v33 = vld [vmem:[%s9161_s8 + $0xa8] sm:$0xff]  ;;  %v6454_v34 = vld [vmem:[%s9161_s8 + $0xb0] sm:$0xff] }
  0x3a   : > { %445 = vst [vmem:[%s9166_s24 + $0x40] sm:$0xff] %v6452_v32  ;;  %v6455_v35 = vld [vmem:[%s9161_s8 + $0xb8] sm:$0xff]  ;;  %447 = vst [vmem:[%s9166_s24 + $0x48] sm:$0xff] %v6453_v33  ;;  %v6456_v36 = vld [vmem:[%s9161_s8 + $0xc0] sm:$0xff] }
  0x3b   : > { %449 = vst [vmem:[%s9166_s24 + $0x50] sm:$0xff] %v6454_v34  ;;  %451 = vst [vmem:[%s9166_s24 + $0x58] sm:$0xff] %v6455_v35  ;;  %v6457_v37 = vld [vmem:[%s9161_s8 + $0xc8] sm:$0xff]  ;;  %v6458_v38 = vld [vmem:[%s9161_s8 + $0xd0] sm:$0xff] }
  0x3c   : > { %453 = vst [vmem:[%s9166_s24 + $0x60] sm:$0xff] %v6456_v36  ;;  %455 = vst [vmem:[%s9166_s24 + $0x68] sm:$0xff] %v6457_v37  ;;  %v6459_v39 = vld [vmem:[%s9161_s8 + $0xd8] sm:$0xff]  ;;  %v6460_v40 = vld [vmem:[%s9161_s8 + $0xe0] sm:$0xff] }
  0x3d   : > { %457 = vst [vmem:[%s9166_s24 + $0x70] sm:$0xff] %v6458_v38  ;;  %v6461_v41 = vld [vmem:[%s9161_s8 + $0xe8] sm:$0xff]  ;;  %459 = vst [vmem:[%s9166_s24 + $0x78] sm:$0xff] %v6459_v39  ;;  %v6462_v42 = vld [vmem:[%s9161_s8 + $0xf0] sm:$0xff] }
  0x3e   : > { %461 = vst [vmem:[%s9166_s24 + $0x80] sm:$0xff] %v6460_v40  ;;  %463 = vst [vmem:[%s9166_s24 + $0x88] sm:$0xff] %v6461_v41  ;;  %v6463_v43 = vld [vmem:[%s9161_s8 + $0xf8] sm:$0xff]  ;;  %v6464_v44 = vld [vmem:[%s9161_s8 + $0x100] sm:$0xff] }
  0x3f   : > { %465 = vst [vmem:[%s9166_s24 + $0x90] sm:$0xff] %v6462_v42  ;;  %467 = vst [vmem:[%s9166_s24 + $0x98] sm:$0xff] %v6463_v43  ;;  %v6465_v45 = vld [vmem:[%s9161_s8 + $0x108] sm:$0xff]  ;;  %v6466_v46 = vld [vmem:[%s9161_s8 + $0x110] sm:$0xff] }
  0x40   : > { %469 = vst [vmem:[%s9166_s24 + $0xa0] sm:$0xff] %v6464_v44  ;;  %v6467_v47 = vld [vmem:[%s9161_s8 + $0x118] sm:$0xff]  ;;  %471 = vst [vmem:[%s9166_s24 + $0xa8] sm:$0xff] %v6465_v45 }
  0x41   : > { %473 = vst [vmem:[%s9166_s24 + $0xb0] sm:$0xff] %v6466_v46  ;;  %475 = vst [vmem:[%s9166_s24 + $0xb8] sm:$0xff] %v6467_v47 }
  0x42   : > { %483 = vsyncadd %s395_s25, 3072 }
  0x43 PF: > { %s484_s10 = scalar_lea.sflag [#allocation3], %s11381_s30 }
  0x44   : > { %9005 = dma.done.wait %s484_s10, 3072 }
  0x45   : > { %9006 = vsyncadd %s484_s10, 4294964224  ;;  %v8669_v48 = vld [vmem:[%s11213_s2] sm:$0xff]   ;;  %v8670_v49 = vld [vmem:[%s11213_s2 + $0x8] sm:$0xff]   ;;  %s6469_s17 = smul.u32 192, %s11381_s30  ;;  %vm542_vm0 = vcmask 1041408   ;;  %vm543_vm1 = vcmask 1045508  }
  0x46   : > { %7637 = vmatprep.subr.bf16.mxu1 %v8669_v48  ;;  %v8671_v50 = vld [vmem:[%s11213_s2 + $0x10] sm:$0xff]   ;;  %vm9226_vm2 = vmor %vm542_vm0, %vm543_vm1  ;;  %v11255_v51 = vmov 0  ;;  %v8672_v52 = vld [vmem:[%s11213_s2 + $0x18] sm:$0xff]   ;;  %vm892_vm3 = vcmask 1042432   ;;  %vm893_vm4 = vcmask 1046532   ;;  %vm1457_vm6 = vcmask 1040384  }
  0x47   : > { %7638 = vmatpush3.bf16.msra.mxu1 %v8669_v48  ;;  %v11256_v51 = vsel %vm9226_vm2, 4294967295, %v11255_v51  ;;  %s9233_s30 = scalar_lea.vmem [#allocation2], %s6469_s17  ;;  %v8673_v59 = vld [vmem:[%s11213_s2 + $0x20] sm:$0xff]   ;;  %v8674_v0 = vld [vmem:[%s11213_s2 + $0x28] sm:$0xff]   ;;  %v8675_v5 = vld [vmem:[%s11213_s2 + $0x30] sm:$0xff]   ;;  %vm1458_vm7 = vcmask 1044484  }
  0x48   : > { %7639 = vmatprep.subr.bf16.mxu1 %v8670_v49  ;;  %11257 = vst [vmem:[#allocation8_spill] sm:$0xff] %v11256_v51  ;;  %v8676_v14 = vld [vmem:[%s11213_s2 + $0x38] sm:$0xff]   ;;  %v8677_v25 = vld [vmem:[%s11215_s4 + $0x40] sm:$0xff]   ;;  %v8678_v32 = vld [vmem:[%s11215_s4 + $0x48] sm:$0xff]  }
  0x49   : > { %v6481_v19 = vld [vmem:[%s9233_s30 + $0x5c] sm:$0x3]  ;;  %v6486_v37 = vld [vmem:[%s9233_s30 + $0x70] sm:$0xf]  ;;  %v6485_v41 = vld [vmem:[%s9233_s30 + $0x6c] sm:$0xc] }
  0x4a   : > { %v6470_v53 = vld [vmem:[%s9233_s30 + $0x30] sm:$0xc]  ;;  %v6471_v54 = vld [vmem:[%s9233_s30 + $0x34] sm:$0xf]  ;;  %v6472_v55 = vld [vmem:[%s9233_s30 + $0x38] sm:$0x3] }
  0x4b   : > { %7640 = vmatpush3.bf16.msra.mxu1 %v8670_v49  ;;  %v6494_v56 = vrot.slane %v6470_v53, 10  ;;  %v547_v57 = vrot.slane %v6471_v54, 6  ;;  %v550_v58 = vrot.slane %v6472_v55, 6  ;;  %v6474_v1 = vld [vmem:[%s9233_s30 + $0x40] sm:$0xf]  ;;  %v571_v34 = vrot.slane %v6481_v19, 6  ;;  %vm9448_vm5 = vmor %vm892_vm3, %vm893_vm4 }
  0x4c   : > { %7641 = vmatprep.subr.bf16.mxu1 %v8671_v50  ;;  %v6477_v2 = vld [vmem:[%s9233_s30 + $0x4c] sm:$0xf]  ;;  %v6473_v3 = vld [vmem:[%s9233_s30 + $0x3c] sm:$0xc]  ;;  %v554_v4 = vrot.slane %v6474_v1, 6  ;;  %v582_v45 = vrot.slane %v6486_v37, 6  ;;  %vm9538_vm8 = vmor %vm1457_vm6, %vm1458_vm7 }
  0x4d   : > { %v548_v60 = vsel %vm9226_vm2, %v6494_v56, %v547_v57  ;;  %v549_v61 = vrot.slane %v547_v57, 4  ;;  %v6475_v6 = vld [vmem:[%s9233_s30 + $0x44] sm:$0x3]  ;;  %v6476_v7 = vld [vmem:[%s9233_s30 + $0x48] sm:$0xc]  ;;  %v561_v8 = vrot.slane %v6477_v2, 6 }
  0x4e   : > { %v6478_v9 = vld [vmem:[%s9233_s30 + $0x50] sm:$0x3]  ;;  %v6495_v10 = vrot.slane %v6473_v3, 10  ;;  %v556_v11 = vrot.slane %v554_v4, 4  ;;  %v557_v12 = vrot.slane %v6475_v6, 6  ;;  %v6496_v15 = vrot.slane %v6476_v7, 10 }
  0x4f   : > { %7642 = vmatpush3.bf16.msra.mxu1 %v8671_v50  ;;  %v551_v62 = vsel %vm9226_vm2, %v549_v61, %v550_v58  ;;  %v6480_v13 = vld [vmem:[%s9233_s30 + $0x58] sm:$0xf]  ;;  %v563_v16 = vrot.slane %v561_v8, 4  ;;  %v564_v17 = vrot.slane %v6478_v9, 6  ;;  %v6479_v18 = vld [vmem:[%s9233_s30 + $0x54] sm:$0xc] }
  0x50   : > { %7643 = vmatprep.subr.bf16.mxu1 %v8672_v52  ;;  %v9245_v63 = vcombine.low %v548_v60, %v551_v62  ;;  %v6483_v20 = vld [vmem:[%s9233_s30 + $0x64] sm:$0xf]  ;;  %v568_v21 = vrot.slane %v6480_v13, 6  ;;  %v555_v22 = vsel %vm9226_vm2, %v6495_v10, %v554_v4  ;;  %v558_v23 = vsel %vm9226_vm2, %v556_v11, %v557_v12  ;;  %v6482_v24 = vld [vmem:[%s9233_s30 + $0x60] sm:$0xc]  ;;  %v8679_v47 = vld [vmem:[%s11215_s4 + $0x50] sm:$0xff]  }
  0x51   : > { %v562_v26 = vsel %vm9226_vm2, %v6496_v15, %v561_v8  ;;  %v565_v27 = vsel %vm9226_vm2, %v563_v16, %v564_v17  ;;  %v575_v28 = vrot.slane %v6483_v20, 6  ;;  %v6497_v29 = vrot.slane %v6479_v18, 10  ;;  %v6484_v30 = vld [vmem:[%s9233_s30 + $0x68] sm:$0x3]  ;;  %v6489_v40 = vld [vmem:[%s9233_s30 + $0x7c] sm:$0xf] }
  0x52   : > { %11258 = vst [vmem:[#allocation9_spill] sm:$0xff] %v9245_v63  ;;  %7653 = vmatprep.mubr.bf16.mxu1 %v9245_v63  ;;  %v9280_v31 = vcombine.low %v555_v22, %v558_v23  ;;  %v570_v33 = vrot.slane %v568_v21, 4  ;;  %v6498_v35 = vrot.slane %v6482_v24, 10  ;;  %v9285_v36 = vcombine.low %v562_v26, %v565_v27  ;;  %v6487_v44 = vld [vmem:[%s9233_s30 + $0x74] sm:$0x3]  ;;  %v8681_v6 = vld [vmem:[%s11215_s4 + $0x60] sm:$0xff]  }
  0x53   : > { %7644 = vmatpush3.bf16.msra.mxu1 %v8672_v52  ;;  %v577_v38 = vrot.slane %v575_v28, 4  ;;  %v578_v39 = vrot.slane %v6484_v30, 6  ;;  %v569_v42 = vsel %vm9226_vm2, %v6497_v29, %v568_v21  ;;  %v6488_v46 = vld [vmem:[%s9233_s30 + $0x78] sm:$0xc]  ;;  %v589_v50 = vrot.slane %v6489_v40, 6  ;;  %v8682_v18 = vld [vmem:[%s11215_s4 + $0x68] sm:$0xff]  }
  0x54   : > { %7645 = vmatprep.subr.bf16.mxu1 %v8673_v59  ;;  %11259 = vst [vmem:[#allocation10_spill] sm:$0xff] %v9280_v31  ;;  %11260 = vst [vmem:[#allocation11_spill] sm:$0xff] %v9285_v36  ;;  %v572_v43 = vsel %vm9226_vm2, %v570_v33, %v571_v34  ;;  %v576_v48 = vsel %vm9226_vm2, %v6498_v35, %v575_v28  ;;  %v6490_v52 = vld [vmem:[%s9233_s30 + $0x80] sm:$0x3]  ;;  %v6499_v55 = vrot.slane %v6485_v41, 10  ;;  %v584_v56 = vrot.slane %v582_v45, 4 }
  0x55   : > { %v579_v49 = vsel %vm9226_vm2, %v577_v38, %v578_v39  ;;  %v9306_v53 = vcombine.low %v569_v42, %v572_v43  ;;  %v585_v57 = vrot.slane %v6487_v44, 6  ;;  %v6492_v58 = vld [vmem:[%s9233_s30 + $0x88] sm:$0xf]  ;;  %v6500_v60 = vrot.slane %v6488_v46, 10  ;;  %v9316_v1 = vld [vmem:[%s9233_s30 + $0x1c] sm:$0xf] }
  0x56   : > { %v9308_v54 = vcombine.low %v576_v48, %v579_v49  ;;  %v591_v61 = vrot.slane %v589_v50, 4  ;;  %v592_v62 = vrot.slane %v6490_v52, 6  ;;  %v596_v2 = vrot.slane %v6492_v58, 6  ;;  %v6552_v11 = vld [vmem:[%s9233_s30 + $0x18] sm:$0xc]  ;;  %v8683_v28 = vld [vmem:[%s11215_s4 + $0x70] sm:$0xff]  }
  0x57   : > { %7646 = vmatpush3.bf16.msra.mxu1 %v8673_v59  ;;  %11261 = vst [vmem:[#allocation12_spill] sm:$0xff] %v9306_v53  ;;  %v8680_v59 = vld [vmem:[%s11215_s4 + $0x58] sm:$0xff]   ;;  %v583_v3 = vsel %vm9226_vm2, %v6499_v55, %v582_v45  ;;  %v586_v4 = vsel %vm9226_vm2, %v584_v56, %v585_v57  ;;  %v590_v7 = vsel %vm9226_vm2, %v6500_v60, %v589_v50  ;;  %v1001_v9 = vrot.slane %v9316_v1, 6  ;;  %v6553_v12 = vld [vmem:[%s9233_s30 + $0x20] sm:$0x3] }
  0x58   : > { %7647 = vmatprep.subr.bf16.mxu1 %v8674_v0  ;;  %11262 = vst [vmem:[#allocation13_spill] sm:$0xff] %v9308_v54  ;;  %v593_v8 = vsel %vm9226_vm2, %v591_v61, %v592_v62  ;;  %v9335_v13 = vcombine.low %v583_v3, %v586_v4  ;;  %v9340_v17 = vld [vmem:[%s9233_s30 + $0x28] sm:$0xf]  ;;  %v6568_v19 = vrot.slane %v6552_v11, 10  ;;  %v1004_v21 = vrot.slane %v6553_v12, 6  ;;  %v8684_v37 = vld [vmem:[%s11215_s4 + $0x78] sm:$0xff]  }
  0x59   : > { %v9337_v16 = vcombine.low %v590_v7, %v593_v8  ;;  %v1003_v20 = vrot.slane %v1001_v9, 4  ;;  %v9346_v22 = vld [vmem:[%s9233_s30 + $0x34] sm:$0xf]  ;;  %v6554_v23 = vld [vmem:[%s9233_s30 + $0x24] sm:$0xc]  ;;  %v1008_v24 = vrot.slane %v9340_v17, 6 }
  0x5a   : > { %11263 = vst [vmem:[#allocation14_spill] sm:$0xff] %v9335_v13  ;;  %v6555_v27 = vld [vmem:[%s9233_s30 + $0x2c] sm:$0x3]  ;;  %v1002_v29 = vsel %vm9226_vm2, %v6568_v19, %v1001_v9  ;;  %v1015_v33 = vrot.slane %v9346_v22, 6  ;;  %v6557_v34 = vld [vmem:[%s9233_s30 + $0x38] sm:$0x3] }
  0x5b   : > { %7648 = vmatpush3.bf16.msra.mxu1 %v8674_v0  ;;  %v6491_v0 = vld [vmem:[%s9233_s30 + $0x84] sm:$0xc]  ;;  %11264 = vst [vmem:[#allocation15_spill] sm:$0xff] %v9337_v16  ;;  %v1005_v30 = vsel %vm9226_vm2, %v1003_v20, %v1004_v21  ;;  %v6569_v38 = vrot.slane %v6554_v23, 10  ;;  %v1010_v39 = vrot.slane %v1008_v24, 4  ;;  %v1011_v41 = vrot.slane %v6555_v27, 6 }
  0x5c   : > { %7649 = vmatprep.subr.bf16.mxu1 %v8675_v5  ;;  %v6501_v10 = vrot.slane %v6491_v0, 10  ;;  %v6576_v40 = vcombine.low %v1002_v29, %v1005_v30  ;;  %v1017_v43 = vrot.slane %v1015_v33, 4  ;;  %v1018_v44 = vrot.slane %v6557_v34, 6  ;;  %v9373_v45 = vld [vmem:[%s9233_s30 + $0x40] sm:$0xf]  ;;  %v8686_v62 = vld [vmem:[%s11215_s4 + $0x8] sm:$0xff]  }
  0x5d   : > { %v9376_v46 = vld [vmem:[%s9233_s30 + $0x4c] sm:$0xf]  ;;  %v6559_v48 = vld [vmem:[%s9233_s30 + $0x44] sm:$0x3]  ;;  %v1009_v49 = vsel %vm9226_vm2, %v6569_v38, %v1008_v24  ;;  %v1012_v50 = vsel %vm9226_vm2, %v1010_v39, %v1011_v41  ;;  %v1022_v52 = vrot.slane %v9373_v45, 6  ;;  %v8687_v19 = vld [vmem:[%s11215_s4 + $0x10] sm:$0xff]  }
  0x5e   : > { %v6560_v55 = vld [vmem:[%s9233_s30 + $0x48] sm:$0xc]  ;;  %v8685_v56 = vld [vmem:[%s11215_s4] sm:$0xff]   ;;  %v1019_v58 = vsel %vm9226_vm2, %v1017_v43, %v1018_v44  ;;  %v6561_v60 = vld [vmem:[%s9233_s30 + $0x50] sm:$0x3]  ;;  %v6577_v61 = vcombine.low %v1009_v49, %v1012_v50  ;;  %v897_v49 = vrot.slane %v9316_v1, 5 }
  0x5f   : > { %7650 = vmatpush3.bf16.msra.mxu1 %v8675_v5  ;;  %v6493_v5 = vld [vmem:[%s9233_s30 + $0x8c] sm:$0x3]  ;;  %v1024_v4 = vrot.slane %v1022_v52, 4  ;;  %v1032_v8 = vrot.slane %v6561_v60, 6  ;;  %v9403_v9 = vld [vmem:[%s9233_s30 + $0x64] sm:$0xf] }
  0x60   : > { %7651 = vmatprep.subr.bf16.mxu1 %v8676_v14  ;;  %v599_v15 = vrot.slane %v6493_v5, 6  ;;  %v6572_v5 = vrot.slane %v6560_v55, 10  ;;  %v6563_v11 = vld [vmem:[%s9233_s30 + $0x5c] sm:$0x3]  ;;  %v1043_v23 = vrot.slane %v9403_v9, 6  ;;  %v8689_v43 = vld [vmem:[%s11215_s4 + $0x20] sm:$0xff]  }
  0x61   : > { %v6565_v24 = vld [vmem:[%s9233_s30 + $0x68] sm:$0x3]  ;;  %v8688_v27 = vld [vmem:[%s11215_s4 + $0x18] sm:$0xff]   ;;  %v1039_v30 = vrot.slane %v6563_v11, 6  ;;  %v6567_v41 = vld [vmem:[%s9233_s30 + $0x74] sm:$0x3] }
  0x62   : > { %v1046_v34 = vrot.slane %v6565_v24, 6  ;;  %v6522_v50 = vld [vmem:[%s9233_s30 + $0x20] sm:$0x1]  ;;  %v6525_v11 = vld [vmem:[%s9233_s30 + $0x2c] sm:$0x1]  ;;  %v8692_v24 = vld [vmem:[%s11215_s4 + $0x38] sm:$0xff]  }
  0x63   : > { %7652 = vmatpush3.bf16.msra.mxu1 %v8676_v14  ;;  %v598_v14 = vrot.slane %v596_v2, 4 }
  0x64   : > { %7669 = vmatprep.subr.bf16.mxu1 %v8677_v25 }
  0x65   : > { %v600_v26 = vsel %vm9226_vm2, %v598_v14, %v599_v15 }
  0x66   : > { %7654 = vmatmul.mubr.bf16.vlgmr.msra.gmra.mrb[0].mxu1 %v9280_v31 }
  0x67   : > { %7670 = vmatpush3.bf16.msra.mxu1 %v8677_v25  ;;  %7657 = vmatprep.mubr.bf16.mxu1 %v9285_v36  ;;  %v597_v25 = vsel %vm9226_vm2, %v6501_v10, %v596_v2  ;;  %v1025_v2 = vrot.slane %v6559_v48, 6  ;;  %v6562_v10 = vld [vmem:[%s9233_s30 + $0x54] sm:$0xc]  ;;  %v6520_v48 = vld [vmem:[%s9233_s30 + $0x18] sm:$0xe] }
  0x68   : > { %7671 = vmatprep.subr.bf16.mxu1 %v8678_v32  ;;  %v9367_v35 = vcombine.low %v597_v25, %v600_v26  ;;  %v6573_v26 = vrot.slane %v6562_v10, 10  ;;  %v6544_v60 = vrot.slane %v6520_v48, 9 }
  0x69   : > { %v1026_v14 = vsel %vm9226_vm2, %v1024_v4, %v1025_v2  ;;  %v6523_v4 = vld [vmem:[%s9233_s30 + $0x24] sm:$0xe] }
  0x6a   : > { %11265 = vst [vmem:[#allocation16_spill] sm:$0xff] %v9367_v35 }
  0x6b   : > { %7672 = vmatpush3.bf16.msra.mxu1 %v8678_v32  ;;  %v6556_v32 = vld [vmem:[%s9233_s30 + $0x30] sm:$0xc] }
  0x6c   : > { %7673 = vmatprep.subr.bf16.mxu1 %v8679_v47  ;;  %v6570_v42 = vrot.slane %v6556_v32, 10 }
  0x6e   : > { %7658 = vmatmul.mubr.bf16.gmra.mrb[4].mxu1 %v9306_v53  ;;  %v1016_v57 = vsel %vm9226_vm2, %v6570_v42, %v1015_v33  ;;  %v1045_v33 = vrot.slane %v1043_v23, 4 }
  0x6f   : > { %7674 = vmatpush3.bf16.msra.mxu1 %v8679_v47  ;;  %7661 = vmatprep.mubr.bf16.mxu1 %v9308_v54  ;;  %v6558_v47 = vld [vmem:[%s9233_s30 + $0x3c] sm:$0xc]  ;;  %v6578_v3 = vcombine.low %v1016_v57, %v1019_v58  ;;  %v1053_v58 = vrot.slane %v6567_v41, 6 }
  0x70   : > { %7675 = vmatprep.subr.bf16.mxu1 %v8680_v59  ;;  %v6571_v0 = vrot.slane %v6558_v47, 10  ;;  %v1047_v47 = vsel %vm9226_vm2, %v1045_v33, %v1046_v34 }
  0x72   : > { %v1023_v12 = vsel %vm9226_vm2, %v6571_v0, %v1022_v52 }
  0x73   : > { %7676 = vmatpush3.bf16.msra.mxu1 %v8680_v59  ;;  %v1029_v59 = vrot.slane %v9376_v46, 6  ;;  %v6579_v25 = vcombine.low %v1023_v12, %v1026_v14  ;;  %v911_v12 = vrot.slane %v9346_v22, 5  ;;  %v6526_v14 = vld [vmem:[%s9233_s30 + $0x30] sm:$0xe] }
  0x74   : > { %7677 = vmatprep.subr.bf16.mxu1 %v8681_v6 }
  0x75   : > { %v1031_v7 = vrot.slane %v1029_v59, 4  ;;  %v1030_v20 = vsel %vm9226_vm2, %v6572_v5, %v1029_v59  ;;  %v8690_v59 = vld [vmem:[%s11215_s4 + $0x28] sm:$0xff]   ;;  %v904_v5 = vrot.slane %v9340_v17, 5 }
  0x76   : > { %7662 = vmatmul.mubr.bf16.gmra.mrb[8].mxu1 %v9335_v13 }
  0x77   : > { %7678 = vmatpush3.bf16.msra.mxu1 %v8681_v6  ;;  %7665 = vmatprep.mubr.bf16.mxu1 %v9337_v16  ;;  %v9400_v6 = vld [vmem:[%s9233_s30 + $0x58] sm:$0xf]  ;;  %v1033_v21 = vsel %vm9226_vm2, %v1031_v7, %v1032_v8  ;;  %v8691_v7 = vld [vmem:[%s11215_s4 + $0x30] sm:$0xff]   ;;  %v898_v8 = vsel %vm9448_vm5, %v6544_v60, %v897_v49 }
  0x78   : > { %7679 = vmatprep.subr.bf16.mxu1 %v8682_v18  ;;  %v1036_v15 = vrot.slane %v9400_v6, 6  ;;  %v8695_v60 = vld [vmem:[%s11215_s4 + $0x90] sm:$0xff]  }
  0x7a   : > { %v1038_v29 = vrot.slane %v1036_v15, 4  ;;  %v1037_v38 = vsel %vm9226_vm2, %v6573_v26, %v1036_v15  ;;  %v6528_v15 = vld [vmem:[%s9233_s30 + $0x38] sm:$0x1]  ;;  %v913_v26 = vrot.slane %v911_v12, 4 }
  0x7b   : > { %7680 = vmatpush3.bf16.msra.mxu1 %v8682_v18  ;;  %v6564_v18 = vld [vmem:[%s9233_s30 + $0x60] sm:$0xc] }
  0x7c   : > { %7681 = vmatprep.subr.bf16.mxu1 %v8683_v28  ;;  %v6574_v32 = vrot.slane %v6564_v18, 10  ;;  %v1040_v39 = vsel %vm9226_vm2, %v1038_v29, %v1039_v30  ;;  %v6531_v29 = vld [vmem:[%s9233_s30 + $0x44] sm:$0x1]  ;;  %v918_v30 = vrot.slane %v9373_v45, 5 }
  0x7d   : > { %v6581_v52 = vcombine.low %v1037_v38, %v1040_v39  ;;  %v8693_v38 = vld [vmem:[%s11215_s4 + $0x80] sm:$0xff]   ;;  %v921_v41 = vrot.slane %v6531_v29, 5  ;;  %v1462_v29 = vrot.slane %v9316_v1, 7 }
  0x7e   : > { %7666 = vmatmul.mubr.bf16.gmra.mrb[12].mxu1 %v9367_v35  ;;  %v1044_v44 = vsel %vm9226_vm2, %v6574_v32, %v1043_v23  ;;  %v907_v23 = vrot.slane %v6525_v11, 5  ;;  %v920_v48 = vrot.slane %v918_v30, 4  ;;  %v6540_v11 = vld [vmem:[%s9233_s30 + $0x68] sm:$0x1] }
  0x7f   : > { %7682 = vmatpush3.bf16.msra.mxu1 %v8683_v28  ;;  %7685 = vmatprep.mubr.bf16.mxu1 %v6576_v40  ;;  %v6580_v28 = vcombine.low %v1030_v20, %v1033_v21  ;;  %v6566_v40 = vld [vmem:[%s9233_s30 + $0x6c] sm:$0xc]  ;;  %v6582_v55 = vcombine.low %v1044_v44, %v1047_v47  ;;  %v6545_v20 = vrot.slane %v6523_v4, 9  ;;  %v906_v21 = vrot.slane %v904_v5, 4  ;;  %v6534_v44 = vld [vmem:[%s9233_s30 + $0x50] sm:$0x1] }
  0x80   : > { %7683 = vmatprep.subr.bf16.mxu1 %v8684_v37 }
  0x81   : > { %v905_v32 = vsel %vm9448_vm5, %v6545_v20, %v904_v5  ;;  %v908_v33 = vsel %vm9448_vm5, %v906_v21, %v907_v23  ;;  %v922_v5 = vsel %vm9448_vm5, %v920_v48, %v921_v41  ;;  %v942_v21 = vrot.slane %v6540_v11, 5  ;;  %v6541_v23 = vld [vmem:[%s9233_s30 + $0x6c] sm:$0xe] }
  0x82   : > { %v6593_v47 = vcombine.low %v905_v32, %v908_v33  ;;  %v8727_v48 = vld [vmem:[%s11217_s6 + $0x8] sm:$0xff]  }
  0x83   : > { %7684 = vmatpush3.bf16.msra.mxu1 %v8684_v37  ;;  %v9426_v37 = vld [vmem:[%s9233_s30 + $0x70] sm:$0xf] }
  0x84   : > { %7701 = vmatprep.subr.bf16.mxu1 %v8685_v56  ;;  %v1050_v42 = vrot.slane %v9426_v37, 6 }
  0x86   : > { %7686 = vmatmul.mubr.bf16.vlgmr.msra.gmra.mrb[16].mxu1 %v6577_v61  ;;  %v1052_v57 = vrot.slane %v1050_v42, 4  ;;  %v899_v61 = vrot.slane %v897_v49, 4  ;;  %v932_v49 = vrot.slane %v9400_v6, 5 }
  0x87   : > { %7702 = vmatpush3.bf16.msra.mxu1 %v8685_v56  ;;  %7689 = vmatprep.mubr.bf16.mxu1 %v6578_v3  ;;  %v6575_v56 = vrot.slane %v6566_v40, 10 }
  0x88   : > { %7703 = vmatprep.subr.bf16.mxu1 %v8686_v62  ;;  %v1054_v3 = vsel %vm9226_vm2, %v1052_v57, %v1053_v58 }
  0x89   : > { %v1051_v2 = vsel %vm9226_vm2, %v6575_v56, %v1050_v42  ;;  %v925_v42 = vrot.slane %v9376_v46, 5  ;;  %v8694_v56 = vld [vmem:[%s11215_s4 + $0x88] sm:$0xff]  }
  0x8a   : > { %v6583_v18 = vcombine.low %v1051_v2, %v1054_v3  ;;  %v939_v3 = vrot.slane %v9403_v9, 5 }
  0x8b   : > { %7704 = vmatpush3.bf16.msra.mxu1 %v8686_v62  ;;  %v900_v62 = vrot.slane %v6522_v50, 5  ;;  %v927_v58 = vrot.slane %v925_v42, 4 }
  0x8c   : > { %7705 = vmatprep.subr.bf16.mxu1 %v8687_v19  ;;  %v941_v20 = vrot.slane %v939_v3, 4 }
  0x8d   : > { %v901_v10 = vsel %vm9448_vm5, %v899_v61, %v900_v62  ;;  %v934_v62 = vrot.slane %v932_v49, 4 }
  0x8e   : > { %7690 = vmatmul.mubr.bf16.gmra.mrb[20].mxu1 %v6579_v25  ;;  %v6546_v25 = vrot.slane %v6526_v14, 9  ;;  %v8696_v14 = vld [vmem:[%s11215_s4 + $0x98] sm:$0xff]   ;;  %v943_v33 = vsel %vm9448_vm5, %v941_v20, %v942_v21  ;;  %v6615_v20 = vld [vmem:[%s9233_s30 + $0x44] sm:$0x7] }
  0x8f   : > { %7706 = vmatpush3.bf16.msra.mxu1 %v8687_v19  ;;  %7693 = vmatprep.mubr.bf16.mxu1 %v6580_v28  ;;  %v6592_v19 = vcombine.low %v898_v8, %v901_v10  ;;  %v6529_v28 = vld [vmem:[%s9233_s30 + $0x3c] sm:$0xe] }
  0x90   : > { %7707 = vmatprep.subr.bf16.mxu1 %v8688_v27  ;;  %v6547_v34 = vrot.slane %v6529_v28, 9  ;;  %v912_v39 = vsel %vm9448_vm5, %v6546_v25, %v911_v12  ;;  %v6608_v25 = vld [vmem:[%s9233_s30 + $0x18] sm:$0x8] }
  0x92   : > { %v919_v4 = vsel %vm9448_vm5, %v6547_v34, %v918_v30  ;;  %v8697_v30 = vld [vmem:[%s11215_s4 + $0xa0] sm:$0xff]  }
  0x93   : > { %7708 = vmatpush3.bf16.msra.mxu1 %v8688_v27  ;;  %v914_v27 = vrot.slane %v6528_v15, 5  ;;  %v6595_v12 = vcombine.low %v919_v4, %v922_v5  ;;  %v8725_v34 = vld [vmem:[%s11217_s6] sm:$0xff]  }
  0x94   : > { %7709 = vmatprep.subr.bf16.mxu1 %v8689_v43  ;;  %7989 = vmatprep.subr.bf16.mxu0 %v8725_v34 }
  0x95   : > { %v915_v40 = vsel %vm9448_vm5, %v913_v26, %v914_v27  ;;  %v6609_v26 = vld [vmem:[%s9233_s30 + $0x20] sm:$0x7]  ;;  %7990 = vmatpush3.bf16.msra.mxu0 %v8725_v34  ;;  %v1486_v34 = vrot.slane %v6615_v20, 7 }
  0x96   : > { %7694 = vmatmul.mubr.bf16.gmra.mrb[24].mxu1 %v6581_v52  ;;  %v6594_v50 = vcombine.low %v912_v39, %v915_v40  ;;  %v6535_v52 = vld [vmem:[%s9233_s30 + $0x54] sm:$0xe]  ;;  %v8698_v40 = vld [vmem:[%s11215_s4 + $0xa8] sm:$0xff]   ;;  %7991 = vmatprep.subr.bf16.mxu0 %v8727_v48 }
  0x97   : > { %7710 = vmatpush3.bf16.msra.mxu1 %v8689_v43  ;;  %7697 = vmatprep.mubr.bf16.mxu1 %v6582_v55  ;;  %v6532_v43 = vld [vmem:[%s9233_s30 + $0x48] sm:$0xe]  ;;  %v6537_v55 = vld [vmem:[%s9233_s30 + $0x5c] sm:$0x1]  ;;  %v6549_v61 = vrot.slane %v6535_v52, 9  ;;  %v8729_v52 = vld [vmem:[%s11217_s6 + $0x10] sm:$0xff]  }
  0x98   : > { %7711 = vmatprep.subr.bf16.mxu1 %v8690_v59  ;;  %v6548_v57 = vrot.slane %v6532_v43, 9  ;;  %v935_v2 = vrot.slane %v6537_v55, 5  ;;  %v1465_v43 = vrot.slane %v6609_v26, 7 }
  0x99   : > { %v933_v27 = vsel %vm9448_vm5, %v6549_v61, %v932_v49  ;;  %v11268_v49 = vmov 0  ;;  %7992 = vmatpush3.bf16.msra.mxu0 %v8727_v48 }
  0x9a   : > { %v926_v8 = vsel %vm9448_vm5, %v6548_v57, %v925_v42  ;;  %v936_v28 = vsel %vm9448_vm5, %v934_v62, %v935_v2  ;;  %v6624_v42 = vrot.slane %v6608_v25, 11  ;;  %v11269_v49 = vsel %vm9538_vm8, 4294967295, %v11268_v49  ;;  %v6611_v57 = vld [vmem:[%s9233_s30 + $0x2c] sm:$0x7]  ;;  %7993 = vmatprep.subr.bf16.mxu0 %v8729_v52 }
  0x9b   : > { %7712 = vmatpush3.bf16.msra.mxu1 %v8690_v59  ;;  %v928_v59 = vrot.slane %v6534_v44, 5  ;;  %v6597_v1 = vcombine.low %v933_v27, %v936_v28  ;;  %11270 = vst [vmem:[#allocation17_spill] sm:$0xff] %v11269_v49  ;;  %v1476_v2 = vrot.slane %v9346_v22, 7  ;;  %v8700_v22 = vld [vmem:[%s11215_s4 + $0xb8] sm:$0xff]   ;;  %v1490_v25 = vrot.slane %v9376_v46, 7 }
  0x9c   : > { %7713 = vmatprep.subr.bf16.mxu1 %v8691_v7  ;;  %v1463_v61 = vsel %vm9538_vm8, %v6624_v42, %v1462_v29  ;;  %v6616_v28 = vld [vmem:[%s9233_s30 + $0x48] sm:$0x8]  ;;  %v6619_v42 = vld [vmem:[%s9233_s30 + $0x5c] sm:$0x7] }
  0x9d   : > { %v929_v10 = vsel %vm9448_vm5, %v927_v58, %v928_v59  ;;  %v1469_v58 = vrot.slane %v9340_v17, 7  ;;  %v6612_v59 = vld [vmem:[%s9233_s30 + $0x30] sm:$0x8]  ;;  %v8731_v17 = vld [vmem:[%s11217_s6 + $0x18] sm:$0xff]   ;;  %7994 = vmatpush3.bf16.msra.mxu0 %v8729_v52 }
  0x9e   : > { %7698 = vmatmul.mubr.bf16.gmra.mrb[28].mxu1 %v6583_v18  ;;  %v946_v18 = vrot.slane %v9426_v37, 5  ;;  %v6626_v11 = vrot.slane %v6612_v59, 11  ;;  %7995 = vmatprep.subr.bf16.mxu0 %v8731_v17 }
  0x9f   : > { %7714 = vmatpush3.bf16.msra.mxu1 %v8691_v7  ;;  %7717 = vmatprep.mubr.bf16.mxu1 %v6592_v19  ;;  %v6538_v7 = vld [vmem:[%s9233_s30 + $0x60] sm:$0xe]  ;;  %v6596_v19 = vcombine.low %v926_v8, %v929_v10  ;;  %v1471_v8 = vrot.slane %v1469_v58, 4  ;;  %v1472_v10 = vrot.slane %v6611_v57, 7  ;;  %v6621_v57 = vld [vmem:[%s9233_s30 + $0x68] sm:$0x7] }
  0xa0   : > { %7715 = vmatprep.subr.bf16.mxu1 %v8692_v24  ;;  %v6550_v15 = vrot.slane %v6538_v7, 9  ;;  %v948_v39 = vrot.slane %v946_v18, 4  ;;  %v1477_v26 = vsel %vm9538_vm8, %v6626_v11, %v1476_v2  ;;  %v6623_v11 = vld [vmem:[%s9233_s30 + $0x74] sm:$0x7] }
  0xa1   : > { %7996 = vmatpush3.bf16.msra.mxu0 %v8731_v17  ;;  %v8741_v17 = vld [vmem:[%s11215_s4 + $0x280] sm:$0xff]  }
  0xa2   : > { %v940_v32 = vsel %vm9448_vm5, %v6550_v15, %v939_v3  ;;  %v6613_v3 = vld [vmem:[%s9233_s30 + $0x38] sm:$0x7]  ;;  %v8733_v15 = vld [vmem:[%s11217_s6 + $0x20] sm:$0xff]  }
  0xa3   : > { %7716 = vmatpush3.bf16.msra.mxu1 %v8692_v24  ;;  %v6543_v24 = vld [vmem:[%s9233_s30 + $0x74] sm:$0x1]  ;;  %v6598_v44 = vcombine.low %v940_v32, %v943_v33  ;;  %7997 = vmatprep.subr.bf16.mxu0 %v8733_v15 }
  0xa4   : > { %7733 = vmatprep.subr.bf16.mxu1 %v8693_v38  ;;  %v949_v41 = vrot.slane %v6543_v24, 5  ;;  %v1483_v24 = vrot.slane %v9373_v45, 7 }
  0xa5   : > { %7998 = vmatpush3.bf16.msra.mxu0 %v8733_v15 }
  0xa6   : > { %7718 = vmatmul.mubr.bf16.vlgmr.msra.gmra.mrb[16].mxu1 %v6593_v47  ;;  %v1464_v47 = vrot.slane %v1462_v29, 4  ;;  %v6617_v29 = vld [vmem:[%s9233_s30 + $0x50] sm:$0x7]  ;;  %v1485_v33 = vrot.slane %v1483_v24, 4 }
  0xa7   : > { %7734 = vmatpush3.bf16.msra.mxu1 %v8693_v38  ;;  %7721 = vmatprep.mubr.bf16.mxu1 %v6594_v50  ;;  %v6551_v38 = vrot.slane %v6541_v23, 9  ;;  %v6610_v50 = vld [vmem:[%s9233_s30 + $0x24] sm:$0x8]  ;;  %v1473_v23 = vsel %vm9538_vm8, %v1471_v8, %v1472_v10  ;;  %v1511_v10 = vrot.slane %v9426_v37, 7 }
  0xa8   : > { %7735 = vmatprep.subr.bf16.mxu1 %v8694_v56  ;;  %v1466_v62 = vsel %vm9538_vm8, %v1464_v47, %v1465_v43  ;;  %v6625_v5 = vrot.slane %v6610_v50, 11  ;;  %v1497_v43 = vrot.slane %v9400_v6, 7  ;;  %v1487_v48 = vsel %vm9538_vm8, %v1485_v33, %v1486_v34  ;;  %v8703_v6 = vld [vmem:[%s11215_s4 + $0xd0] sm:$0xff]   ;;  %v9653_v34 = vld [vmem:[%s9233_s30 + $0x40] sm:$0xf] }
  0xa9   : > { %v947_v55 = vsel %vm9448_vm5, %v6551_v38, %v946_v18  ;;  %v6632_v7 = vcombine.low %v1463_v61, %v1466_v62  ;;  %v8701_v18 = vld [vmem:[%s11215_s4 + $0xc0] sm:$0xff]   ;;  %v8702_v38 = vld [vmem:[%s11215_s4 + $0xc8] sm:$0xff]   ;;  %v1504_v50 = vrot.slane %v9403_v9, 7  ;;  %v1500_v61 = vrot.slane %v6619_v42, 7  ;;  %v8704_v62 = vld [vmem:[%s11215_s4 + $0xd8] sm:$0xff]  }
  0xaa   : > { %v1470_v21 = vsel %vm9538_vm8, %v6625_v5, %v1469_v58  ;;  %v8739_v58 = vld [vmem:[%s11217_s6 + $0x38] sm:$0xff]   ;;  %v1507_v5 = vrot.slane %v6621_v57, 7  ;;  %v9665_v42 = vld [vmem:[%s9233_s30 + $0x4c] sm:$0xf] }
  0xab   : > { %7736 = vmatpush3.bf16.msra.mxu1 %v8694_v56  ;;  %v950_v56 = vsel %vm9448_vm5, %v948_v39, %v949_v41  ;;  %v6633_v45 = vcombine.low %v1470_v21, %v1473_v23  ;;  %v6628_v39 = vrot.slane %v6616_v28, 11  ;;  %v6618_v41 = vld [vmem:[%s9233_s30 + $0x54] sm:$0x8]  ;;  %v6649_v21 = vld [vmem:[%s9233_s30 + $0x38] sm:$0x1]  ;;  %v8706_v23 = vld [vmem:[%s11215_s4 + $0xe8] sm:$0xff]  }
  0xac   : > { %7737 = vmatprep.subr.bf16.mxu1 %v8695_v60  ;;  %v6599_v4 = vcombine.low %v947_v55, %v950_v56  ;;  %v6620_v56 = vld [vmem:[%s9233_s30 + $0x60] sm:$0x8]  ;;  %v6629_v59 = vrot.slane %v6618_v41, 11  ;;  %v6652_v41 = vld [vmem:[%s9233_s30 + $0x48] sm:$0xe] }
  0xad   : > { %v1491_v52 = vsel %vm9538_vm8, %v6628_v39, %v1490_v25  ;;  %v8707_v39 = vld [vmem:[%s11215_s4 + $0xf0] sm:$0xff]  }
  0xae   : > { %7722 = vmatmul.mubr.bf16.gmra.mrb[20].mxu1 %v6595_v12  ;;  %v1478_v12 = vrot.slane %v1476_v2, 4 }
  0xaf   : > { %7738 = vmatpush3.bf16.msra.mxu1 %v8695_v60  ;;  %7725 = vmatprep.mubr.bf16.mxu1 %v6596_v19  ;;  %v8699_v60 = vld [vmem:[%s11215_s4 + $0xb0] sm:$0xff]   ;;  %v6614_v19 = vld [vmem:[%s9233_s30 + $0x3c] sm:$0x8] }
  0xb0   : > { %7739 = vmatprep.subr.bf16.mxu1 %v8696_v14  ;;  %v6627_v32 = vrot.slane %v6614_v19, 11  ;;  %v9639_v19 = vld [vmem:[%s9233_s30 + $0x34] sm:$0xf] }
  0xb1   : > { %v1759_v37 = vrot.slane %v9639_v19, 5 }
  0xb2   : > { %v1484_v47 = vsel %vm9538_vm8, %v6627_v32, %v1483_v24 }
  0xb3   : > { %7740 = vmatpush3.bf16.msra.mxu1 %v8696_v14  ;;  %v1479_v14 = vrot.slane %v6613_v3, 7  ;;  %v6635_v9 = vcombine.low %v1484_v47, %v1487_v48  ;;  %v6630_v3 = vrot.slane %v6620_v56, 11  ;;  %v6653_v48 = vld [vmem:[%s9233_s30 + $0x50] sm:$0x1]  ;;  %v6666_v56 = vrot.slane %v6652_v41, 9 }
  0xb4   : > { %7741 = vmatprep.subr.bf16.mxu1 %v8697_v30 }
  0xb5   : > { %v1480_v27 = vsel %vm9538_vm8, %v1478_v12, %v1479_v14  ;;  %v6648_v12 = vld [vmem:[%s9233_s30 + $0x30] sm:$0xe]  ;;  %v8705_v14 = vld [vmem:[%s11215_s4 + $0xe0] sm:$0xff]   ;;  %v1505_v15 = vsel %vm9538_vm8, %v6630_v3, %v1504_v50 }
  0xb6   : > { %7726 = vmatmul.mubr.bf16.gmra.mrb[24].mxu1 %v6597_v1  ;;  %v6634_v46 = vcombine.low %v1477_v26, %v1480_v27  ;;  %v1492_v1 = vrot.slane %v1490_v25, 4  ;;  %v1513_v25 = vrot.slane %v1511_v10, 4  ;;  %v1514_v26 = vrot.slane %v6623_v11, 7  ;;  %v6656_v3 = vld [vmem:[%s9233_s30 + $0x60] sm:$0xe] }
  0xb7   : > { %7742 = vmatpush3.bf16.msra.mxu1 %v8697_v30  ;;  %7729 = vmatprep.mubr.bf16.mxu1 %v6598_v44  ;;  %v8735_v30 = vld [vmem:[%s11217_s6 + $0x28] sm:$0xff]   ;;  %v8737_v44 = vld [vmem:[%s11217_s6 + $0x30] sm:$0xff]   ;;  %v6664_v27 = vrot.slane %v6648_v12, 9 }
  0xb8   : > { %7743 = vmatprep.subr.bf16.mxu1 %v8698_v40  ;;  %7999 = vmatprep.subr.bf16.mxu0 %v8735_v30  ;;  %v1515_v33 = vsel %vm9538_vm8, %v1513_v25, %v1514_v26  ;;  %v6658_v25 = vld [vmem:[%s9233_s30 + $0x6c] sm:$0xe]  ;;  %v9704_v26 = vld [vmem:[%s9233_s30 + $0x70] sm:$0xf] }
  0xb9   : > { %8000 = vmatpush3.bf16.msra.mxu0 %v8735_v30  ;;  %v1762_v30 = vrot.slane %v6649_v21, 5 }
  0xba   : > { %8001 = vmatprep.subr.bf16.mxu0 %v8737_v44 }
  0xbb   : > { %7744 = vmatpush3.bf16.msra.mxu1 %v8698_v40  ;;  %v1493_v40 = vrot.slane %v6617_v29, 7  ;;  %v1761_v29 = vrot.slane %v1759_v37, 4 }
  0xbc   : > { %7745 = vmatprep.subr.bf16.mxu1 %v8699_v60 }
  0xbd   : > { %v1494_v55 = vsel %vm9538_vm8, %v1492_v1, %v1493_v40  ;;  %8002 = vmatpush3.bf16.msra.mxu0 %v8737_v44  ;;  %v1760_v1 = vsel %vm9448_vm5, %v6664_v27, %v1759_v37  ;;  %v1763_v40 = vsel %vm9448_vm5, %v1761_v29, %v1762_v30  ;;  %v6668_v37 = vrot.slane %v6656_v3, 9 }
  0xbe   : > { %7730 = vmatmul.mubr.bf16.gmra.mrb[28].mxu1 %v6599_v4  ;;  %v6636_v2 = vcombine.low %v1491_v52, %v1494_v55  ;;  %v1506_v4 = vrot.slane %v1504_v50, 4  ;;  %8003 = vmatprep.subr.bf16.mxu0 %v8739_v58  ;;  %v6672_v52 = vcombine.low %v1760_v1, %v1763_v40  ;;  %v1794_v27 = vrot.slane %v9704_v26, 5 }
  0xbf   : > { %7746 = vmatpush3.bf16.msra.mxu1 %v8699_v60  ;;  %7749 = vmatprep.mubr.bf16.mxu1 %v6632_v7  ;;  %v1499_v60 = vrot.slane %v1497_v43, 4  ;;  %v1498_v7 = vsel %vm9538_vm8, %v6629_v59, %v1497_v43  ;;  %v1773_v43 = vrot.slane %v9665_v42, 5  ;;  %v6669_v1 = vrot.slane %v6658_v25, 9  ;;  %v9773_v25 = vld [vmem:[%s9233_s30 + $0x3c] sm:$0x8] }
  0xc0   : > { %7747 = vmatprep.subr.bf16.mxu1 %v8700_v22  ;;  %v1796_v41 = vrot.slane %v1794_v27, 4 }
  0xc1   : > { %v1501_v8 = vsel %vm9538_vm8, %v1499_v60, %v1500_v61  ;;  %8004 = vmatpush3.bf16.msra.mxu0 %v8739_v58  ;;  %v1775_v57 = vrot.slane %v1773_v43, 4  ;;  %v1776_v58 = vrot.slane %v6653_v48, 5 }
  0xc2   : > { %v6637_v20 = vcombine.low %v1498_v7, %v1501_v8  ;;  %8021 = vmatprep.subr.bf16.mxu0 %v8741_v17  ;;  %v6657_v7 = vld [vmem:[%s9233_s30 + $0x68] sm:$0x1]  ;;  %v9692_v8 = vld [vmem:[%s9233_s30 + $0x64] sm:$0xf] }
  0xc3   : > { %7748 = vmatpush3.bf16.msra.mxu1 %v8700_v22  ;;  %v6622_v22 = vld [vmem:[%s9233_s30 + $0x6c] sm:$0x8]  ;;  %v1777_v17 = vsel %vm9448_vm5, %v1775_v57, %v1776_v58  ;;  %v1790_v21 = vrot.slane %v6657_v7, 5  ;;  %v8713_v57 = vld [vmem:[%s11215_s4 + $0x120] sm:$0xff]  }
  0xc4   : > { %7765 = vmatprep.subr.bf16.mxu1 %v8701_v18  ;;  %v6631_v24 = vrot.slane %v6622_v22, 11 }
  0xc6   : > { %7750 = vmatmul.mubr.bf16.vlgmr.msra.gmra.mrb[16].mxu1 %v6633_v45  ;;  %v6650_v45 = vld [vmem:[%s9233_s30 + $0x3c] sm:$0xe]  ;;  %v1512_v32 = vsel %vm9538_vm8, %v6631_v24, %v1511_v10  ;;  %v1787_v10 = vrot.slane %v9692_v8, 5 }
  0xc7   : > { %7766 = vmatpush3.bf16.msra.mxu1 %v8701_v18  ;;  %7753 = vmatprep.mubr.bf16.mxu1 %v6634_v46  ;;  %v1508_v18 = vsel %vm9538_vm8, %v1506_v4, %v1507_v5  ;;  %v6651_v46 = vld [vmem:[%s9233_s30 + $0x44] sm:$0x1]  ;;  %v6665_v44 = vrot.slane %v6650_v45, 9  ;;  %v6639_v50 = vcombine.low %v1512_v32, %v1515_v33  ;;  %v1774_v5 = vsel %vm9448_vm5, %v6666_v56, %v1773_v43  ;;  %v6659_v45 = vld [vmem:[%s9233_s30 + $0x74] sm:$0x1] }
  0xc8   : > { %7767 = vmatprep.subr.bf16.mxu1 %v8702_v38  ;;  %v6638_v28 = vcombine.low %v1505_v15, %v1508_v18  ;;  %v1769_v47 = vrot.slane %v6651_v46, 5  ;;  %v8709_v4 = vld [vmem:[%s11215_s4 + $0x100] sm:$0xff]   ;;  %v6674_v11 = vcombine.low %v1774_v5, %v1777_v17  ;;  %v8710_v18 = vld [vmem:[%s11215_s4 + $0x108] sm:$0xff]   ;;  %v1788_v29 = vsel %vm9448_vm5, %v6668_v37, %v1787_v10  ;;  %v9716_v46 = vld [vmem:[%s9233_s30 + $0x7c] sm:$0xf] }
  0xc9   : > { %v1801_v32 = vrot.slane %v9716_v46, 5  ;;  %v6660_v33 = vld [vmem:[%s9233_s30 + $0x78] sm:$0xe]  ;;  %v1797_v43 = vrot.slane %v6659_v45, 5  ;;  %v8714_v17 = vld [vmem:[%s11215_s4 + $0x128] sm:$0xff]   ;;  %v11224_v37 = vrot.slane %v9665_v42, 7 }
  0xcb   : > { %7768 = vmatpush3.bf16.msra.mxu1 %v8702_v38  ;;  %v1766_v38 = vrot.slane %v9653_v34, 5  ;;  %v1803_v48 = vrot.slane %v1801_v32, 4 }
  0xcc   : > { %7769 = vmatprep.subr.bf16.mxu1 %v8703_v6 }
  0xcd   : > { %v1768_v55 = vrot.slane %v1766_v38, 4  ;;  %v1767_v60 = vsel %vm9448_vm5, %v6665_v44, %v1766_v38  ;;  %v6661_v38 = vld [vmem:[%s9233_s30 + $0x80] sm:$0x1]  ;;  %v8712_v44 = vld [vmem:[%s11215_s4 + $0x118] sm:$0xff]  }
  0xce   : > { %7754 = vmatmul.mubr.bf16.gmra.mrb[20].mxu1 %v6635_v9  ;;  %v9673_v9 = vld [vmem:[%s9233_s30 + $0x58] sm:$0xf] }
  0xcf   : > { %7770 = vmatpush3.bf16.msra.mxu1 %v8703_v6  ;;  %7757 = vmatprep.mubr.bf16.mxu1 %v6636_v2  ;;  %v8708_v6 = vld [vmem:[%s11215_s4 + $0xf8] sm:$0xff]   ;;  %v1780_v59 = vrot.slane %v9673_v9, 5  ;;  %v1770_v61 = vsel %vm9448_vm5, %v1768_v55, %v1769_v47  ;;  %v6670_v47 = vrot.slane %v6660_v33, 9  ;;  %v9729_v55 = vld [vmem:[%s9233_s30 + $0x88] sm:$0xf] }
  0xd0   : > { %7771 = vmatprep.subr.bf16.mxu1 %v8704_v62  ;;  %v6655_v2 = vld [vmem:[%s9233_s30 + $0x5c] sm:$0x1]  ;;  %v6673_v22 = vcombine.low %v1767_v60, %v1770_v61  ;;  %v1808_v56 = vrot.slane %v9729_v55, 5  ;;  %v6662_v60 = vld [vmem:[%s9233_s30 + $0x84] sm:$0xe] }
  0xd1   : > { %v1783_v15 = vrot.slane %v6655_v2, 5  ;;  %v1802_v58 = vsel %vm9448_vm5, %v6670_v47, %v1801_v32  ;;  %v6663_v61 = vld [vmem:[%s9233_s30 + $0x8c] sm:$0x1]  ;;  %v6671_v3 = vrot.slane %v6662_v60, 9  ;;  %v8723_v32 = vld [vmem:[%s11215_s4 + $0x170] sm:$0xff]  }
  0xd2   : > { %v1811_v5 = vrot.slane %v6663_v61, 5  ;;  %v9873_v61 = vld [vmem:[%s9233_s30 + $0x58] sm:$0xf]  ;;  %v8722_v47 = vld [vmem:[%s11215_s4 + $0x168] sm:$0xff]  }
  0xd3   : > { %7772 = vmatpush3.bf16.msra.mxu1 %v8704_v62  ;;  %v6654_v62 = vld [vmem:[%s9233_s30 + $0x54] sm:$0xe]  ;;  %v1809_v7 = vsel %vm9448_vm5, %v6671_v3, %v1808_v56  ;;  %v11221_v3 = vrot.slane %v9716_v46, 7 }
  0xd4   : > { %7773 = vmatprep.subr.bf16.mxu1 %v8705_v14  ;;  %v6667_v12 = vrot.slane %v6654_v62, 9 }
  0xd6   : > { %7758 = vmatmul.mubr.bf16.gmra.mrb[24].mxu1 %v6637_v20  ;;  %v1789_v20 = vrot.slane %v1787_v10, 4 }
  0xd7   : > { %7774 = vmatpush3.bf16.msra.mxu1 %v8705_v14  ;;  %7761 = vmatprep.mubr.bf16.mxu1 %v6638_v28  ;;  %v1782_v14 = vrot.slane %v1780_v59, 4  ;;  %v8711_v28 = vld [vmem:[%s11215_s4 + $0x110] sm:$0xff]  }
  0xd8   : > { %7775 = vmatprep.subr.bf16.mxu1 %v8706_v23  ;;  %v1791_v30 = vsel %vm9448_vm5, %v1789_v20, %v1790_v21  ;;  %v11222_v20 = vrot.slane %v9673_v9, 7  ;;  %v8717_v21 = vld [vmem:[%s11215_s4 + $0x140] sm:$0xff]  }
  0xd9   : > { %v1784_v24 = vsel %vm9448_vm5, %v1782_v14, %v1783_v15  ;;  %v6676_v40 = vcombine.low %v1788_v29, %v1791_v30  ;;  %v8716_v14 = vld [vmem:[%s11215_s4 + $0x138] sm:$0xff]   ;;  %v9782_v29 = vld [vmem:[%s9233_s30 + $0x50] sm:$0x7]  ;;  %v9785_v30 = vld [vmem:[%s9233_s30 + $0x54] sm:$0x8] }
  0xdb   : > { %7776 = vmatpush3.bf16.msra.mxu1 %v8706_v23  ;;  %v1781_v23 = vsel %vm9448_vm5, %v6667_v12, %v1780_v59 }
  0xdc   : > { %7777 = vmatprep.subr.bf16.mxu1 %v8707_v39 }
  0xde   : > { %7762 = vmatmul.mubr.bf16.gmra.mrb[28].mxu1 %v6639_v50  ;;  %v1804_v50 = vrot.slane %v6661_v38, 5  ;;  %v9795_v38 = vrot.slane %v11224_v37, 4 }
  0xdf   : > { %7778 = vmatpush3.bf16.msra.mxu1 %v8707_v39  ;;  %7781 = vmatprep.mubr.bf16.mxu1 %v6672_v52  ;;  %v6675_v39 = vcombine.low %v1781_v23, %v1784_v24  ;;  %v1798_v52 = vsel %vm9448_vm5, %v1796_v41, %v1797_v43  ;;  %v9766_v23 = vld [vmem:[%s9233_s30 + $0x30] sm:$0x8]  ;;  %v9770_v24 = vld [vmem:[%s9233_s30 + $0x38] sm:$0x7]  ;;  %v9804_v41 = vrot.slane %v11222_v20, 4  ;;  %v11220_v43 = vrot.slane %v9692_v8, 7 }
  0xe0   : > { %7779 = vmatprep.subr.bf16.mxu1 %v8708_v6  ;;  %v1805_v59 = vsel %vm9448_vm5, %v1803_v48, %v1804_v50  ;;  %v9810_v48 = vld [vmem:[%s9233_s30 + $0x5c] sm:$0x7]  ;;  %v9911_v20 = vld [vmem:[%s9233_s30 + $0x68] sm:$0x1] }
  0xe1   : > { %v6678_v2 = vcombine.low %v1802_v58, %v1805_v59  ;;  %v9825_v58 = vld [vmem:[%s9233_s30 + $0x6c] sm:$0x8]  ;;  %v9831_v60 = vrot.slane %v11220_v43, 4  ;;  %v9880_v59 = vrot.slane %v11221_v3, 4  ;;  %v8721_v43 = vld [vmem:[%s11215_s4 + $0x160] sm:$0xff]  }
  0xe2   : > { %v9905_v3 = vld [vmem:[%s9233_s30 + $0x64] sm:$0xf] }
  0xe3   : > { %7780 = vmatpush3.bf16.msra.mxu1 %v8708_v6  ;;  %v1795_v6 = vsel %vm9448_vm5, %v6669_v1, %v1794_v27  ;;  %v9776_v27 = vld [vmem:[%s9233_s30 + $0x44] sm:$0x7]  ;;  %v9917_v1 = vld [vmem:[%s9233_s30 + $0x7c] sm:$0xf] }
  0xe4   : > { %7797 = vmatprep.subr.bf16.mxu1 %v8709_v4  ;;  %v6677_v62 = vcombine.low %v1795_v6, %v1798_v52  ;;  %v11219_v6 = vrot.slane %v9704_v26, 7  ;;  %v9815_v52 = vld [vmem:[%s9233_s30 + $0x60] sm:$0x8] }
  0xe6   : > { %7782 = vmatmul.mubr.bf16.vlgmr.msra.gmra.mrb[16].mxu1 %v6673_v22  ;;  %v8715_v22 = vld [vmem:[%s11215_s4 + $0x130] sm:$0xff]  }
  0xe7   : > { %7798 = vmatpush3.bf16.msra.mxu1 %v8709_v4  ;;  %7785 = vmatprep.mubr.bf16.mxu1 %v6674_v11  ;;  %v1810_v4 = vrot.slane %v1808_v56, 4  ;;  %v11226_v11 = vrot.slane %v9639_v19, 7  ;;  %v9818_v56 = vld [vmem:[%s9233_s30 + $0x68] sm:$0x7] }
  0xe8   : > { %7799 = vmatprep.subr.bf16.mxu1 %v8710_v18 }
  0xe9   : > { %v1812_v10 = vsel %vm9448_vm5, %v1810_v4, %v1811_v5  ;;  %v9757_v15 = vrot.slane %v11226_v11, 4  ;;  %v9841_v4 = vld [vmem:[%s9233_s30 + $0x74] sm:$0x7]  ;;  %v9867_v5 = vld [vmem:[%s9233_s30 + $0x50] sm:$0x1] }
  0xea   : > { %v6679_v12 = vcombine.low %v1809_v7, %v1812_v10  ;;  %v8720_v7 = vld [vmem:[%s11215_s4 + $0x158] sm:$0xff]   ;;  %v9930_v11 = vld [vmem:[%s9233_s30 + $0x6c] sm:$0xe] }
  0xeb   : > { %7800 = vmatpush3.bf16.msra.mxu1 %v8710_v18  ;;  %v11225_v18 = vrot.slane %v9653_v34, 7  ;;  %v9849_v10 = vld [vmem:[%s9233_s30 + $0x78] sm:$0x8]  ;;  %11272 = vst [vmem:[#allocation19_spill] sm:$0xff] %v9930_v11  ;;  %v11284_v11 = vrot.slane %v9776_v27, 7 }
  0xec   : > { %7801 = vmatprep.subr.bf16.mxu1 %v8711_v28 }
  0xed   : > { %v9791_v33 = vrot.slane %v11225_v18, 4 }
  0xee   : > { %7786 = vmatmul.mubr.bf16.gmra.mrb[20].mxu1 %v6675_v39  ;;  %v8718_v39 = vld [vmem:[%s11215_s4 + $0x148] sm:$0xff]  }
  0xef   : > { %7802 = vmatpush3.bf16.msra.mxu1 %v8711_v28  ;;  %7789 = vmatprep.mubr.bf16.mxu1 %v6676_v40  ;;  %v9779_v28 = vld [vmem:[%s9233_s30 + $0x48] sm:$0x8]  ;;  %v9902_v40 = vld [vmem:[%s9233_s30 + $0x60] sm:$0xe] }
  0xf0   : > { %7803 = vmatprep.subr.bf16.mxu1 %v8712_v44 }
  0xf3   : > { %7804 = vmatpush3.bf16.msra.mxu1 %v8712_v44  ;;  %v9897_v44 = vld [vmem:[%s9233_s30 + $0x5c] sm:$0x1] }
  0xf4   : > { %7805 = vmatprep.subr.bf16.mxu1 %v8713_v57 }
  0xf6   : > { %7790 = vmatmul.mubr.bf16.gmra.mrb[24].mxu1 %v6677_v62  ;;  %v9870_v62 = vld [vmem:[%s9233_s30 + $0x54] sm:$0xe] }
  0xf7   : > { %7806 = vmatpush3.bf16.msra.mxu1 %v8713_v57  ;;  %7793 = vmatprep.mubr.bf16.mxu1 %v6678_v2  ;;  %v8719_v57 = vld [vmem:[%s11215_s4 + $0x150] sm:$0xff]   ;;  %v9837_v2 = vrot.slane %v11219_v6, 4  ;;  %v9864_v6 = vld [vmem:[%s9233_s30 + $0x4c] sm:$0xf] }
  0xf8   : > { %7807 = vmatprep.subr.bf16.mxu1 %v8714_v17 }
  0xfb   : > { %7808 = vmatpush3.bf16.msra.mxu1 %v8714_v17  ;;  %v11223_v17 = vrot.slane %v9729_v55, 7 }
  0xfc   : > { %7809 = vmatprep.subr.bf16.mxu1 %v8715_v22 }
  0xfd   : > { %v9884_v50 = vrot.slane %v11223_v17, 4  ;;  %v9914_v17 = vld [vmem:[%s9233_s30 + $0x70] sm:$0xf] }
  0xfe   : > { %7794 = vmatmul.mubr.bf16.gmra.mrb[28].mxu1 %v6679_v12  ;;  %v9855_v12 = vld [vmem:[%s9233_s30 + $0x84] sm:$0x8]  ;;  %11271 = vst [vmem:[#allocation18_spill] sm:$0xff] %v9914_v17 }
  0xff   : > { %7810 = vmatpush3.bf16.msra.mxu1 %v8715_v22  ;;  %7813 = vmatprep.mubr.bf16.mxu1 %v9245_v63  ;;  %v9852_v22 = vld [vmem:[%s9233_s30 + $0x80] sm:$0x7]  ;;  %v11277_v63 = vrot.slane %v9770_v24, 7 }
 0x100   : > { %7811 = vmatprep.subr.bf16.mxu1 %v8716_v14 }
 0x101   : > { %v2237_v45 = vsel %vm9538_vm8, %v9757_v15, %v11277_v63  ;;  %v8724_v15 = vld [vmem:[%s11215_s4 + $0x178] sm:$0xff]  }
 0x103   : > { %7812 = vmatpush3.bf16.msra.mxu1 %v8716_v14  ;;  %v9858_v14 = vld [vmem:[%s9233_s30 + $0x8c] sm:$0x7] }
 0x104   : > { %7829 = vmatprep.subr.bf16.mxu1 %v8717_v21 }
 0x106   : > { %7814 = vmatmul.mubr.bf16.vlgmr.msra.gmra.mrb[16].mxu1 %v9280_v31 }
 0x107   : > { %7830 = vmatpush3.bf16.msra.mxu1 %v8717_v21  ;;  %7817 = vmatprep.mubr.bf16.mxu1 %v9285_v36  ;;  %v9861_v21 = vld [vmem:[%s9233_s30 + $0x48] sm:$0xe]  ;;  %v9968_v36 = vld [vmem:[%s9233_s30 + $0x8c] sm:$0x1] }
 0x108   : > { %7831 = vmatprep.subr.bf16.mxu1 %v8718_v39 }
 0x10b   : > { %7832 = vmatpush3.bf16.msra.mxu1 %v8718_v39  ;;  %v11230_v39 = vrot.slane %v9873_v61, 5 }
 0x10c   : > { %7833 = vmatprep.subr.bf16.mxu1 %v8719_v57 }
 0x10d   : > { %v9925_v18 = vrot.slane %v11230_v39, 4  ;;  %v9946_v39 = vld [vmem:[%s9233_s30 + $0x80] sm:$0x1] }
 0x10e   : > { %7818 = vmatmul.mubr.bf16.gmra.mrb[20].mxu1 %v9306_v53  ;;  %v9938_v53 = vld [vmem:[%s9233_s30 + $0x78] sm:$0xe] }
 0x10f   : > { %7834 = vmatpush3.bf16.msra.mxu1 %v8719_v57  ;;  %7821 = vmatprep.mubr.bf16.mxu1 %v9308_v54  ;;  %v11228_v57 = vrot.slane %v9864_v6, 5  ;;  %v9934_v54 = vld [vmem:[%s9233_s30 + $0x74] sm:$0x1]  ;;  %11274 = vst [vmem:[#allocation21_spill] sm:$0xff] %v9938_v53  ;;  %v10002_v53 = vld [vmem:[%s9233_s30 + $0x9c] sm:$0xe] }
 0x110   : > { %7835 = vmatprep.subr.bf16.mxu1 %v8720_v7  ;;  %11273 = vst [vmem:[#allocation20_spill] sm:$0xff] %v9934_v54  ;;  %v9993_v54 = vld [vmem:[%s9233_s30 + $0x90] sm:$0xe] }
 0x111   : > { %v9921_v37 = vrot.slane %v11228_v57, 4  ;;  %v11275_v57 = vrot.slane %v9639_v19, 7 }
 0x113   : > { %7836 = vmatpush3.bf16.msra.mxu1 %v8720_v7  ;;  %v9951_v7 = vld [vmem:[%s9233_s30 + $0x84] sm:$0xe] }
 0x114   : > { %7837 = vmatprep.subr.bf16.mxu1 %v8721_v43 }
 0x116   : > { %7822 = vmatmul.mubr.bf16.gmra.mrb[24].mxu1 %v9335_v13  ;;  %v11276_v13 = vrot.slane %v9766_v23, 11  ;;  %v2244_v23 = vsel %vm9538_vm8, %v9791_v33, %v11284_v11  ;;  %v8730_v33 = vld [vmem:[%s11215_s4 + $0x190] sm:$0xff]  }
 0x117   : > { %7838 = vmatpush3.bf16.msra.mxu1 %v8721_v43  ;;  %7825 = vmatprep.mubr.bf16.mxu1 %v9337_v16  ;;  %v9965_v43 = vld [vmem:[%s9233_s30 + $0x88] sm:$0xf]  ;;  %v11278_v16 = vrot.slane %v9905_v3, 5 }
 0x118   : > { %7839 = vmatprep.subr.bf16.mxu1 %v8722_v47  ;;  %v2234_v31 = vsel %vm9538_vm8, %v11276_v13, %v11275_v57  ;;  %v11279_v13 = vrot.slane %v9914_v17, 5  ;;  %v9996_v17 = vld [vmem:[%s9233_s30 + $0x94] sm:$0xf]  ;;  %v9999_v57 = vld [vmem:[%s9233_s30 + $0x98] sm:$0x1] }
 0x119   : > { %v9972_v19 = vrot.slane %v11278_v16, 4  ;;  %v11281_v16 = vrot.slane %v9917_v1, 5 }
 0x11a   : > { %v9977_v24 = vrot.slane %v11279_v13, 4  ;;  %v6720_v13 = vcombine.low %v2234_v31, %v2237_v45  ;;  %v10009_v31 = vld [vmem:[%s9233_s30 + $0xa0] sm:$0xf]  ;;  %v11282_v45 = vrot.slane %v9653_v34, 7 }
 0x11b   : > { %v9986_v51 = vrot.slane %v11281_v16, 4  ;;  %7840 = vmatpush3.bf16.msra.mxu1 %v8722_v47  ;;  %v8726_v47 = vld [vmem:[%s11215_s4 + $0x180] sm:$0xff]   ;;  %v11283_v16 = vrot.slane %v9773_v25, 11  ;;  %v11287_v25 = vrot.slane %v9782_v29, 7  ;;  %v8728_v29 = vld [vmem:[%s11215_s4 + $0x188] sm:$0xff]  }
 0x11c   : > { %11280 = vst [vmem:[#allocation22_spill] sm:$0xff] %v9977_v24  ;;  %7841 = vmatprep.subr.bf16.mxu1 %v8723_v32  ;;  %v11285_v24 = vrot.slane %v9665_v42, 7  ;;  %v11249_v42 = vrot.slane %v9996_v17, 5 }
 0x11d   : > { %v2241_v63 = vsel %vm9538_vm8, %v11283_v16, %v11282_v45  ;;  %v2251_v27 = vsel %vm9538_vm8, %v9795_v38, %v11287_v25  ;;  %v10049_v25 = vld [vmem:[%s9233_s30 + $0x4] sm:$0xf] }
 0x11e   : > { %7826 = vmatmul.mubr.bf16.gmra.mrb[28].mxu1 %v9367_v35  ;;  %v6721_v16 = vcombine.low %v2241_v63, %v2244_v23  ;;  %v11289_v23 = vrot.slane %v9673_v9, 7  ;;  %v11290_v63 = vrot.slane %v9785_v30, 11  ;;  %v11294_v30 = vrot.slane %v9818_v56, 7 }
 0x11f   : > { %7842 = vmatpush3.bf16.msra.mxu1 %v8723_v32  ;;  %7845 = vmatprep.mubr.bf16.mxu1 %v6720_v13  ;;  %v11286_v32 = vrot.slane %v9779_v28, 11  ;;  %v11288_v13 = vrot.slane %v9965_v43, 5  ;;  %v11245_v56 = vrot.slane %v9864_v6, 6 }
 0x120   : > { %7843 = vmatprep.subr.bf16.mxu1 %v8724_v15 }
 0x121   : > { %v2248_v34 = vsel %vm9538_vm8, %v11286_v32, %v11285_v24  ;;  %v10035_v45 = vrot.slane %v11288_v13, 4  ;;  %v11244_v24 = vrot.slane %v10009_v31, 5  ;;  %v10046_v32 = vld [vmem:[%s9233_s30 + $0xa4] sm:$0x1]  ;;  %v10052_v13 = vld [vmem:[%s9233_s30] sm:$0xc] }
 0x122   : > { %v6722_v38 = vcombine.low %v2248_v34, %v2251_v27  ;;  %v11291_v34 = vrot.slane %v9810_v48, 7  ;;  %v2265_v48 = vsel %vm9538_vm8, %v9831_v60, %v11294_v30  ;;  %v8732_v60 = vld [vmem:[%s11215_s4 + $0x198] sm:$0xff]   ;;  %v10101_v30 = vld [vmem:[%s9233_s30 + $0xc] sm:$0xc] }
 0x123   : > { %7844 = vmatpush3.bf16.msra.mxu1 %v8724_v15  ;;  %v2255_v15 = vsel %vm9538_vm8, %v11290_v63, %v11289_v23  ;;  %v11246_v23 = vrot.slane %v10049_v25, 6  ;;  %v11319_v11 = vld [vmem:[#allocation22_spill] sm:$0xff] }
 0x124   : > { %7861 = vmatprep.subr.bf16.mxu1 %v8726_v47  ;;  %v2258_v27 = vsel %vm9538_vm8, %v9804_v41, %v11291_v34  ;;  %v8734_v41 = vld [vmem:[%s11215_s4 + $0x1a0] sm:$0xff]  }
 0x125   : > { %v6723_v63 = vcombine.low %v2255_v15, %v2258_v27  ;;  %v11295_v15 = vrot.slane %v9704_v26, 7 }
 0x126   : > { %7846 = vmatmul.mubr.bf16.vlgmr.msra.gmra.mrb[16].mxu1 %v6721_v16  ;;  %v11292_v16 = vrot.slane %v9692_v8, 7  ;;  %v10086_v8 = vrot.slane %v11244_v24, 4 }
 0x127   : > { %7862 = vmatpush3.bf16.msra.mxu1 %v8726_v47  ;;  %7849 = vmatprep.mubr.bf16.mxu1 %v6722_v38  ;;  %v11293_v47 = vrot.slane %v9815_v52, 11  ;;  %v10081_v38 = vrot.slane %v11249_v42, 4  ;;  %v10207_v52 = vld [vmem:[%s9233_s30 + $0x18] sm:$0xc] }
 0x128   : > { %7863 = vmatprep.subr.bf16.mxu1 %v8728_v29 }
 0x129   : > { %v2262_v9 = vsel %vm9538_vm8, %v11293_v47, %v11292_v16  ;;  %v10095_v16 = vld [vmem:[%s9233_s30 + $0x8] sm:$0x3]  ;;  %v10098_v47 = vld [vmem:[%s9233_s30 + $0x10] sm:$0xf] }
 0x12a   : > { %v6724_v34 = vcombine.low %v2262_v9, %v2265_v48  ;;  %v11297_v9 = vrot.slane %v9841_v4, 7  ;;  %v10130_v4 = vrot.slane %v11246_v23, 4 }
 0x12b   : > { %7864 = vmatpush3.bf16.msra.mxu1 %v8728_v29  ;;  %v11296_v29 = vrot.slane %v9825_v58, 11  ;;  %v11300_v58 = vrot.slane %v9852_v22, 7  ;;  %v8736_v22 = vld [vmem:[%s11215_s4 + $0x1a8] sm:$0xff]  }
 0x12c   : > { %7865 = vmatprep.subr.bf16.mxu1 %v8730_v33  ;;  %v2272_v48 = vsel %vm9538_vm8, %v9837_v2, %v11297_v9  ;;  %v10142_v9 = vld [vmem:[%s9233_s30 + $0x48] sm:$0xc] }
 0x12d   : > { %v2269_v27 = vsel %vm9538_vm8, %v11296_v29, %v11295_v15  ;;  %v10134_v15 = vld [vmem:[%s9233_s30 + $0x14] sm:$0x3] }
 0x12e   : > { %7850 = vmatmul.mubr.bf16.gmra.mrb[20].mxu1 %v6723_v63  ;;  %v11298_v63 = vrot.slane %v9716_v46, 7  ;;  %v6725_v29 = vcombine.low %v2269_v27, %v2272_v48  ;;  %v10158_v48 = vld [vmem:[%s9233_s30 + $0x50] sm:$0x3]  ;;  %v11303_v46 = vrot.slane %v9858_v14, 7  ;;  %v11304_v27 = vrot.slane %v9864_v6, 5 }
 0x12f   : > { %7866 = vmatpush3.bf16.msra.mxu1 %v8730_v33  ;;  %7853 = vmatprep.mubr.bf16.mxu1 %v6724_v34  ;;  %v11299_v33 = vrot.slane %v9849_v10, 11  ;;  %v2279_v34 = vsel %vm9538_vm8, %v9880_v59, %v11300_v58  ;;  %v11243_v10 = vrot.slane %v10098_v47, 6  ;;  %v11302_v58 = vrot.slane %v9855_v12, 11 }
 0x130   : > { %7867 = vmatprep.subr.bf16.mxu1 %v8732_v60 }
 0x131   : > { %v2276_v26 = vsel %vm9538_vm8, %v11299_v33, %v11298_v63  ;;  %v10147_v63 = vld [vmem:[%s11214_s3] ss:$0 sm:$0xff]  ;;  %v10151_v33 = vrot.slane %v11243_v10, 4  ;;  %v11305_v10 = vrot.slane %v9861_v21, 9 }
 0x132   : > { %v6726_v59 = vcombine.low %v2276_v26, %v2279_v34  ;;  %v11301_v26 = vrot.slane %v9729_v55, 7  ;;  %v11306_v55 = vrot.slane %v9867_v5, 5  ;;  %v8740_v5 = vld [vmem:[%s11215_s4 + $0x1b8] sm:$0xff]  }
 0x133   : > { %7868 = vmatpush3.bf16.msra.mxu1 %v8732_v60  ;;  %v8738_v60 = vld [vmem:[%s11215_s4 + $0x1b0] sm:$0xff]  }
 0x134   : > { %7869 = vmatprep.subr.bf16.mxu1 %v8734_v41  ;;  %v2283_v34 = vsel %vm9538_vm8, %v11302_v58, %v11301_v26  ;;  %v2553_v12 = vsel %vm9448_vm5, %v9921_v37, %v11306_v55  ;;  %v10195_v37 = vrot.slane %v11245_v56, 4  ;;  %v11247_v56 = vrot.slane %v9873_v61, 6 }
 0x136   : > { %7854 = vmatmul.mubr.bf16.gmra.mrb[24].mxu1 %v6725_v29  ;;  %v2286_v29 = vsel %vm9538_vm8, %v9884_v50, %v11303_v46  ;;  %v10187_v46 = vld [vmem:[%s9233_s30 + $0x1c] sm:$0xf] }
 0x137   : > { %7870 = vmatpush3.bf16.msra.mxu1 %v8734_v41  ;;  %7857 = vmatprep.mubr.bf16.mxu1 %v6726_v59  ;;  %v2550_v41 = vsel %vm9448_vm5, %v11305_v10, %v11304_v27  ;;  %v10183_v59 = vld [vmem:[%s9233_s30 + $0x54] sm:$0xc]  ;;  %v6727_v58 = vcombine.low %v2283_v34, %v2286_v29  ;;  %v10201_v34 = vld [vmem:[%s9233_s30 + $0x5c] sm:$0x3]  ;;  %v11308_v29 = vrot.slane %v9870_v62, 9 }
 0x138   : > { %7871 = vmatprep.subr.bf16.mxu1 %v8736_v22  ;;  %v6769_v55 = vcombine.low %v2550_v41, %v2553_v12  ;;  %v8742_v12 = vld [vmem:[%s11215_s4 + $0x1c0] sm:$0xff]  }
 0x139   : > { %v7655_v14 = vpop.f32.mrb[0].mxu1 }
 0x13a   : > { %v747_v26 = vadd.f32 %v7655_v14, %v10147_v63  ;;  %v738_v21 = vpop.f32.mrb[1].mxu1 }
 0x13b   : > { %v739_v10 = vadd.f32 %v10147_v63, %v738_v21  ;;  %v7656_v27 = vpop.f32.mrb[2].mxu1  ;;  %7872 = vmatpush3.bf16.msra.mxu1 %v8736_v22  ;;  %v11248_v22 = vrot.slane %v10187_v46, 6 }
 0x13c   : > { %v750_v14 = vadd.f32 %v7656_v27, %v10147_v63  ;;  %v741_v24 = vpop.f32.mrb[3].mxu1  ;;  %7873 = vmatprep.subr.bf16.mxu1 %v8738_v60  ;;  %v803_v21 = vmax.f32 %v747_v26, 0.0  ;;  %v10214_v27 = vld [vmem:[%s9233_s30 + $0x20] sm:$0x3]  ;;  %v11309_v26 = vrot.slane %v9897_v44, 5 }
 0x13d   : > { %v742_v2 = vadd.f32 %v10147_v63, %v741_v24  ;;  %v801_v50 = vmax.f32 %v739_v10, 0.0  ;;  %v11307_v24 = vrot.slane %v9873_v61, 5  ;;  %v11311_v10 = vrot.slane %v9902_v40, 9 }
 0x13e   : > { %v804_v41 = vmax.f32 %v750_v14, 0.0  ;;  %7858 = vmatmul.mubr.bf16.gmra.mrb[28].mxu1 %v6727_v58  ;;  %v2560_v58 = vsel %vm9448_vm5, %v9925_v18, %v11309_v26 }
 0x13f   : > { %v802_v23 = vmax.f32 %v742_v2, 0.0  ;;  %7874 = vmatpush3.bf16.msra.mxu1 %v8738_v60  ;;  %7877 = vmatprep.mubr.bf16.mxu1 %v6769_v55  ;;  %v2557_v28 = vsel %vm9448_vm5, %v11308_v29, %v11307_v24  ;;  %v8743_v2 = vld [vmem:[%s11215_s4 + $0x288] sm:$0xff]   ;;  %v11310_v60 = vrot.slane %v9905_v3, 5  ;;  %v11312_v55 = vrot.slane %v9911_v20, 5 }
 0x140   : > { %v818_v14 = vpack.c.bf16 %v804_v41, %v803_v21  ;;  %7875 = vmatprep.subr.bf16.mxu1 %v8740_v5  ;;  %v10243_v21 = vrot.slane %v11247_v56, 4  ;;  %v8744_v20 = vld [vmem:[%s11215_s4 + $0x1c8] sm:$0xff]  }
 0x141   : > { %v2564_v62 = vsel %vm9448_vm5, %v11311_v10, %v11310_v60  ;;  %v2567_v44 = vsel %vm9448_vm5, %v9972_v19, %v11312_v55  ;;  %v7659_v18 = vpop.f32.mrb[4].mxu1  ;;  %v817_v29 = vpack.c.bf16 %v802_v23, %v801_v50  ;;  %v6770_v60 = vcombine.low %v2557_v28, %v2560_v58  ;;  %v8745_v28 = vld [vmem:[%s11215_s4 + $0x290] sm:$0xff]   ;;  %v10287_v24 = vld [vmem:[%s9233_s30 + $0x2c] sm:$0x3] }
 0x142   : > { %v763_v40 = vadd.f32 %v7659_v18, %v10147_v63  ;;  %v754_v26 = vpop.f32.mrb[5].mxu1  ;;  %v6771_v10 = vcombine.low %v2564_v62, %v2567_v44  ;;  %v10260_v58 = vrot.slane %v11248_v22, 4  ;;  %v8965_v62 = vld [vmem:[%s11215_s4 + $0x280] sm:$0xff]   ;;  %v10267_v44 = vld [vmem:[%s9233_s30 + $0x28] sm:$0xf]  ;;  %v11313_v55 = vld [vmem:[#allocation18_spill] sm:$0xff] }
 0x143   : > { %v755_v23 = vadd.f32 %v10147_v63, %v754_v26  ;;  %v7660_v50 = vpop.f32.mrb[6].mxu1  ;;  %7876 = vmatpush3.bf16.msra.mxu1 %v8740_v5  ;;  %8005 = vmatprep.mubr.bf16.mxu0 %v817_v29  ;;  %v8746_v26 = vld [vmem:[%s11215_s4 + $0x1d0] sm:$0xff]   ;;  %v11314_v19 = vrot.slane %v11313_v55, 5 }
 0x144   : > { %v766_v18 = vadd.f32 %v7660_v50, %v10147_v63  ;;  %v757_v41 = vpop.f32.mrb[7].mxu1  ;;  %8006 = vmatmul.mubr.bf16.vlgmr.msra.gmra.mrb[0].mxu0 %v818_v14  ;;  %7893 = vmatprep.subr.bf16.mxu1 %v8742_v12  ;;  %v807_v14 = vmax.f32 %v763_v40, 0.0  ;;  %v10273_v50 = vld [vmem:[%s9233_s30 + $0x24] sm:$0xc] }
 0x145   : > { %v758_v5 = vadd.f32 %v10147_v63, %v757_v41  ;;  %8022 = vmatpush3.bf16.msra.mxu0 %v8965_v62  ;;  %v805_v56 = vmax.f32 %v755_v23, 0.0  ;;  %v11315_v62 = vld [vmem:[#allocation19_spill] sm:$0xff] }
 0x146   : > { %v808_v29 = vmax.f32 %v766_v18, 0.0  ;;  %7878 = vmatmul.mubr.bf16.vlgmr.msra.gmra.mrb[16].mxu1 %v6770_v60  ;;  %8023 = vmatprep.subr.bf16.mxu0 %v8743_v2  ;;  %v11316_v22 = vrot.slane %v11315_v62, 9  ;;  %v11317_v60 = vld [vmem:[#allocation20_spill] sm:$0xff] }
 0x147   : > { %v806_v41 = vmax.f32 %v758_v5, 0.0  ;;  %7894 = vmatpush3.bf16.msra.mxu1 %v8742_v12  ;;  %7881 = vmatprep.mubr.bf16.mxu1 %v6771_v10  ;;  %v11318_v18 = vrot.slane %v11317_v60, 5  ;;  %v8747_v12 = vld [vmem:[%s11215_s4 + $0x298] sm:$0xff]   ;;  %v11320_v10 = vrot.slane %v9917_v1, 5  ;;  %v11321_v5 = vld [vmem:[#allocation21_spill] sm:$0xff] }
 0x148   : > { %v2571_v40 = vsel %vm9448_vm5, %v11316_v22, %v11314_v19  ;;  %v820_v23 = vpack.c.bf16 %v808_v29, %v807_v14  ;;  %7895 = vmatprep.subr.bf16.mxu1 %v8744_v20  ;;  %v11322_v62 = vrot.slane %v11321_v5, 9  ;;  %v11323_v19 = vrot.slane %v9946_v39, 5  ;;  %v8748_v39 = vld [vmem:[%s11215_s4 + $0x1d8] sm:$0xff]  }
 0x149   : > { %v2574_v42 = vsel %vm9448_vm5, %v11319_v11, %v11318_v18  ;;  %v819_v60 = vpack.c.bf16 %v806_v41, %v805_v56  ;;  %8024 = vmatpush3.bf16.msra.mxu0 %v8743_v2  ;;  %v7663_v14 = vpop.f32.mrb[8].mxu1  ;;  %v11253_v29 = vrot.slane %v10267_v44, 6  ;;  %v10305_v18 = vld [vmem:[%s9233_s30 + $0x60] sm:$0xc] }
 0x14a   : > { %v2578_v22 = vsel %vm9448_vm5, %v11322_v62, %v11320_v10  ;;  %v2581_v11 = vsel %vm9448_vm5, %v9986_v51, %v11323_v19  ;;  %v779_v35 = vadd.f32 %v7663_v14, %v10147_v63  ;;  %v770_v49 = vpop.f32.mrb[9].mxu1  ;;  %8025 = vmatprep.subr.bf16.mxu0 %v8745_v28  ;;  %v6772_v5 = vcombine.low %v2571_v40, %v2574_v42  ;;  %v8749_v40 = vld [vmem:[%s11215_s4 + $0x2a0] sm:$0xff]  }
 0x14b   : > { %v11324_v10 = vrot.slane %v9905_v3, 6  ;;  %v771_v56 = vadd.f32 %v10147_v63, %v770_v49  ;;  %v7664_v2 = vpop.f32.mrb[10].mxu1  ;;  %7896 = vmatpush3.bf16.msra.mxu1 %v8744_v20  ;;  %8009 = vmatprep.mubr.bf16.mxu0 %v819_v60  ;;  %v6773_v41 = vcombine.low %v2578_v22, %v2581_v11  ;;  %v10328_v20 = vrot.slane %v11253_v29, 4  ;;  %v10332_v11 = vld [vmem:[%s9233_s30 + $0x6c] sm:$0xc] }
 0x14c   : > { %v782_v19 = vadd.f32 %v7664_v2, %v10147_v63  ;;  %v773_v42 = vpop.f32.mrb[11].mxu1  ;;  %8010 = vmatmul.mubr.bf16.gmra.mrb[4].mxu0 %v820_v23  ;;  %7897 = vmatprep.subr.bf16.mxu1 %v8746_v26  ;;  %v6803_v22 = vrot.slane %v10305_v18, 10  ;;  %v811_v23 = vmax.f32 %v779_v35, 0.0  ;;  %v8750_v2 = vld [vmem:[%s11215_s4 + $0x1e0] sm:$0xff]   ;;  %v11326_v62 = vrot.slane %v9951_v7, 9 }
 0x14d   : > { %v10313_v51 = vrot.slane %v11324_v10, 4  ;;  %v10323_v10 = vld [vmem:[%s9233_s30 + $0x68] sm:$0x3]  ;;  %v774_v49 = vadd.f32 %v10147_v63, %v773_v42  ;;  %8026 = vmatpush3.bf16.msra.mxu0 %v8745_v28  ;;  %v809_v14 = vmax.f32 %v771_v56, 0.0  ;;  %v11325_v28 = vrot.slane %v9965_v43, 5 }
 0x14e   : > { %v812_v60 = vmax.f32 %v782_v19, 0.0  ;;  %7882 = vmatmul.mubr.bf16.gmra.mrb[20].mxu1 %v6772_v5  ;;  %8027 = vmatprep.subr.bf16.mxu0 %v8747_v12  ;;  %v11327_v35 = vrot.slane %v9968_v36, 5  ;;  %v11328_v56 = vrot.slane %v9996_v17, 5  ;;  %v11351_v18 = vrot.slane %v10267_v44, 6 }
 0x14f   : > { %v810_v42 = vmax.f32 %v774_v49, 0.0  ;;  %7898 = vmatpush3.bf16.msra.mxu1 %v8746_v26  ;;  %7885 = vmatprep.mubr.bf16.mxu1 %v6773_v41  ;;  %v2585_v29 = vsel %vm9448_vm5, %v11326_v62, %v11325_v28  ;;  %v8751_v26 = vld [vmem:[%s11215_s4 + $0x2a8] sm:$0xff]   ;;  %v11329_v41 = vrot.slane %v9993_v54, 9  ;;  %v11330_v62 = vrot.slane %v9999_v57, 5 }
 0x150   : > { %v2588_v5 = vsel %vm9448_vm5, %v10035_v45, %v11327_v35  ;;  %v822_v19 = vpack.c.bf16 %v812_v60, %v811_v23  ;;  %7899 = vmatprep.subr.bf16.mxu1 %v8748_v39  ;;  %v2863_v23 = vrot.slane %v10323_v10, 6  ;;  %v10364_v60 = vld [vmem:[%s9233_s30 + $0x74] sm:$0x3]  ;;  %v8752_v57 = vld [vmem:[%s11215_s4 + $0x1e8] sm:$0xff]  }
 0x151   : > { %v2592_v7 = vsel %vm9448_vm5, %v11329_v41, %v11328_v56  ;;  %v2595_v36 = vsel %vm9448_vm5, %v10081_v38, %v11330_v62  ;;  %v821_v45 = vpack.c.bf16 %v810_v42, %v809_v14  ;;  %8028 = vmatpush3.bf16.msra.mxu0 %v8747_v12  ;;  %v7667_v49 = vpop.f32.mrb[12].mxu1  ;;  %v6774_v54 = vcombine.low %v2585_v29, %v2588_v5  ;;  %v8753_v29 = vld [vmem:[%s11215_s4 + $0x2b0] sm:$0xff]  }
 0x152   : > { %v795_v28 = vadd.f32 %v7667_v49, %v10147_v63  ;;  %v786_v35 = vpop.f32.mrb[13].mxu1  ;;  %8029 = vmatprep.subr.bf16.mxu0 %v8749_v40  ;;  %v6775_v14 = vcombine.low %v2592_v7, %v2595_v36  ;;  %v2867_v42 = vrot.slane %v11313_v55, 6  ;;  %v10379_v49 = vld [vmem:[%s9233_s30 + $0x34] sm:$0xf] }
 0x153   : > { %v787_v38 = vadd.f32 %v10147_v63, %v786_v35  ;;  %v7668_v12 = vpop.f32.mrb[14].mxu1  ;;  %7900 = vmatpush3.bf16.msra.mxu1 %v8748_v39  ;;  %8013 = vmatprep.mubr.bf16.mxu0 %v821_v45  ;;  %v10383_v39 = vld [vmem:[%s9233_s30 + $0x30] sm:$0xc]  ;;  %v11331_v45 = vrot.slane %v10049_v25, 6  ;;  %v11336_v25 = vrot.slane %v10002_v53, 9 }
 0x154   : > { %v798_v41 = vadd.f32 %v7668_v12, %v10147_v63  ;;  %v789_v62 = vpop.f32.mrb[15].mxu1  ;;  %8014 = vmatmul.mubr.bf16.gmra.mrb[8].mxu0 %v822_v19  ;;  %7901 = vmatprep.subr.bf16.mxu1 %v8750_v2  ;;  %v815_v7 = vmax.f32 %v795_v28, 0.0  ;;  %v8754_v19 = vld [vmem:[%s11215_s4 + $0x1f0] sm:$0xff]   ;;  %v11332_v12 = vrot.slane %v10052_v13, 10 }
 0x155   : > { %v790_v35 = vadd.f32 %v10147_v63, %v789_v62  ;;  %8030 = vmatpush3.bf16.msra.mxu0 %v8749_v40  ;;  %v11334_v63 = vrot.slane %v10095_v16, 6  ;;  %v813_v28 = vmax.f32 %v787_v38, 0.0  ;;  %v11337_v62 = vrot.slane %v10046_v32, 5  ;;  %v8762_v55 = vld [vmem:[%s11215_s4 + $0x210] sm:$0xff]  }
 0x156   : > { %v816_v36 = vmax.f32 %v798_v41, 0.0  ;;  %7886 = vmatmul.mubr.bf16.gmra.mrb[24].mxu1 %v6774_v54  ;;  %8031 = vmatprep.subr.bf16.mxu0 %v8751_v26  ;;  %v3835_v56 = vsel %vm9226_vm2, %v11332_v12, %v11331_v45  ;;  %v11335_v41 = vrot.slane %v10009_v31, 5  ;;  %v11339_v31 = vrot.slane %v10142_v9, 10 }
 0x157   : > { %v3838_v40 = vsel %vm9226_vm2, %v10130_v4, %v11334_v63  ;;  %v814_v54 = vmax.f32 %v790_v35, 0.0  ;;  %7902 = vmatpush3.bf16.msra.mxu1 %v8750_v2  ;;  %7889 = vmatprep.mubr.bf16.mxu1 %v6775_v14  ;;  %v2602_v16 = vsel %vm9448_vm5, %v10086_v8, %v11337_v62  ;;  %v8755_v4 = vld [vmem:[%s11215_s4 + $0x2b8] sm:$0xff]   ;;  %v11338_v2 = vrot.slane %v9864_v6, 6 }
 0x158   : > { %v2599_v13 = vsel %vm9448_vm5, %v11336_v25, %v11335_v41  ;;  %v824_v45 = vpack.c.bf16 %v816_v36, %v815_v7  ;;  %7903 = vmatprep.subr.bf16.mxu1 %v8752_v57  ;;  %v11340_v38 = vrot.slane %v10158_v48, 6  ;;  %v6923_v8 = vcombine.low %v3835_v56, %v3838_v40  ;;  %v10425_v14 = vld [vmem:[%s9233_s30 + $0x38] sm:$0x3]  ;;  %v8757_v56 = vld [vmem:[%s11215_s4 + $0x240] sm:$0xff]  }
 0x159   : > { %v2847_v53 = vsel %vm9226_vm2, %v11339_v31, %v11338_v2  ;;  %v823_v32 = vpack.c.bf16 %v814_v54, %v813_v28  ;;  %8032 = vmatpush3.bf16.msra.mxu0 %v8751_v26  ;;  %v3862_v35 = vrot.slane %v10379_v49, 6  ;;  %v2874_v6 = vrot.slane %v9917_v1, 6  ;;  %v8756_v7 = vld [vmem:[%s11215_s4 + $0x1f8] sm:$0xff]  }
 0x15a   : > { %v2850_v0 = vsel %vm9226_vm2, %v10195_v37, %v11340_v38  ;;  %8033 = vmatprep.subr.bf16.mxu0 %v8753_v29  ;;  %v6776_v9 = vcombine.low %v2599_v13, %v2602_v16  ;;  %v2869_v48 = vrot.slane %v2867_v42, 4  ;;  %v6903_v37 = vrot.slane %v10383_v39, 10  ;;  %v6793_v16 = vld [vmem:[%s9233_s30 + $0x78] sm:$0xc]  ;;  %v3803_v38 = vld [vmem:[%s9233_s30 + $0x44] sm:$0x3] }
 0x15b   : > { %7904 = vmatpush3.bf16.msra.mxu1 %v8752_v57  ;;  %8017 = vmatprep.mubr.bf16.mxu0 %v823_v32  ;;  %v6809_v26 = vcombine.low %v2847_v53, %v2850_v0  ;;  %v11341_v36 = vrot.slane %v10098_v47, 6  ;;  %v11342_v12 = vrot.slane %v10101_v30, 10  ;;  %v11343_v57 = vrot.slane %v10134_v15, 6  ;;  %v8758_v47 = vld [vmem:[%s11215_s4 + $0x200] sm:$0xff]   ;;  %v10512_v53 = vld [vmem:[%s9233_s30 + $0x4c] sm:$0xf] }
 0x15c   : > { %8018 = vmatmul.mubr.bf16.gmra.mrb[12].mxu0 %v824_v45  ;;  %7905 = vmatprep.subr.bf16.mxu1 %v8754_v19  ;;  %v3864_v40 = vrot.slane %v3862_v35, 4  ;;  %v11344_v30 = vrot.slane %v10187_v46, 6  ;;  %v11345_v28 = vrot.slane %v10207_v52, 10  ;;  %v11347_v41 = vrot.slane %v9873_v61, 6  ;;  %v8759_v61 = vld [vmem:[%s11215_s4 + $0x248] sm:$0xff]   ;;  %v8763_v1 = vld [vmem:[%s11215_s4 + $0x258] sm:$0xff]  }
 0x15d   : > { %8034 = vmatpush3.bf16.msra.mxu0 %v8753_v29  ;;  %8037 = vmatprep.mubr.bf16.mxu0 %v6923_v8  ;;  %v3842_v39 = vsel %vm9226_vm2, %v11342_v12, %v11341_v36  ;;  %v3845_v63 = vsel %vm9226_vm2, %v10151_v33, %v11343_v57  ;;  %v3865_v29 = vrot.slane %v10425_v14, 6  ;;  %v11346_v33 = vrot.slane %v10214_v27, 6  ;;  %v10478_v27 = vld [vmem:[%s9233_s30 + $0x40] sm:$0xf]  ;;  %v3804_v12 = vld [vmem:[%s9233_s30 + $0x48] sm:$0xc] }
 0x15e   : > { %7890 = vmatmul.mubr.bf16.gmra.mrb[28].mxu1 %v6776_v9  ;;  %8035 = vmatprep.subr.bf16.mxu0 %v8755_v4  ;;  %v3849_v15 = vsel %vm9226_vm2, %v11345_v28, %v11344_v30  ;;  %v11348_v25 = vrot.slane %v10183_v59, 10  ;;  %v11349_v52 = vrot.slane %v10201_v34, 6  ;;  %v11350_v59 = vrot.slane %v9905_v3, 6  ;;  %v6794_v45 = vld [vmem:[%s9233_s30 + $0x80] sm:$0x3]  ;;  %v8760_v3 = vld [vmem:[%s11215_s4 + $0x208] sm:$0xff]  }
 0x15f   : > { %v3852_v54 = vsel %vm9226_vm2, %v10260_v58, %v11346_v33  ;;  %7906 = vmatpush3.bf16.msra.mxu1 %v8754_v19  ;;  %7909 = vmatprep.mubr.bf16.mxu1 %v6809_v26  ;;  %v6924_v58 = vcombine.low %v3842_v39, %v3845_v63  ;;  %v11353_v31 = vrot.slane %v10287_v24, 6  ;;  %v3869_v0 = vrot.slane %v10478_v27, 6  ;;  %v3805_v39 = vld [vmem:[%s9233_s30 + $0x50] sm:$0x3]  ;;  %v6795_v63 = vld [vmem:[%s9233_s30 + $0x84] sm:$0xc] }
 0x160   : > { %v2854_v13 = vsel %vm9226_vm2, %v11348_v25, %v11347_v41  ;;  %v2857_v62 = vsel %vm9226_vm2, %v10243_v21, %v11349_v52  ;;  %7907 = vmatprep.subr.bf16.mxu1 %v8756_v7  ;;  %v2861_v34 = vsel %vm9226_vm2, %v6803_v22, %v11350_v59  ;;  %v2864_v21 = vsel %vm9226_vm2, %v10313_v51, %v2863_v23  ;;  %v6797_v30 = vld [vmem:[%s9233_s30 + $0x90] sm:$0xc]  ;;  %v6798_v28 = vld [vmem:[%s9233_s30 + $0x98] sm:$0x3] }
 0x161   : > { %8036 = vmatpush3.bf16.msra.mxu0 %v8755_v4  ;;  %v6925_v19 = vcombine.low %v3849_v15, %v3852_v54  ;;  %v6810_v2 = vcombine.low %v2854_v13, %v2857_v62  ;;  %v11352_v22 = vrot.slane %v10273_v50, 10  ;;  %v3859_v51 = vsel %vm9226_vm2, %v10328_v20, %v11353_v31  ;;  %v3802_v4 = vld [vmem:[%s9233_s30 + $0x3c] sm:$0xc]  ;;  %v10561_v41 = vld [vmem:[%s9233_s30 + $0x58] sm:$0xf]  ;;  %v8766_v31 = vld [vmem:[%s11215_s4 + $0x220] sm:$0xff]  }
 0x162   : > { %8053 = vmatprep.subr.bf16.mxu0 %v8757_v56  ;;  %v6811_v23 = vcombine.low %v2861_v34, %v2864_v21  ;;  %v6805_v32 = vrot.slane %v6793_v16, 10  ;;  %v2876_v50 = vrot.slane %v2874_v6, 4  ;;  %v2877_v8 = vrot.slane %v6794_v45, 6  ;;  %v8764_v62 = vld [vmem:[%s11215_s4 + $0x218] sm:$0xff]   ;;  %v3806_v34 = vld [vmem:[%s9233_s30 + $0x54] sm:$0xc] }
 0x163   : > { %7908 = vmatpush3.bf16.msra.mxu1 %v8756_v7  ;;  %v3856_v10 = vsel %vm9226_vm2, %v11352_v22, %v11351_v18  ;;  %v11354_v24 = vrot.slane %v10332_v11, 10  ;;  %v11355_v14 = vrot.slane %v10364_v60, 6  ;;  %v8761_v7 = vld [vmem:[%s11215_s4 + $0x250] sm:$0xff]   ;;  %v3863_v11 = vsel %vm9226_vm2, %v6903_v37, %v3862_v35 }
 0x164   : > { %8038 = vmatmul.mubr.bf16.vlgmr.msra.gmra.mrb[16].mxu0 %v6924_v58  ;;  %7925 = vmatprep.subr.bf16.mxu1 %v8758_v47  ;;  %v3866_v60 = vsel %vm9226_vm2, %v3864_v40, %v3865_v29  ;;  %v6926_v26 = vcombine.low %v3856_v10, %v3859_v51  ;;  %v2881_v36 = vrot.slane %v9965_v43, 6  ;;  %v3871_v57 = vrot.slane %v3869_v0, 4  ;;  %v6796_v40 = vld [vmem:[%s9233_s30 + $0x8c] sm:$0x3]  ;;  %v10586_v51 = vld [vmem:[%s9233_s30 + $0xa0] sm:$0xf] }
 0x165   : > { %8054 = vmatpush3.bf16.msra.mxu0 %v8757_v56  ;;  %8041 = vmatprep.mubr.bf16.mxu0 %v6925_v19  ;;  %v2868_v20 = vsel %vm9226_vm2, %v11354_v24, %v2867_v42  ;;  %v2871_v9 = vsel %vm9226_vm2, %v2869_v48, %v11355_v14  ;;  %v6904_v42 = vrot.slane %v3802_v4, 10  ;;  %v3876_v48 = vrot.slane %v10512_v53, 6  ;;  %v8765_v19 = vld [vmem:[%s11215_s4 + $0x260] sm:$0xff]  }
 0x166   : > { %7910 = vmatmul.mubr.bf16.vlgmr.msra.gmra.mrb[16].mxu1 %v6810_v2  ;;  %8055 = vmatprep.subr.bf16.mxu0 %v8759_v61  ;;  %v3872_v56 = vrot.slane %v3803_v38, 6  ;;  %v2875_v35 = vsel %vm9226_vm2, %v6805_v32, %v2874_v6  ;;  %v2878_v37 = vsel %vm9226_vm2, %v2876_v50, %v2877_v8  ;;  %v2888_v29 = vrot.slane %v9996_v17, 6  ;;  %v6799_v32 = vld [vmem:[%s9233_s30 + $0x9c] sm:$0xc]  ;;  %v6800_v50 = vld [vmem:[%s9233_s30 + $0xa4] sm:$0x3] }
 0x167   : > { %7926 = vmatpush3.bf16.msra.mxu1 %v8758_v47  ;;  %7913 = vmatprep.mubr.bf16.mxu1 %v6811_v23  ;;  %v6812_v47 = vcombine.low %v2868_v20, %v2871_v9  ;;  %v6927_v43 = vcombine.low %v3863_v11, %v3866_v60  ;;  %v3870_v6 = vsel %vm9226_vm2, %v6904_v42, %v3869_v0  ;;  %v6905_v15 = vrot.slane %v3804_v12, 10  ;;  %v8967_v8 = vld [vmem:[%s9233_s30 + $0x4c] sm:$0xf] }
 0x168   : > { %7927 = vmatprep.subr.bf16.mxu1 %v8760_v3  ;;  %v3878_v33 = vrot.slane %v3876_v48, 4  ;;  %v3879_v54 = vrot.slane %v3805_v39, 6  ;;  %v6813_v17 = vcombine.low %v2875_v35, %v2878_v37  ;;  %v6806_v25 = vrot.slane %v6795_v63, 10  ;;  %v8767_v60 = vld [vmem:[%s11215_s4 + $0x268] sm:$0xff]   ;;  %v8769_v63 = vld [vmem:[%s11215_s4 + $0x270] sm:$0xff]  }
 0x169   : > { %8056 = vmatpush3.bf16.msra.mxu0 %v8759_v61  ;;  %v2883_v13 = vrot.slane %v2881_v36, 4  ;;  %v2884_v52 = vrot.slane %v6796_v40, 6  ;;  %v3873_v16 = vsel %vm9226_vm2, %v3871_v57, %v3872_v56  ;;  %v6807_v58 = vrot.slane %v6797_v30, 10  ;;  %v3759_v40 = vld [vmem:[%s9233_s30] sm:$0xf] }
 0x16a   : > { %8057 = vmatprep.subr.bf16.mxu0 %v8761_v7  ;;  %v2890_v61 = vrot.slane %v2888_v29, 4  ;;  %v2891_v59 = vrot.slane %v6798_v28, 6  ;;  %v3883_v21 = vrot.slane %v10561_v41, 6  ;;  %v3877_v45 = vsel %vm9226_vm2, %v6905_v15, %v3876_v48 }
 0x16b   : > { %7928 = vmatpush3.bf16.msra.mxu1 %v8760_v3  ;;  %v3880_v2 = vsel %vm9226_vm2, %v3878_v33, %v3879_v54  ;;  %v3807_v3 = vld [vmem:[%s9233_s30 + $0x5c] sm:$0x3]  ;;  %v6928_v18 = vcombine.low %v3870_v6, %v3873_v16  ;;  %v2882_v22 = vsel %vm9226_vm2, %v6806_v25, %v2881_v36  ;;  %v2885_v10 = vsel %vm9226_vm2, %v2883_v13, %v2884_v52  ;;  %v8768_v36 = vld [vmem:[%s11215_s4 + $0x228] sm:$0xff]   ;;  %v6827_v54 = vld [vmem:[%s9233_s30 + $0x54] sm:$0x8] }
 0x16c   : > { %8042 = vmatmul.mubr.bf16.gmra.mrb[20].mxu0 %v6926_v26  ;;  %7929 = vmatprep.subr.bf16.mxu1 %v8762_v55  ;;  %v2895_v23 = vrot.slane %v10586_v51, 6  ;;  %v6906_v4 = vrot.slane %v3806_v34, 10  ;;  %v2889_v38 = vsel %vm9226_vm2, %v6807_v58, %v2888_v29  ;;  %v2892_v0 = vsel %vm9226_vm2, %v2890_v61, %v2891_v59  ;;  %v8969_v25 = vld [vmem:[%s9233_s30 + $0x64] sm:$0xf]  ;;  %v6829_v16 = vld [vmem:[%s9233_s30 + $0x60] sm:$0x8] }
 0x16d   : > { %8058 = vmatpush3.bf16.msra.mxu0 %v8761_v7  ;;  %8045 = vmatprep.mubr.bf16.mxu0 %v6927_v43  ;;  %v3143_v24 = vrot.slane %v8967_v8, 7  ;;  %v6929_v20 = vcombine.low %v3877_v45, %v3880_v2  ;;  %v3885_v14 = vrot.slane %v3883_v21, 4  ;;  %v3886_v9 = vrot.slane %v3807_v3, 6  ;;  %v6825_v7 = vld [vmem:[%s9233_s30 + $0x48] sm:$0x8]  ;;  %v8771_v59 = vld [vmem:[%s11215_s4 + $0x278] sm:$0xff]  }
 0x16e   : > { %7914 = vmatmul.mubr.bf16.gmra.mrb[20].mxu1 %v6812_v47  ;;  %8059 = vmatprep.subr.bf16.mxu0 %v8763_v1  ;;  %v6814_v11 = vcombine.low %v2882_v22, %v2885_v10  ;;  %v6815_v42 = vcombine.low %v2889_v38, %v2892_v0  ;;  %v6808_v48 = vrot.slane %v6799_v32, 10  ;;  %v2897_v26 = vrot.slane %v2895_v23, 4  ;;  %v8968_v43 = vld [vmem:[%s9233_s30 + $0x58] sm:$0xf]  ;;  %v10628_v52 = vld [vmem:[%s9233_s30 + $0x4] sm:$0xf] }
 0x16f   : > { %7930 = vmatpush3.bf16.msra.mxu1 %v8762_v55  ;;  %7917 = vmatprep.mubr.bf16.mxu1 %v6813_v17  ;;  %v6826_v55 = vld [vmem:[%s9233_s30 + $0x50] sm:$0x7]  ;;  %v2898_v56 = vrot.slane %v6800_v50, 6  ;;  %v6841_v12 = vrot.slane %v6825_v7, 11  ;;  %v3145_v39 = vrot.slane %v3143_v24, 4  ;;  %v3884_v35 = vsel %vm9226_vm2, %v6906_v4, %v3883_v21  ;;  %v8772_v2 = vld [vmem:[%s11215_s4 + $0x238] sm:$0xff]  }
 0x170   : > { %7931 = vmatprep.subr.bf16.mxu1 %v8764_v62  ;;  %v3146_v57 = vrot.slane %v6826_v55, 7  ;;  %v3887_v37 = vsel %vm9226_vm2, %v3885_v14, %v3886_v9  ;;  %v2896_v29 = vsel %vm9226_vm2, %v6808_v48, %v2895_v23  ;;  %v3150_v30 = vrot.slane %v8968_v43, 7  ;;  %v6828_v17 = vld [vmem:[%s9233_s30 + $0x5c] sm:$0x7]  ;;  %v6830_v58 = vld [vmem:[%s9233_s30 + $0x68] sm:$0x7] }
 0x171   : > { %8060 = vmatpush3.bf16.msra.mxu0 %v8763_v1  ;;  %v2899_v47 = vsel %vm9226_vm2, %v2897_v26, %v2898_v56  ;;  %v6930_v28 = vcombine.low %v3884_v35, %v3887_v37  ;;  %v8770_v1 = vld [vmem:[%s11215_s4 + $0x230] sm:$0xff]   ;;  %v3144_v15 = vsel %vm9538_vm8, %v6841_v12, %v3143_v24  ;;  %v3157_v13 = vrot.slane %v8969_v25, 7  ;;  %v3761_v10 = vld [vmem:[%s9233_s30 + $0xc] sm:$0xf]  ;;  %v3763_v23 = vld [vmem:[%s9233_s30 + $0x18] sm:$0xf] }
 0x172   : > { %8061 = vmatprep.subr.bf16.mxu0 %v8765_v19  ;;  %v3147_v33 = vsel %vm9538_vm8, %v3145_v39, %v3146_v57  ;;  %v6816_v61 = vcombine.low %v2896_v29, %v2899_v47  ;;  %v6842_v21 = vrot.slane %v6827_v54, 11  ;;  %v3153_v45 = vrot.slane %v6828_v17, 7  ;;  %v8971_v0 = vld [vmem:[%s9233_s30 + $0x70] sm:$0xf]  ;;  %v6831_v14 = vld [vmem:[%s9233_s30 + $0x6c] sm:$0x8] }
 0x173   : > { %7932 = vmatpush3.bf16.msra.mxu1 %v8764_v62  ;;  %v6939_v62 = vcombine.low %v3759_v40, %v10628_v52  ;;  %v6849_v34 = vcombine.low %v3144_v15, %v3147_v33  ;;  %v6843_v3 = vrot.slane %v6829_v16, 11  ;;  %v3160_v22 = vrot.slane %v6830_v58, 7  ;;  %v10650_v50 = vld [vmem:[%s9233_s30 + $0x10] sm:$0xf]  ;;  %v6832_v9 = vld [vmem:[%s9233_s30 + $0x74] sm:$0x7] }
 0x174   : > { %8046 = vmatmul.mubr.bf16.gmra.mrb[24].mxu0 %v6928_v18  ;;  %7933 = vmatprep.subr.bf16.mxu1 %v8766_v31  ;;  %v3159_v18 = vrot.slane %v3157_v13, 4  ;;  %v3151_v4 = vsel %vm9538_vm8, %v6842_v21, %v3150_v30  ;;  %v3164_v32 = vrot.slane %v8971_v0, 7  ;;  %v6940_v8 = vcombine.low %v3761_v10, %v10650_v50  ;;  %v8973_v7 = vld [vmem:[%s9233_s30 + $0x7c] sm:$0xf]  ;;  %v8776_v26 = vld [vmem:[%s11215_s4 + $0x2c8] sm:$0xff]   ;;  %v8790_v6 = vld [vmem:[%s11215_s4 + $0x300] sm:$0xff]  }
 0x175   : > { %8062 = vmatpush3.bf16.msra.mxu0 %v8765_v19  ;;  %8049 = vmatprep.mubr.bf16.mxu0 %v6929_v20  ;;  %v3152_v19 = vrot.slane %v3150_v30, 4  ;;  %v3158_v24 = vsel %vm9538_vm8, %v6843_v3, %v3157_v13  ;;  %v3171_v55 = vrot.slane %v8973_v7, 7  ;;  %v3167_v39 = vrot.slane %v6832_v9, 7  ;;  %v3765_v37 = vld [vmem:[%s9233_s30 + $0x24] sm:$0xf] }
 0x176   : > { %7918 = vmatmul.mubr.bf16.gmra.mrb[24].mxu1 %v6814_v11  ;;  %8063 = vmatprep.subr.bf16.mxu0 %v8767_v60  ;;  %v3161_v20 = vsel %vm9538_vm8, %v3159_v18, %v3160_v22  ;;  %v6941_v11 = vcombine.low %v3763_v23, %v10187_v46  ;;  %v3166_v12 = vrot.slane %v3164_v32, 4  ;;  %v3767_v40 = vld [vmem:[%s9233_s30 + $0x30] sm:$0xf]  ;;  %v8974_v43 = vld [vmem:[%s9233_s30 + $0x88] sm:$0xf]  ;;  %v8782_v22 = vld [vmem:[%s11215_s4 + $0x2e0] sm:$0xff]  }
 0x177   : > { %7934 = vmatpush3.bf16.msra.mxu1 %v8766_v31  ;;  %7921 = vmatprep.mubr.bf16.mxu1 %v6815_v42  ;;  %v8774_v31 = vld [vmem:[%s11215_s4 + $0x2c0] sm:$0xff]   ;;  %v3154_v38 = vsel %vm9538_vm8, %v3152_v19, %v3153_v45  ;;  %v6851_v56 = vcombine.low %v3158_v24, %v3161_v20  ;;  %v3173_v35 = vrot.slane %v3171_v55, 4  ;;  %v3178_v30 = vrot.slane %v8974_v43, 7  ;;  %v6836_v54 = vld [vmem:[%s9233_s30 + $0x8c] sm:$0x7] }
 0x178   : > { %7935 = vmatprep.subr.bf16.mxu1 %v8768_v36  ;;  %v6834_v42 = vld [vmem:[%s9233_s30 + $0x80] sm:$0x7]  ;;  %v6850_v48 = vcombine.low %v3151_v4, %v3154_v38  ;;  %v3168_v47 = vsel %vm9538_vm8, %v3166_v12, %v3167_v39  ;;  %v6835_v33 = vld [vmem:[%s9233_s30 + $0x84] sm:$0x8]  ;;  %v8975_v17 = vld [vmem:[%s9233_s30 + $0x94] sm:$0xf]  ;;  %v6943_v13 = vcombine.low %v3767_v40, %v10379_v49 }
 0x179   : > { %8064 = vmatpush3.bf16.msra.mxu0 %v8767_v60  ;;  %v6833_v60 = vld [vmem:[%s9233_s30 + $0x78] sm:$0x8]  ;;  %v3174_v46 = vrot.slane %v6834_v42, 7  ;;  %v3185_v25 = vrot.slane %v8975_v17, 7  ;;  %v6838_v16 = vld [vmem:[%s9233_s30 + $0x98] sm:$0x7] }
 0x17a   : > { %8065 = vmatprep.subr.bf16.mxu0 %v8769_v63  ;;  %v6845_v57 = vrot.slane %v6833_v60, 11  ;;  %v3180_v21 = vrot.slane %v3178_v30, 4  ;;  %v3181_v19 = vrot.slane %v6836_v54, 7  ;;  %v3188_v3 = vrot.slane %v6838_v16, 7  ;;  %v3769_v18 = vld [vmem:[%s9233_s30 + $0x3c] sm:$0xf] }
 0x17b   : > { %7936 = vmatpush3.bf16.msra.mxu1 %v8768_v36  ;;  %v6844_v36 = vrot.slane %v6831_v14, 11  ;;  %v3175_v15 = vsel %vm9538_vm8, %v3173_v35, %v3174_v46  ;;  %v3771_v10 = vld [vmem:[%s9233_s30 + $0x48] sm:$0xf]  ;;  %v3192_v4 = vrot.slane %v10586_v51, 7  ;;  %v6944_v38 = vcombine.low %v3769_v18, %v10478_v27  ;;  %v6840_v24 = vld [vmem:[%s9233_s30 + $0xa4] sm:$0x7] }
 0x17c   : > { %8050 = vmatmul.mubr.bf16.gmra.mrb[28].mxu0 %v6930_v28  ;;  %7937 = vmatprep.subr.bf16.mxu1 %v8770_v1  ;;  %v6942_v28 = vcombine.low %v3765_v37, %v10267_v44  ;;  %v3182_v23 = vsel %vm9538_vm8, %v3180_v21, %v3181_v19  ;;  %v6945_v20 = vcombine.low %v3771_v10, %v10512_v53  ;;  %v8784_v51 = vld [vmem:[%s11215_s4 + $0x2e8] sm:$0xff]   ;;  %v3773_v60 = vld [vmem:[%s9233_s30 + $0x54] sm:$0xf]  ;;  %v4268_v46 = vld [vmem:[%s9233_s30 + $0x20] sm:$0xf] }
 0x17d   : > { %8066 = vmatpush3.bf16.msra.mxu0 %v8769_v63  ;;  %8069 = vmatprep.mubr.bf16.mxu0 %v6939_v62  ;;  %v8778_v63 = vld [vmem:[%s11215_s4 + $0x2d0] sm:$0xff]   ;;  %v3165_v29 = vsel %vm9538_vm8, %v6844_v36, %v3164_v32  ;;  %v6946_v36 = vcombine.low %v3773_v60, %v10561_v41  ;;  %v8976_v37 = vld [vmem:[%s9233_s30 + $0x1c] sm:$0xf]  ;;  %v8792_v40 = vld [vmem:[%s11215_s4 + $0x308] sm:$0xff]  }
 0x17e   : > { %7922 = vmatmul.mubr.bf16.gmra.mrb[28].mxu1 %v6816_v61  ;;  %8067 = vmatprep.subr.bf16.mxu0 %v8771_v59  ;;  %v6837_v62 = vld [vmem:[%s9233_s30 + $0x90] sm:$0x8]  ;;  %v6852_v58 = vcombine.low %v3165_v29, %v3168_v47  ;;  %v8780_v61 = vld [vmem:[%s11215_s4 + $0x2d8] sm:$0xff]   ;;  %v4267_v35 = vld [vmem:[%s9233_s30 + $0x14] sm:$0xf] }
 0x17f   : > { %7938 = vmatpush3.bf16.msra.mxu1 %v8770_v1  ;;  %7941 = vmatprep.mubr.bf16.mxu1 %v6849_v34  ;;  %v3172_v1 = vsel %vm9538_vm8, %v6845_v57, %v3171_v55  ;;  %v6846_v34 = vrot.slane %v6835_v33, 11  ;;  %v6847_v45 = vrot.slane %v6837_v62, 11  ;;  %v3194_v55 = vrot.slane %v3192_v4, 4  ;;  %v8786_v42 = vld [vmem:[%s11215_s4 + $0x2f0] sm:$0xff]   ;;  %v8788_v57 = vld [vmem:[%s11215_s4 + $0x2f8] sm:$0xff]   ;;  %v8800_v54 = vld [vmem:[%s11215_s4 + $0x328] sm:$0xff]  }
 0x180   : > { %7939 = vmatprep.subr.bf16.mxu1 %v8772_v2  ;;  %v4269_v29 = vld [vmem:[%s9233_s30 + $0x2c] sm:$0xf]  ;;  %v8794_v47 = vld [vmem:[%s11215_s4 + $0x310] sm:$0xff]   ;;  %v4273_v17 = vld [vmem:[%s9233_s30 + $0x5c] sm:$0xf] }
 0x181   : > { %8068 = vmatpush3.bf16.msra.mxu0 %v8771_v59  ;;  %v6853_v59 = vcombine.low %v3172_v1, %v3175_v15  ;;  %v3186_v0 = vsel %vm9538_vm8, %v6847_v45, %v3185_v25  ;;  %v6974_v43 = vcombine.low %v10267_v44, %v4269_v29  ;;  %v4271_v1 = vld [vmem:[%s9233_s30 + $0x44] sm:$0xf]  ;;  %v4272_v44 = vld [vmem:[%s9233_s30 + $0x50] sm:$0xf]  ;;  %v8807_v16 = vld [vmem:[%s9233_s30 + $0x3c] sm:$0xff]  }
 0x182   : > { %8085 = vmatprep.subr.bf16.mxu0 %v8774_v31  ;;  %v8798_v15 = vld [vmem:[%s11215_s4 + $0x320] sm:$0xff]   ;;  %v6976_v33 = vcombine.low %v10478_v27, %v4271_v1  ;;  %v6978_v27 = vcombine.low %v10561_v41, %v4273_v17  ;;  %v8809_v41 = vld [vmem:[%s9233_s30 + $0x48] sm:$0xff]   ;;  %v8811_v21 = vld [vmem:[%s9233_s30 + $0x54] sm:$0xff]  }
 0x183   : > { %7940 = vmatpush3.bf16.msra.mxu1 %v8772_v2  ;;  %v3187_v2 = vrot.slane %v3185_v25, 4  ;;  %v8802_v25 = vld [vmem:[%s11215_s4 + $0x330] sm:$0xff]   ;;  %v8806_v62 = vld [vmem:[%s11215_s4 + $0x340] sm:$0xff]   ;;  %v8812_v45 = vld [vmem:[%s11215_s4 + $0x358] sm:$0xff]  }
 0x184   : > { %8070 = vmatmul.mubr.bf16.vlgmr.msra.gmra.mrb[16].mxu0 %v6940_v8  ;;  %v6839_v8 = vld [vmem:[%s9233_s30 + $0x9c] sm:$0x8]  ;;  %v8813_v19 = vld [vmem:[%s9233_s30 + $0x60] sm:$0xff]   ;;  %v7063_v1 = vld [vmem:[%s9233_s30 + $0x68] sm:$0xf] }
 0x185   : > { %8086 = vmatpush3.bf16.msra.mxu0 %v8774_v31  ;;  %8073 = vmatprep.mubr.bf16.mxu0 %v6941_v11  ;;  %v3179_v31 = vsel %vm9538_vm8, %v6846_v34, %v3178_v30  ;;  %v3189_v32 = vsel %vm9538_vm8, %v3187_v2, %v3188_v3  ;;  %v6848_v7 = vrot.slane %v6839_v8, 11  ;;  %v3195_v11 = vrot.slane %v6840_v24, 7  ;;  %v8864_v34 = vld [vmem:[%s11217_s6 + $0x48] sm:$0xff]   ;;  %v8866_v2 = vld [vmem:[%s11217_s6 + $0x50] sm:$0xff]   ;;  %v8814_v3 = vld [vmem:[%s11215_s4 + $0x360] sm:$0xff]  }
 0x186   : > { %7942 = vmatmul.mubr.bf16.vlgmr.msra.gmra.mrb[16].mxu1 %v6850_v48  ;;  %8087 = vmatprep.subr.bf16.mxu0 %v8776_v26  ;;  %v6854_v14 = vcombine.low %v3179_v31, %v3182_v23  ;;  %v6855_v9 = vcombine.low %v3186_v0, %v3189_v32  ;;  %v4266_v48 = vld [vmem:[%s9233_s30 + $0x8] sm:$0xf]  ;;  %v8868_v18 = vld [vmem:[%s11217_s6 + $0x58] sm:$0xff]   ;;  %v8870_v23 = vld [vmem:[%s11217_s6 + $0x60] sm:$0xff]  }
 0x187   : > { %7945 = vmatprep.mubr.bf16.mxu1 %v6851_v56  ;;  %v3196_v56 = vsel %vm9538_vm8, %v3194_v55, %v3195_v11  ;;  %v6971_v12 = vcombine.low %v10628_v52, %v4266_v48  ;;  %v6972_v52 = vcombine.low %v10650_v50, %v4267_v35  ;;  %v4270_v50 = vld [vmem:[%s9233_s30 + $0x38] sm:$0xf]  ;;  %v8816_v31 = vld [vmem:[%s11215_s4 + $0x368] sm:$0xff]   ;;  %v8874_v8 = vld [vmem:[%s11217_s6 + $0x70] sm:$0xff]  }
 0x188   : > { %v6975_v30 = vcombine.low %v10379_v49, %v4270_v50  ;;  %v6977_v49 = vcombine.low %v10512_v53, %v4272_v44  ;;  %v8805_v53 = vld [vmem:[%s9233_s30 + $0x30] sm:$0xff]   ;;  %v8817_v10 = vld [vmem:[%s9233_s30 + $0x78] sm:$0xff]   ;;  %v8819_v0 = vld [vmem:[%s9233_s30 + $0x84] sm:$0xff]  }
 0x189   : > { %8088 = vmatpush3.bf16.msra.mxu0 %v8776_v26  ;;  %v3193_v26 = vsel %vm9538_vm8, %v6848_v7, %v3192_v4  ;;  %v8818_v4 = vld [vmem:[%s11215_s4 + $0x370] sm:$0xff]   ;;  %v8820_v32 = vld [vmem:[%s11215_s4 + $0x378] sm:$0xff]   ;;  %v11357_v24 = vld [vmem:[#allocation9_spill] sm:$0xff] }
 0x18a   : > { %8089 = vmatprep.subr.bf16.mxu0 %v8778_v63  ;;  %v6856_v39 = vcombine.low %v3193_v26, %v3196_v56  ;;  %v11359_v7 = vld [vmem:[#allocation11_spill] sm:$0xff]  ;;  %v8823_v55 = vld [vmem:[%s11215_s4 + $0x390] sm:$0xff]   ;;  %v11360_v60 = vld [vmem:[#allocation12_spill] sm:$0xff] }
 0x18b   : > { %v8824_v11 = vld [vmem:[%s11215_s4 + $0x398] sm:$0xff]   ;;  %v8825_v48 = vld [vmem:[%s11215_s4 + $0x3a0] sm:$0xff]   ;;  %v8826_v26 = vld [vmem:[%s11215_s4 + $0x3a8] sm:$0xff]  }
 0x18c   : > { %8074 = vmatmul.mubr.bf16.gmra.mrb[20].mxu0 %v6942_v28  ;;  %v8796_v28 = vld [vmem:[%s11215_s4 + $0x318] sm:$0xff]   ;;  %v11362_v56 = vld [vmem:[#allocation14_spill] sm:$0xff] }
 0x18d   : > { %8090 = vmatpush3.bf16.msra.mxu0 %v8778_v63  ;;  %8077 = vmatprep.mubr.bf16.mxu0 %v6943_v13  ;;  %v6973_v63 = vcombine.low %v8976_v37, %v4268_v46  ;;  %v8804_v13 = vld [vmem:[%s11215_s4 + $0x338] sm:$0xff]   ;;  %v11364_v46 = vld [vmem:[#allocation16_spill] sm:$0xff]  ;;  %v7064_v17 = vld [vmem:[%s9233_s30 + $0x74] sm:$0xf] }
 0x18e   : > { %7946 = vmatmul.mubr.bf16.gmra.mrb[20].mxu1 %v6852_v58  ;;  %8091 = vmatprep.subr.bf16.mxu0 %v8780_v61  ;;  %v8808_v58 = vld [vmem:[%s11215_s4 + $0x348] sm:$0xff]   ;;  %v8830_v37 = vld [vmem:[%s11215_s4 + $0x3c0] sm:$0xff]  }
 0x18f   : > { %7949 = vmatprep.mubr.bf16.mxu1 %v6853_v59  ;;  %v8810_v59 = vld [vmem:[%s11215_s4 + $0x350] sm:$0xff]  }
 0x191   : > { %8092 = vmatpush3.bf16.msra.mxu0 %v8780_v61  ;;  %v8862_v61 = vld [vmem:[%s11217_s6 + $0x40] sm:$0xff]  }
 0x192   : > { %8093 = vmatprep.subr.bf16.mxu0 %v8782_v22  ;;  %7957 = vmatprep.subr.bf16.mxu1 %v8862_v61 }
 0x193   : > { %7958 = vmatpush3.bf16.msra.mxu1 %v8862_v61  ;;  %v8842_v61 = vld [vmem:[%s11215_s4 + $0x3f0] sm:$0xff]  }
 0x194   : > { %8078 = vmatmul.mubr.bf16.gmra.mrb[24].mxu0 %v6944_v38  ;;  %7959 = vmatprep.subr.bf16.mxu1 %v8864_v34  ;;  %v8872_v38 = vld [vmem:[%s11217_s6 + $0x68] sm:$0xff]  }
 0x195   : > { %8094 = vmatpush3.bf16.msra.mxu0 %v8782_v22  ;;  %8081 = vmatprep.mubr.bf16.mxu0 %v6945_v20  ;;  %v8815_v22 = vld [vmem:[%s9233_s30 + $0x6c] sm:$0xff]   ;;  %v8821_v20 = vld [vmem:[%s11215_s4 + $0x380] sm:$0xff]  }
 0x196   : > { %7950 = vmatmul.mubr.bf16.gmra.mrb[24].mxu1 %v6854_v14  ;;  %8095 = vmatprep.subr.bf16.mxu0 %v8784_v51  ;;  %v8876_v14 = vld [vmem:[%s11217_s6 + $0x78] sm:$0xff]  }
 0x197   : > { %7953 = vmatprep.mubr.bf16.mxu1 %v6855_v9  ;;  %7960 = vmatpush3.bf16.msra.mxu1 %v8864_v34  ;;  %v11358_v9 = vld [vmem:[#allocation10_spill] sm:$0xff] }
 0x198   : > { %7961 = vmatprep.subr.bf16.mxu1 %v8866_v2 }
 0x199   : > { %8096 = vmatpush3.bf16.msra.mxu0 %v8784_v51  ;;  %v8822_v51 = vld [vmem:[%s11215_s4 + $0x388] sm:$0xff]  }
 0x19a   : > { %8097 = vmatprep.subr.bf16.mxu0 %v8786_v42 }
 0x19b   : > { %7962 = vmatpush3.bf16.msra.mxu1 %v8866_v2  ;;  %v8847_v2 = vld [vmem:[%s9233_s30 + $0x6c] sm:$0xff]  }
 0x19c   : > { %8082 = vmatmul.mubr.bf16.gmra.mrb[28].mxu0 %v6946_v36  ;;  %7963 = vmatprep.subr.bf16.mxu1 %v8868_v18  ;;  %v11363_v36 = vld [vmem:[#allocation15_spill] sm:$0xff] }
 0x19d   : > { %8098 = vmatpush3.bf16.msra.mxu0 %v8786_v42  ;;  %8101 = vmatprep.mubr.bf16.mxu0 %v6971_v12  ;;  %v11361_v42 = vld [vmem:[#allocation13_spill] sm:$0xff]  ;;  %v8827_v12 = vld [vmem:[%s11215_s4 + $0x3b0] sm:$0xff]  }
 0x19e   : > { %7954 = vmatmul.mubr.bf16.gmra.mrb[28].mxu1 %v6856_v39  ;;  %8099 = vmatprep.subr.bf16.mxu0 %v8788_v57  ;;  %v7059_v39 = vld [vmem:[%s9233_s30 + $0x38] sm:$0xf] }
 0x19f   : > { %7964 = vmatpush3.bf16.msra.mxu1 %v8868_v18  ;;  %v8848_v18 = vld [vmem:[%s11215_s4 + $0x408] sm:$0xff]  }
 0x1a0   : > { %7965 = vmatprep.subr.bf16.mxu1 %v8870_v23 }
 0x1a1   : > { %8100 = vmatpush3.bf16.msra.mxu0 %v8788_v57  ;;  %v8977_v57 = vld [vmem:[%s9233_s30 + $0x34] sm:$0xf] }
 0x1a2   : > { %8117 = vmatprep.subr.bf16.mxu0 %v8790_v6  ;;  %v7083_v35 = vcombine.low %v8977_v57, %v7059_v39  ;;  %v7154_v39 = vld [vmem:[%s9233_s30 + $0x78] sm:$0xc]  ;;  %v7156_v57 = vld [vmem:[%s9233_s30 + $0x80] sm:$0x3] }
 0x1a3   : > { %7966 = vmatpush3.bf16.msra.mxu1 %v8870_v23  ;;  %v8852_v23 = vld [vmem:[%s11215_s4 + $0x418] sm:$0xff]  }
 0x1a4   : > { %8102 = vmatmul.mubr.bf16.vlgmr.msra.gmra.mrb[16].mxu0 %v6972_v52  ;;  %7967 = vmatprep.subr.bf16.mxu1 %v8872_v38  ;;  %v7060_v52 = vld [vmem:[%s9233_s30 + $0x44] sm:$0xf] }
 0x1a5   : > { %8118 = vmatpush3.bf16.msra.mxu0 %v8790_v6  ;;  %8105 = vmatprep.mubr.bf16.mxu0 %v6973_v63  ;;  %v8828_v6 = vld [vmem:[%s11215_s4 + $0x3b8] sm:$0xff]   ;;  %v7061_v63 = vld [vmem:[%s9233_s30 + $0x50] sm:$0xf] }
 0x1a6   : > { %8119 = vmatprep.subr.bf16.mxu0 %v8792_v40 }
 0x1a7   : > { %7968 = vmatpush3.bf16.msra.mxu1 %v8872_v38  ;;  %v8854_v38 = vld [vmem:[%s11215_s4 + $0x420] sm:$0xff]  }
 0x1a8   : > { %7969 = vmatprep.subr.bf16.mxu1 %v8874_v8 }
 0x1a9   : > { %8120 = vmatpush3.bf16.msra.mxu0 %v8792_v40  ;;  %v8978_v40 = vld [vmem:[%s9233_s30 + $0x40] sm:$0xf] }
 0x1aa   : > { %8121 = vmatprep.subr.bf16.mxu0 %v8794_v47  ;;  %v7084_v29 = vcombine.low %v8978_v40, %v7060_v52  ;;  %v7174_v40 = vrot.slane %v7154_v39, 10 }
 0x1ab   : > { %7970 = vmatpush3.bf16.msra.mxu1 %v8874_v8  ;;  %v7150_v8 = vld [vmem:[%s9233_s30 + $0x68] sm:$0x3] }
 0x1ac   : > { %8106 = vmatmul.mubr.bf16.gmra.mrb[20].mxu0 %v6974_v43  ;;  %7971 = vmatprep.subr.bf16.mxu1 %v8876_v14  ;;  %v8832_v43 = vld [vmem:[%s11215_s4 + $0x3c8] sm:$0xff]  }
 0x1ad   : > { %8122 = vmatpush3.bf16.msra.mxu0 %v8794_v47  ;;  %8109 = vmatprep.mubr.bf16.mxu0 %v6975_v30  ;;  %v8979_v47 = vld [vmem:[%s9233_s30 + $0x4c] sm:$0xf]  ;;  %v7062_v30 = vld [vmem:[%s9233_s30 + $0x5c] sm:$0xf] }
 0x1ae   : > { %8123 = vmatprep.subr.bf16.mxu0 %v8796_v28  ;;  %v7085_v50 = vcombine.low %v8979_v47, %v7061_v63  ;;  %v8860_v63 = vld [vmem:[%s11215_s4 + $0x438] sm:$0xff]   ;;  %v5437_v47 = vrot.slane %v7156_v57, 6 }
 0x1af   : > { %7972 = vmatpush3.bf16.msra.mxu1 %v8876_v14  ;;  %v8856_v14 = vld [vmem:[%s11215_s4 + $0x428] sm:$0xff]  }
 0x1b1   : > { %8124 = vmatpush3.bf16.msra.mxu0 %v8796_v28  ;;  %v8834_v28 = vld [vmem:[%s11215_s4 + $0x3d0] sm:$0xff]  }
 0x1b2   : > { %8125 = vmatprep.subr.bf16.mxu0 %v8798_v15 }
 0x1b4   : > { %8110 = vmatmul.mubr.bf16.gmra.mrb[24].mxu0 %v6976_v33  ;;  %v8981_v33 = vld [vmem:[%s9233_s30 + $0x64] sm:$0xf] }
 0x1b5   : > { %8126 = vmatpush3.bf16.msra.mxu0 %v8798_v15  ;;  %8113 = vmatprep.mubr.bf16.mxu0 %v6977_v49  ;;  %v8980_v15 = vld [vmem:[%s9233_s30 + $0x58] sm:$0xf]  ;;  %v7087_v49 = vcombine.low %v8981_v33, %v7063_v1 }
 0x1b6   : > { %8127 = vmatprep.subr.bf16.mxu0 %v8800_v54  ;;  %v7086_v44 = vcombine.low %v8980_v15, %v7062_v30  ;;  %v8861_v15 = vld [vmem:[%s11215_s4 + $0x440] sm:$0xff]  }
 0x1b9   : > { %8128 = vmatpush3.bf16.msra.mxu0 %v8800_v54  ;;  %v8836_v54 = vld [vmem:[%s11215_s4 + $0x3d8] sm:$0xff]  }
 0x1ba   : > { %8129 = vmatprep.subr.bf16.mxu0 %v8802_v25 }
 0x1bc   : > { %8114 = vmatmul.mubr.bf16.gmra.mrb[28].mxu0 %v6978_v27  ;;  %v7065_v27 = vld [vmem:[%s9233_s30 + $0x80] sm:$0xf] }
 0x1bd   : > { %8130 = vmatpush3.bf16.msra.mxu0 %v8802_v25  ;;  %8133 = vmatprep.mubr.bf16.mxu0 %v8805_v53  ;;  %v8838_v25 = vld [vmem:[%s11215_s4 + $0x3e0] sm:$0xff]   ;;  %v8982_v53 = vld [vmem:[%s9233_s30 + $0x70] sm:$0xf] }
 0x1be   : > { %8131 = vmatprep.subr.bf16.mxu0 %v8804_v13 }
 0x1c1   : > { %8132 = vmatpush3.bf16.msra.mxu0 %v8804_v13  ;;  %v7088_v13 = vcombine.low %v8982_v53, %v7064_v17 }
 0x1c2   : > { %8149 = vmatprep.subr.bf16.mxu0 %v8806_v62 }
 0x1c4   : > { %8134 = vmatmul.mubr.bf16.vlgmr.msra.gmra.mrb[16].mxu0 %v8807_v16 }
 0x1c5   : > { %8150 = vmatpush3.bf16.msra.mxu0 %v8806_v62  ;;  %8137 = vmatprep.mubr.bf16.mxu0 %v8809_v41  ;;  %v8983_v62 = vld [vmem:[%s9233_s30 + $0x7c] sm:$0xf]  ;;  %v8840_v41 = vld [vmem:[%s11215_s4 + $0x3e8] sm:$0xff]  }
 0x1c6   : > { %8151 = vmatprep.subr.bf16.mxu0 %v8808_v58  ;;  %v7089_v16 = vcombine.low %v8983_v62, %v7065_v27  ;;  %v7162_v27 = vld [vmem:[%s9233_s30 + $0x98] sm:$0x3] }
 0x1c9   : > { %8152 = vmatpush3.bf16.msra.mxu0 %v8808_v58  ;;  %v7066_v58 = vld [vmem:[%s9233_s30 + $0x8c] sm:$0xf] }
 0x1ca   : > { %8153 = vmatprep.subr.bf16.mxu0 %v8810_v59 }
 0x1cc   : > { %8138 = vmatmul.mubr.bf16.gmra.mrb[20].mxu0 %v8811_v21  ;;  %v8845_v21 = vld [vmem:[%s9233_s30 + $0x60] sm:$0xff]  }
 0x1cd   : > { %8154 = vmatpush3.bf16.msra.mxu0 %v8810_v59  ;;  %8141 = vmatprep.mubr.bf16.mxu0 %v8813_v19  ;;  %v8984_v59 = vld [vmem:[%s9233_s30 + $0x88] sm:$0xf]  ;;  %v8844_v19 = vld [vmem:[%s11215_s4 + $0x3f8] sm:$0xff]  }
 0x1ce   : > { %8155 = vmatprep.subr.bf16.mxu0 %v8812_v45  ;;  %v7090_v34 = vcombine.low %v8984_v59, %v7066_v58  ;;  %v8863_v58 = vld [vmem:[%s11215_s4 + $0x448] sm:$0xff]  }
 0x1d1   : > { %8156 = vmatpush3.bf16.msra.mxu0 %v8812_v45  ;;  %v8846_v45 = vld [vmem:[%s11215_s4 + $0x400] sm:$0xff]  }
 0x1d2   : > { %8157 = vmatprep.subr.bf16.mxu0 %v8814_v3 }
 0x1d4   : > { %8142 = vmatmul.mubr.bf16.gmra.mrb[24].mxu0 %v8815_v22  ;;  %v8850_v22 = vld [vmem:[%s11215_s4 + $0x410] sm:$0xff]  }
 0x1d5   : > { %8158 = vmatpush3.bf16.msra.mxu0 %v8814_v3  ;;  %8145 = vmatprep.mubr.bf16.mxu0 %v8817_v10  ;;  %v8849_v3 = vld [vmem:[%s9233_s30 + $0x78] sm:$0xff]   ;;  %v8851_v10 = vld [vmem:[%s9233_s30 + $0x84] sm:$0xff]  }
 0x1d6   : > { %8159 = vmatprep.subr.bf16.mxu0 %v8816_v31 }
 0x1d9   : > { %8160 = vmatpush3.bf16.msra.mxu0 %v8816_v31  ;;  %v8853_v31 = vld [vmem:[%s9233_s30 + $0x90] sm:$0xff]  }
 0x1da   : > { %8161 = vmatprep.subr.bf16.mxu0 %v8818_v4 }
 0x1dc   : > { %8146 = vmatmul.mubr.bf16.gmra.mrb[28].mxu0 %v8819_v0 }
 0x1dd   : > { %8162 = vmatpush3.bf16.msra.mxu0 %v8818_v4  ;;  %8165 = vmatprep.mubr.bf16.mxu0 %v11357_v24  ;;  %v10909_v4 = vld [vmem:[%s9233_s30 + $0x64] sm:$0xf]  ;;  %v8855_v24 = vld [vmem:[%s9233_s30 + $0x9c] sm:$0xff]  }
 0x1de   : > { %8163 = vmatprep.subr.bf16.mxu0 %v8820_v32  ;;  %v5420_v0 = vrot.slane %v10909_v4, 6 }
 0x1e1   : > { %8164 = vmatpush3.bf16.msra.mxu0 %v8820_v32  ;;  %v7148_v32 = vld [vmem:[%s9233_s30 + $0x60] sm:$0xc] }
 0x1e2   : > { %8181 = vmatprep.subr.bf16.mxu0 %v8821_v20 }
 0x1e4   : > { %8166 = vmatmul.mubr.bf16.vlgmr.msra.gmra.mrb[16].mxu0 %v11358_v9  ;;  %v5422_v9 = vrot.slane %v5420_v0, 4 }
 0x1e5   : > { %8182 = vmatpush3.bf16.msra.mxu0 %v8821_v20  ;;  %8169 = vmatprep.mubr.bf16.mxu0 %v11359_v7  ;;  %v8857_v20 = vld [vmem:[%s9233_s30 + $0xa8] sm:$0xff]   ;;  %v5423_v7 = vrot.slane %v7150_v8, 6 }
 0x1e6   : > { %8183 = vmatprep.subr.bf16.mxu0 %v8822_v51 }
 0x1e9   : > { %8184 = vmatpush3.bf16.msra.mxu0 %v8822_v51  ;;  %v7172_v51 = vrot.slane %v7148_v32, 10  ;;  %v7168_v32 = vld [vmem:[%s9233_s30 + $0xb0] sm:$0x3] }
 0x1ea   : > { %8185 = vmatprep.subr.bf16.mxu0 %v8823_v55 }
 0x1ec   : > { %8170 = vmatmul.mubr.bf16.gmra.mrb[20].mxu0 %v11360_v60 }
 0x1ed   : > { %8186 = vmatpush3.bf16.msra.mxu0 %v8823_v55  ;;  %8173 = vmatprep.mubr.bf16.mxu0 %v11361_v42  ;;  %v10923_v55 = vld [vmem:[%s9233_s30 + $0x70] sm:$0xf] }
 0x1ee   : > { %8187 = vmatprep.subr.bf16.mxu0 %v8824_v11  ;;  %v5427_v60 = vrot.slane %v10923_v55, 6  ;;  %v8858_v42 = vld [vmem:[%s11215_s4 + $0x430] sm:$0xff]  }
 0x1f0   : > { %v5429_v52 = vrot.slane %v5427_v60, 4 }
 0x1f1   : > { %8188 = vmatpush3.bf16.msra.mxu0 %v8824_v11  ;;  %v10926_v11 = vld [vmem:[%s9233_s30 + $0x7c] sm:$0xf] }
 0x1f2   : > { %8189 = vmatprep.subr.bf16.mxu0 %v8825_v48 }
 0x1f4   : > { %8174 = vmatmul.mubr.bf16.gmra.mrb[24].mxu0 %v11362_v56  ;;  %v7151_v56 = vld [vmem:[%s9233_s30 + $0x6c] sm:$0xc] }
 0x1f5   : > { %8190 = vmatpush3.bf16.msra.mxu0 %v8825_v48  ;;  %8177 = vmatprep.mubr.bf16.mxu0 %v11363_v36  ;;  %v5421_v48 = vsel %vm9226_vm2, %v7172_v51, %v5420_v0  ;;  %v7153_v36 = vld [vmem:[%s9233_s30 + $0x74] sm:$0x3]  ;;  %v7166_v0 = vld [vmem:[%s9233_s30 + $0xa8] sm:$0xc] }
 0x1f6   : > { %8191 = vmatprep.subr.bf16.mxu0 %v8826_v26 }
 0x1f9   : > { %8192 = vmatpush3.bf16.msra.mxu0 %v8826_v26  ;;  %v5424_v26 = vsel %vm9226_vm2, %v5422_v9, %v5423_v7  ;;  %v8867_v9 = vld [vmem:[%s11215_s4 + $0x458] sm:$0xff]   ;;  %v7178_v7 = vrot.slane %v7166_v0, 10 }
 0x1fa   : > { %8193 = vmatprep.subr.bf16.mxu0 %v8827_v12 }
 0x1fc   : > { %8178 = vmatmul.mubr.bf16.gmra.mrb[28].mxu0 %v11364_v46  ;;  %v7173_v46 = vrot.slane %v7151_v56, 10 }
 0x1fd   : > { %8194 = vmatpush3.bf16.msra.mxu0 %v8827_v12  ;;  %8197 = vmatprep.mubr.bf16.mxu0 %v7083_v35  ;;  %v5434_v12 = vrot.slane %v10926_v11, 6  ;;  %v8859_v35 = vld [vmem:[%s9233_s30 + $0xb4] sm:$0xff]  }
 0x1fe   : > { %8195 = vmatprep.subr.bf16.mxu0 %v8828_v6  ;;  %v5428_v30 = vsel %vm9226_vm2, %v7173_v46, %v5427_v60 }
 0x201   : > { %8196 = vmatpush3.bf16.msra.mxu0 %v8828_v6  ;;  %v7196_v6 = vcombine.low %v5421_v48, %v5424_v26  ;;  %v10998_v48 = vld [vmem:[%s9233_s30 + $0xb8] sm:$0xf] }
 0x202   : > { %8213 = vmatprep.subr.bf16.mxu0 %v8830_v37 }
 0x204   : > { %8198 = vmatmul.mubr.bf16.vlgmr.msra.gmra.mrb[16].mxu0 %v7084_v29  ;;  %v5436_v29 = vrot.slane %v5434_v12, 4 }
 0x205   : > { %8214 = vmatpush3.bf16.msra.mxu0 %v8830_v37  ;;  %8201 = vmatprep.mubr.bf16.mxu0 %v7085_v50  ;;  %v5430_v37 = vrot.slane %v7153_v36, 6  ;;  %v10946_v50 = vld [vmem:[%s9233_s30 + $0x88] sm:$0xf]  ;;  %v5469_v36 = vrot.slane %v10998_v48, 6 }
 0x206   : > { %8215 = vmatprep.subr.bf16.mxu0 %v8832_v43  ;;  %v5441_v1 = vrot.slane %v10946_v50, 6  ;;  %v5438_v33 = vsel %vm9226_vm2, %v5436_v29, %v5437_v47  ;;  %v8871_v29 = vld [vmem:[%s11215_s4 + $0x468] sm:$0xff]  }
 0x209   : > { %8216 = vmatpush3.bf16.msra.mxu0 %v8832_v43  ;;  %v10949_v43 = vld [vmem:[%s9233_s30 + $0x94] sm:$0xf] }
 0x20a   : > { %8217 = vmatprep.subr.bf16.mxu0 %v8834_v28  ;;  %v5448_v17 = vrot.slane %v10949_v43, 6 }
 0x20c   : > { %8202 = vmatmul.mubr.bf16.gmra.mrb[20].mxu0 %v7086_v44  ;;  %v5435_v44 = vsel %vm9226_vm2, %v7174_v40, %v5434_v12  ;;  %v5450_v59 = vrot.slane %v5448_v17, 4  ;;  %v8869_v12 = vld [vmem:[%s11215_s4 + $0x460] sm:$0xff]  }
 0x20d   : > { %8218 = vmatpush3.bf16.msra.mxu0 %v8834_v28  ;;  %8205 = vmatprep.mubr.bf16.mxu0 %v7087_v49  ;;  %v5431_v28 = vsel %vm9226_vm2, %v5429_v52, %v5430_v37  ;;  %v7157_v49 = vld [vmem:[%s9233_s30 + $0x84] sm:$0xc] }
 0x20e   : > { %8219 = vmatprep.subr.bf16.mxu0 %v8836_v54  ;;  %v7197_v53 = vcombine.low %v5428_v30, %v5431_v28  ;;  %v7175_v62 = vrot.slane %v7157_v49, 10  ;;  %v8873_v28 = vld [vmem:[%s11215_s4 + $0x470] sm:$0xff]  }
 0x211   : > { %8220 = vmatpush3.bf16.msra.mxu0 %v8836_v54  ;;  %v7159_v54 = vld [vmem:[%s9233_s30 + $0x8c] sm:$0x3] }
 0x212   : > { %8221 = vmatprep.subr.bf16.mxu0 %v8838_v25 }
 0x214   : > { %8206 = vmatmul.mubr.bf16.gmra.mrb[24].mxu0 %v7088_v13  ;;  %v7198_v13 = vcombine.low %v5435_v44, %v5438_v33 }
 0x215   : > { %8222 = vmatpush3.bf16.msra.mxu0 %v8838_v25  ;;  %8209 = vmatprep.mubr.bf16.mxu0 %v7089_v16  ;;  %v7160_v25 = vld [vmem:[%s9233_s30 + $0x90] sm:$0xc]  ;;  %v5443_v16 = vrot.slane %v5441_v1, 4 }
 0x216   : > { %8223 = vmatprep.subr.bf16.mxu0 %v8840_v41 }
 0x219   : > { %8224 = vmatpush3.bf16.msra.mxu0 %v8840_v41  ;;  %v5444_v41 = vrot.slane %v7159_v54, 6 }
 0x21a   : > { %8225 = vmatprep.subr.bf16.mxu0 %v8842_v61 }
 0x21c   : > { %8210 = vmatmul.mubr.bf16.gmra.mrb[28].mxu0 %v7090_v34  ;;  %v5451_v34 = vrot.slane %v7162_v27, 6 }
 0x21d   : > { %8226 = vmatpush3.bf16.msra.mxu0 %v8842_v61  ;;  %8229 = vmatprep.mubr.bf16.mxu0 %v8845_v21  ;;  %v7176_v61 = vrot.slane %v7160_v25, 10  ;;  %v10972_v21 = vld [vmem:[%s9233_s30 + $0xa0] sm:$0xf] }
 0x21e   : > { %8227 = vmatprep.subr.bf16.mxu0 %v8844_v19 }
 0x221   : > { %8228 = vmatpush3.bf16.msra.mxu0 %v8844_v19  ;;  %v10975_v19 = vld [vmem:[%s9233_s30 + $0xac] sm:$0xf] }
 0x222   : > { %8245 = vmatprep.subr.bf16.mxu0 %v8846_v45 }
 0x224   : > { %8230 = vmatmul.mubr.bf16.vlgmr.msra.gmra.mrb[16].mxu0 %v8847_v2  ;;  %v5445_v2 = vsel %vm9226_vm2, %v5443_v16, %v5444_v41 }
 0x225   : > { %8246 = vmatpush3.bf16.msra.mxu0 %v8846_v45  ;;  %8233 = vmatprep.mubr.bf16.mxu0 %v8849_v3  ;;  %v5442_v45 = vsel %vm9226_vm2, %v7175_v62, %v5441_v1  ;;  %v5455_v3 = vrot.slane %v10972_v21, 6  ;;  %v7212_v1 = vld [vmem:[%s9233_s30 + $0x68] sm:$0xf] }
 0x226   : > { %8247 = vmatprep.subr.bf16.mxu0 %v8848_v18  ;;  %v7199_v8 = vcombine.low %v5442_v45, %v5445_v2  ;;  %v7236_v49 = vcombine.low %v10909_v4, %v7212_v1  ;;  %v7213_v4 = vld [vmem:[%s9233_s30 + $0x74] sm:$0xf] }
 0x227   : > { %v7237_v2 = vcombine.low %v10923_v55, %v7213_v4 }
 0x229   : > { %8248 = vmatpush3.bf16.msra.mxu0 %v8848_v18  ;;  %v8865_v18 = vld [vmem:[%s11215_s4 + $0x450] sm:$0xff]  }
 0x22a   : > { %8249 = vmatprep.subr.bf16.mxu0 %v8850_v22 }
 0x22c   : > { %8234 = vmatmul.mubr.bf16.gmra.mrb[20].mxu0 %v8851_v10  ;;  %v5452_v10 = vsel %vm9226_vm2, %v5450_v59, %v5451_v34 }
 0x22d   : > { %8250 = vmatpush3.bf16.msra.mxu0 %v8850_v22  ;;  %8237 = vmatprep.mubr.bf16.mxu0 %v8853_v31  ;;  %v5449_v22 = vsel %vm9226_vm2, %v7176_v61, %v5448_v17  ;;  %v7163_v31 = vld [vmem:[%s9233_s30 + $0x9c] sm:$0xc]  ;;  %v8885_v61 = vld [vmem:[%s11217_s6 + $0x80] sm:$0xff]  }
 0x22e   : > { %8251 = vmatprep.subr.bf16.mxu0 %v8852_v23  ;;  %v8875_v17 = vld [vmem:[%s11215_s4 + $0x478] sm:$0xff]  }
 0x231   : > { %8252 = vmatpush3.bf16.msra.mxu0 %v8852_v23  ;;  %v7165_v23 = vld [vmem:[%s9233_s30 + $0xa4] sm:$0x3] }
 0x232   : > { %8253 = vmatprep.subr.bf16.mxu0 %v8854_v38  ;;  %v5458_v51 = vrot.slane %v7165_v23, 6  ;;  %v8886_v23 = vld [vmem:[%s11217_s6 + $0x88] sm:$0xff]  }
 0x234   : > { %8238 = vmatmul.mubr.bf16.gmra.mrb[24].mxu0 %v8855_v24  ;;  %v7200_v24 = vcombine.low %v5449_v22, %v5452_v10 }
 0x235   : > { %8254 = vmatpush3.bf16.msra.mxu0 %v8854_v38  ;;  %8241 = vmatprep.mubr.bf16.mxu0 %v8857_v20  ;;  %v5462_v38 = vrot.slane %v10975_v19, 6  ;;  %v7177_v20 = vrot.slane %v7163_v31, 10 }
 0x236   : > { %8255 = vmatprep.subr.bf16.mxu0 %v8856_v14 }
 0x237   : > { %v5464_v60 = vrot.slane %v5462_v38, 4  ;;  %v5456_v26 = vsel %vm9226_vm2, %v7177_v20, %v5455_v3  ;;  %v5463_v39 = vsel %vm9226_vm2, %v7178_v7, %v5462_v38 }
 0x239   : > { %8256 = vmatpush3.bf16.msra.mxu0 %v8856_v14  ;;  %v5457_v14 = vrot.slane %v5455_v3, 4 }
 0x23a   : > { %8257 = vmatprep.subr.bf16.mxu0 %v8858_v42 }
 0x23b   : > { %v5459_v56 = vsel %vm9226_vm2, %v5457_v14, %v5458_v51  ;;  %v7216_v14 = vld [vmem:[%s9233_s30 + $0x98] sm:$0xf]  ;;  %v8887_v51 = vld [vmem:[%s11217_s6 + $0x90] sm:$0xff]  }
 0x23c   : > { %8242 = vmatmul.mubr.bf16.gmra.mrb[28].mxu0 %v8859_v35  ;;  %v7169_v35 = vld [vmem:[%s9233_s30 + $0xb4] sm:$0xc]  ;;  %v7201_v46 = vcombine.low %v5456_v26, %v5459_v56 }
 0x23d   : > { %8258 = vmatpush3.bf16.msra.mxu0 %v8858_v42  ;;  %8261 = vmatprep.mubr.bf16.mxu0 %v7196_v6  ;;  %v5465_v42 = vrot.slane %v7168_v32, 6  ;;  %v7171_v6 = vld [vmem:[%s9233_s30 + $0xbc] sm:$0x3]  ;;  %v7179_v37 = vrot.slane %v7169_v35, 10 }
 0x23e   : > { %8259 = vmatprep.subr.bf16.mxu0 %v8860_v63  ;;  %v5472_v40 = vrot.slane %v7171_v6, 6 }
 0x23f   : > { %v5466_v57 = vsel %vm9226_vm2, %v5464_v60, %v5465_v42  ;;  %v5470_v47 = vsel %vm9226_vm2, %v7179_v37, %v5469_v36 }
 0x240   : > { %v7202_v52 = vcombine.low %v5463_v39, %v5466_v57  ;;  %v8888_v57 = vld [vmem:[%s11217_s6 + $0x98] sm:$0xff]  }
 0x241   : > { %8260 = vmatpush3.bf16.msra.mxu0 %v8860_v63  ;;  %v5471_v63 = vrot.slane %v5469_v36, 4  ;;  %v7240_v36 = vcombine.low %v10949_v43, %v7216_v14 }
 0x242   : > { %8277 = vmatprep.subr.bf16.mxu0 %v8861_v15 }
 0x243   : > { %v5473_v30 = vsel %vm9226_vm2, %v5471_v63, %v5472_v40  ;;  %v7218_v40 = vld [vmem:[%s9233_s30 + $0xb0] sm:$0xf] }
 0x244   : > { %8262 = vmatmul.mubr.bf16.vlgmr.msra.gmra.mrb[16].mxu0 %v7197_v53  ;;  %v7203_v44 = vcombine.low %v5470_v47, %v5473_v30 }
 0x245   : > { %8278 = vmatpush3.bf16.msra.mxu0 %v8861_v15  ;;  %8265 = vmatprep.mubr.bf16.mxu0 %v7198_v13  ;;  %v11028_v15 = vld [vmem:[%s11216_s5] ss:$0 sm:$0xff] }
 0x246   : > { %8279 = vmatprep.subr.bf16.mxu0 %v8863_v58 }
 0x249   : > { %8280 = vmatpush3.bf16.msra.mxu0 %v8863_v58  ;;  %v7214_v58 = vld [vmem:[%s9233_s30 + $0x80] sm:$0xf] }
 0x24a   : > { %8281 = vmatprep.subr.bf16.mxu0 %v8865_v18  ;;  %v7238_v22 = vcombine.low %v10926_v11, %v7214_v58 }
 0x24c   : > { %8266 = vmatmul.mubr.bf16.gmra.mrb[20].mxu0 %v7199_v8  ;;  %v7215_v8 = vld [vmem:[%s9233_s30 + $0x8c] sm:$0xf] }
 0x24d   : > { %8282 = vmatpush3.bf16.msra.mxu0 %v8865_v18  ;;  %8269 = vmatprep.mubr.bf16.mxu0 %v7200_v24  ;;  %v7239_v42 = vcombine.low %v10946_v50, %v7215_v8 }
 0x24e   : > { %8283 = vmatprep.subr.bf16.mxu0 %v8867_v9 }
 0x251   : > { %8284 = vmatpush3.bf16.msra.mxu0 %v8867_v9 }
 0x252   : > { %8285 = vmatprep.subr.bf16.mxu0 %v8869_v12 }
 0x254   : > { %8270 = vmatmul.mubr.bf16.gmra.mrb[24].mxu0 %v7201_v46 }
 0x255   : > { %8286 = vmatpush3.bf16.msra.mxu0 %v8869_v12  ;;  %8273 = vmatprep.mubr.bf16.mxu0 %v7202_v52  ;;  %v7217_v52 = vld [vmem:[%s9233_s30 + $0xa4] sm:$0xf] }
 0x256   : > { %8287 = vmatprep.subr.bf16.mxu0 %v8871_v29  ;;  %v7241_v1 = vcombine.low %v10972_v21, %v7217_v52 }
 0x259   : > { %8288 = vmatpush3.bf16.msra.mxu0 %v8871_v29  ;;  %v7943_v33 = vpop.f32.mrb[16].mxu1  ;;  %v8889_v29 = vld [vmem:[%s11217_s6 + $0xa0] sm:$0xff]  }
 0x25a   : > { %v3413_v5 = vadd.f32 %v7943_v33, %v11028_v15  ;;  %v3327_v54 = vpop.f32.mrb[17].mxu1  ;;  %8289 = vmatprep.subr.bf16.mxu0 %v8873_v28 }
 0x25b   : > { %v3411_v25 = vadd.f32 %v11028_v15, %v3327_v54  ;;  %v7944_v27 = vpop.f32.mrb[18].mxu1 }
 0x25c   : > { %v3414_v53 = vadd.f32 %v7944_v27, %v11028_v15  ;;  %v3330_v13 = vpop.f32.mrb[19].mxu1  ;;  %8274 = vmatmul.mubr.bf16.gmra.mrb[28].mxu0 %v7203_v44  ;;  %v3429_v16 = vmax.f32 %v3413_v5, 0.0 }
 0x25d   : > { %v3412_v62 = vadd.f32 %v11028_v15, %v3330_v13  ;;  %8290 = vmatpush3.bf16.msra.mxu0 %v8873_v28  ;;  %8293 = vmatprep.mubr.bf16.mxu0 %v7236_v49  ;;  %v3427_v59 = vmax.f32 %v3411_v25, 0.0  ;;  %v7242_v49 = vcombine.low %v10975_v19, %v7218_v40  ;;  %v7219_v13 = vld [vmem:[%s9233_s30 + $0xbc] sm:$0xf] }
 0x25e   : > { %v3430_v41 = vmax.f32 %v3414_v53, 0.0  ;;  %8291 = vmatprep.subr.bf16.mxu0 %v8875_v17 }
 0x25f   : > { %v3428_v34 = vmax.f32 %v3412_v62, 0.0 }
 0x260   : > { %v3444_v45 = vpack.c.bf16 %v3430_v41, %v3429_v16 }
 0x261   : > { %v3443_v3 = vpack.c.bf16 %v3428_v34, %v3427_v59  ;;  %8292 = vmatpush3.bf16.msra.mxu0 %v8875_v17  ;;  %v7947_v18 = vpop.f32.mrb[20].mxu1  ;;  %v8890_v17 = vld [vmem:[%s11217_s6 + $0xa8] sm:$0xff]   ;;  %v8892_v34 = vld [vmem:[%s11217_s6 + $0xb8] sm:$0xff]  }
 0x262   : > { %v3417_v10 = vadd.f32 %v7947_v18, %v11028_v15  ;;  %v3343_v31 = vpop.f32.mrb[21].mxu1  ;;  %8309 = vmatprep.subr.bf16.mxu0 %v8885_v61 }
 0x263   : > { %v3415_v38 = vadd.f32 %v11028_v15, %v3343_v31  ;;  %v7948_v0 = vpop.f32.mrb[22].mxu1  ;;  %7973 = vmatprep.mubr.bf16.mxu1 %v3443_v3 }
 0x264   : > { %v3418_v55 = vadd.f32 %v7948_v0, %v11028_v15  ;;  %v3346_v32 = vpop.f32.mrb[23].mxu1  ;;  %7974 = vmatmul.mubr.bf16.vlgmr.msra.gmra.mrb[32].mxu1 %v3444_v45  ;;  %8294 = vmatmul.mubr.bf16.vlgmr.msra.gmra.mrb[16].mxu0 %v7237_v2  ;;  %v3433_v24 = vmax.f32 %v3417_v10, 0.0 }
 0x265   : > { %v3416_v11 = vadd.f32 %v11028_v15, %v3346_v32  ;;  %8297 = vmatprep.mubr.bf16.mxu0 %v7238_v22  ;;  %8310 = vmatpush3.bf16.msra.mxu0 %v8885_v61  ;;  %v3431_v9 = vmax.f32 %v3415_v38, 0.0  ;;  %v7243_v61 = vcombine.low %v10998_v48, %v7219_v13  ;;  %v11091_v48 = vld [vmem:[%s11216_s5 + $0x1] ss:$0 sm:$0xff] }
 0x266   : > { %v3434_v20 = vmax.f32 %v3418_v55, 0.0  ;;  %8311 = vmatprep.subr.bf16.mxu0 %v8886_v23 }
 0x267   : > { %v3432_v7 = vmax.f32 %v3416_v11, 0.0 }
 0x268   : > { %v3446_v60 = vpack.c.bf16 %v3434_v20, %v3433_v24 }
 0x269   : > { %v3445_v26 = vpack.c.bf16 %v3432_v7, %v3431_v9  ;;  %v7951_v56 = vpop.f32.mrb[24].mxu1  ;;  %8312 = vmatpush3.bf16.msra.mxu0 %v8886_v23 }
 0x26a   : > { %v3421_v12 = vadd.f32 %v7951_v56, %v11028_v15  ;;  %v3359_v39 = vpop.f32.mrb[25].mxu1  ;;  %8313 = vmatprep.subr.bf16.mxu0 %v8887_v51 }
 0x26b   : > { %v3419_v35 = vadd.f32 %v11028_v15, %v3359_v39  ;;  %v7952_v6 = vpop.f32.mrb[26].mxu1  ;;  %7977 = vmatprep.mubr.bf16.mxu1 %v3445_v26 }
 0x26c   : > { %v3422_v50 = vadd.f32 %v7952_v6, %v11028_v15  ;;  %v3362_v46 = vpop.f32.mrb[27].mxu1  ;;  %7978 = vmatmul.mubr.bf16.gmra.mrb[36].mxu1 %v3446_v60  ;;  %8298 = vmatmul.mubr.bf16.gmra.mrb[20].mxu0 %v7239_v42  ;;  %v3437_v37 = vmax.f32 %v3421_v12, 0.0 }
 0x26d   : > { %v3420_v43 = vadd.f32 %v11028_v15, %v3362_v46  ;;  %8301 = vmatprep.mubr.bf16.mxu0 %v7240_v36  ;;  %8314 = vmatpush3.bf16.msra.mxu0 %v8887_v51  ;;  %v3435_v47 = vmax.f32 %v3419_v35, 0.0 }
 0x26e   : > { %v3438_v63 = vmax.f32 %v3422_v50, 0.0  ;;  %8315 = vmatprep.subr.bf16.mxu0 %v8888_v57 }
 0x26f   : > { %v3436_v30 = vmax.f32 %v3420_v43, 0.0 }
 0x270   : > { %v3448_v28 = vpack.c.bf16 %v3438_v63, %v3437_v37 }
 0x271   : > { %v3447_v44 = vpack.c.bf16 %v3436_v30, %v3435_v47  ;;  %v7955_v33 = vpop.f32.mrb[28].mxu1  ;;  %8316 = vmatpush3.bf16.msra.mxu0 %v8888_v57 }
 0x272   : > { %v3425_v5 = vadd.f32 %v7955_v33, %v11028_v15  ;;  %v3375_v54 = vpop.f32.mrb[29].mxu1  ;;  %8317 = vmatprep.subr.bf16.mxu0 %v8889_v29 }
 0x273   : > { %v3423_v25 = vadd.f32 %v11028_v15, %v3375_v54  ;;  %v7956_v27 = vpop.f32.mrb[30].mxu1  ;;  %7981 = vmatprep.mubr.bf16.mxu1 %v3447_v44 }
 0x274   : > { %v3426_v21 = vadd.f32 %v7956_v27, %v11028_v15  ;;  %v3378_v53 = vpop.f32.mrb[31].mxu1  ;;  %7982 = vmatmul.mubr.bf16.gmra.mrb[40].mxu1 %v3448_v28  ;;  %8302 = vmatmul.mubr.bf16.gmra.mrb[24].mxu0 %v7241_v1  ;;  %v3441_v62 = vmax.f32 %v3425_v5, 0.0 }
 0x275   : > { %v3424_v19 = vadd.f32 %v11028_v15, %v3378_v53  ;;  %8305 = vmatprep.mubr.bf16.mxu0 %v7242_v49  ;;  %8318 = vmatpush3.bf16.msra.mxu0 %v8889_v29  ;;  %v3439_v16 = vmax.f32 %v3423_v25, 0.0  ;;  %v8891_v15 = vld [vmem:[%s11217_s6 + $0xb0] sm:$0xff]  }
 0x276   : > { %v3442_v4 = vmax.f32 %v3426_v21, 0.0  ;;  %8319 = vmatprep.subr.bf16.mxu0 %v8890_v17 }
 0x277   : > { %v3440_v41 = vmax.f32 %v3424_v19, 0.0 }
 0x278   : > { %v3450_v58 = vpack.c.bf16 %v3442_v4, %v3441_v62 }
 0x279   : > { %v3449_v59 = vpack.c.bf16 %v3440_v41, %v3439_v16  ;;  %8320 = vmatpush3.bf16.msra.mxu0 %v8890_v17 }
 0x27a   : > { %8321 = vmatprep.subr.bf16.mxu0 %v8891_v15 }
 0x27b   : > { %7985 = vmatprep.mubr.bf16.mxu1 %v3449_v59 }
 0x27c   : > { %7986 = vmatmul.mubr.bf16.gmra.mrb[44].mxu1 %v3450_v58  ;;  %8306 = vmatmul.mubr.bf16.gmra.mrb[28].mxu0 %v7243_v61 }
 0x27d   : > { %8322 = vmatpush3.bf16.msra.mxu0 %v8891_v15 }
 0x27e   : > { %8323 = vmatprep.subr.bf16.mxu0 %v8892_v34 }
 0x281   : > { %8324 = vmatpush3.bf16.msra.mxu0 %v8892_v34 }
 0x337   : > { %v11093_v45 = vpop.f32.mrb[32].mxu1  ;;  %v8295_v2 = vpop.f32.mrb[16].mxu0 }
 0x338   : > { %v5915_v3 = vadd.f32 %v8295_v2, %v11091_v48  ;;  %v11096_v18 = vpop.f32.mrb[33].mxu1  ;;  %v5829_v22 = vpop.f32.mrb[17].mxu0 }
 0x339   : > { %v5913_v10 = vadd.f32 %v11091_v48, %v5829_v22  ;;  %v11099_v31 = vpop.f32.mrb[34].mxu1  ;;  %v8296_v23 = vpop.f32.mrb[18].mxu0 }
 0x33a   : > { %v5916_v38 = vadd.f32 %v8296_v23, %v11091_v48  ;;  %v11102_v0 = vpop.f32.mrb[35].mxu1  ;;  %v5832_v55 = vpop.f32.mrb[19].mxu0  ;;  %v5931_v11 = vmax.f32 %v5915_v3, 0.0 }
 0x33b   : > { %v5914_v32 = vadd.f32 %v11091_v48, %v5832_v55  ;;  %v5929_v24 = vmax.f32 %v5913_v10, 0.0 }
 0x33c   : > { %v5932_v8 = vmax.f32 %v5916_v38, 0.0 }
 0x33d   : > { %v5930_v20 = vmax.f32 %v5914_v32, 0.0 }
 0x33e   : > { %v5946_v14 = vpack.c.bf16 %v5932_v8, %v5931_v11 }
 0x33f   : > { %v5945_v51 = vpack.c.bf16 %v5930_v20, %v5929_v24  ;;  %v11105_v9 = vpop.f32.mrb[36].mxu1  ;;  %v8299_v7 = vpop.f32.mrb[20].mxu0  ;;  %v11146_v24 = vld [vmem:[%s260_s12] ss:$0 sm:$0xff] }
 0x340   : > { %v5919_v60 = vadd.f32 %v8299_v7, %v11091_v48  ;;  %v11108_v42 = vpop.f32.mrb[37].mxu1  ;;  %v5845_v26 = vpop.f32.mrb[21].mxu0 }
 0x341   : > { %v5917_v56 = vadd.f32 %v11091_v48, %v5845_v26  ;;  %v11111_v36 = vpop.f32.mrb[38].mxu1  ;;  %v8300_v12 = vpop.f32.mrb[22].mxu0  ;;  %8325 = vmatprep.mubr.bf16.mxu0 %v5945_v51 }
 0x342   : > { %v5920_v39 = vadd.f32 %v8300_v12, %v11091_v48  ;;  %v11114_v57 = vpop.f32.mrb[39].mxu1  ;;  %v5848_v35 = vpop.f32.mrb[23].mxu0  ;;  %8326 = vmatmul.mubr.bf16.vlgmr.msra.gmra.mrb[0].mxu0 %v5946_v14  ;;  %v5935_v50 = vmax.f32 %v5919_v60, 0.0 }
 0x343   : > { %v5918_v6 = vadd.f32 %v11091_v48, %v5848_v35  ;;  %v5933_v43 = vmax.f32 %v5917_v56, 0.0 }
 0x344   : > { %v5936_v46 = vmax.f32 %v5920_v39, 0.0 }
 0x345   : > { %v5934_v52 = vmax.f32 %v5918_v6, 0.0 }
 0x346   : > { %v5948_v37 = vpack.c.bf16 %v5936_v46, %v5935_v50 }
 0x347   : > { %v5947_v63 = vpack.c.bf16 %v5934_v52, %v5933_v43  ;;  %v11117_v40 = vpop.f32.mrb[40].mxu1  ;;  %v8303_v29 = vpop.f32.mrb[24].mxu0 }
 0x348   : > { %v5923_v47 = vadd.f32 %v8303_v29, %v11091_v48  ;;  %v11120_v30 = vpop.f32.mrb[41].mxu1  ;;  %v5861_v28 = vpop.f32.mrb[25].mxu0 }
 0x349   : > { %v5921_v1 = vadd.f32 %v11091_v48, %v5861_v28  ;;  %v11123_v44 = vpop.f32.mrb[42].mxu1  ;;  %v8304_v33 = vpop.f32.mrb[26].mxu0  ;;  %8329 = vmatprep.mubr.bf16.mxu0 %v5947_v63 }
 0x34a   : > { %v5924_v49 = vadd.f32 %v8304_v33, %v11091_v48  ;;  %v11126_v5 = vpop.f32.mrb[43].mxu1  ;;  %v5864_v54 = vpop.f32.mrb[27].mxu0  ;;  %8330 = vmatmul.mubr.bf16.gmra.mrb[4].mxu0 %v5948_v37  ;;  %v5939_v25 = vmax.f32 %v5923_v47, 0.0 }
 0x34b   : > { %v5922_v17 = vadd.f32 %v11091_v48, %v5864_v54  ;;  %v5937_v21 = vmax.f32 %v5921_v1, 0.0 }
 0x34c   : > { %v5940_v27 = vmax.f32 %v5924_v49, 0.0 }
 0x34d   : > { %v5938_v53 = vmax.f32 %v5922_v17, 0.0 }
 0x34e   : > { %v5950_v19 = vpack.c.bf16 %v5940_v27, %v5939_v25 }
 0x34f   : > { %v5949_v13 = vpack.c.bf16 %v5938_v53, %v5937_v21  ;;  %v11129_v62 = vpop.f32.mrb[44].mxu1  ;;  %v8307_v4 = vpop.f32.mrb[28].mxu0 }
 0x350   : > { %v5927_v16 = vadd.f32 %v8307_v4, %v11091_v48  ;;  %v11132_v41 = vpop.f32.mrb[45].mxu1  ;;  %v5877_v58 = vpop.f32.mrb[29].mxu0 }
 0x351   : > { %v5925_v61 = vadd.f32 %v11091_v48, %v5877_v58  ;;  %v11135_v59 = vpop.f32.mrb[46].mxu1  ;;  %v8308_v15 = vpop.f32.mrb[30].mxu0  ;;  %8333 = vmatprep.mubr.bf16.mxu0 %v5949_v13 }
 0x352   : > { %v5928_v34 = vadd.f32 %v8308_v15, %v11091_v48  ;;  %v11138_v2 = vpop.f32.mrb[47].mxu1  ;;  %v5880_v3 = vpop.f32.mrb[31].mxu0  ;;  %8334 = vmatmul.mubr.bf16.gmra.mrb[8].mxu0 %v5950_v19  ;;  %v5943_v10 = vmax.f32 %v5927_v16, 0.0 }
 0x353   : > { %v5926_v22 = vadd.f32 %v11091_v48, %v5880_v3  ;;  %v5941_v38 = vmax.f32 %v5925_v61, 0.0 }
 0x354   : > { %v5944_v23 = vmax.f32 %v5928_v34, 0.0 }
 0x355   : > { %v5942_v55 = vmax.f32 %v5926_v22, 0.0 }
 0x356   : > { %v5952_v32 = vpack.c.bf16 %v5944_v23, %v5943_v10 }
 0x357   : > { %v5951_v11 = vpack.c.bf16 %v5942_v55, %v5941_v38 }
 0x359   : > { %8337 = vmatprep.mubr.bf16.mxu0 %v5951_v11 }
 0x35a   : > { %8338 = vmatmul.mubr.bf16.gmra.mrb[12].mxu0 %v5952_v32 }
 0x415   : > { %v8327_v8 = vpop.f32.mrb[0].mxu0 }
 0x416   : > { %v8341_v20 = vadd.f32 %v8327_v8, %v11093_v45  ;;  %v6051_v14 = vpop.f32.mrb[1].mxu0 }
 0x417   : > { %v8342_v48 = vadd.f32 %v6051_v14, %v11096_v18  ;;  %v8328_v51 = vpop.f32.mrb[2].mxu0 }
 0x418   : > { %v6139_v7 = vadd.f32 %v8341_v20, %v11146_v24  ;;  %v8343_v60 = vadd.f32 %v8328_v51, %v11099_v31  ;;  %v6054_v26 = vpop.f32.mrb[3].mxu0 }
 0x419   : > { %v6137_v56 = vadd.f32 %v8342_v48, %v11146_v24  ;;  %v8344_v12 = vadd.f32 %v6054_v26, %v11102_v0 }
 0x41a   : > { %v6155_v39 = vmax.f32 %v6139_v7, 0.0  ;;  %v6140_v35 = vadd.f32 %v8343_v60, %v11146_v24 }
 0x41b   : > { %v6153_v6 = vmax.f32 %v6137_v56, 0.0  ;;  %v6138_v50 = vadd.f32 %v8344_v12, %v11146_v24 }
 0x41c   : > { %v7264_v45 = vmul.f32 -1.442695, %v6155_v39  ;;  %v6156_v46 = vmax.f32 %v6140_v35, 0.0 }
 0x41d   : > { %v7262_v43 = vmul.f32 -1.442695, %v6153_v6  ;;  %v6154_v18 = vmax.f32 %v6138_v50, 0.0  ;;  %v8331_v52 = vpop.f32.mrb[4].mxu0 }
 0x41e   : > { %8893 = vpow2.f32 %v7264_v45  ;;  %v7265_v37 = vmul.f32 -1.442695, %v6156_v46  ;;  %v8345_v31 = vadd.f32 %v8331_v52, %v11105_v9  ;;  %v6067_v63 = vpop.f32.mrb[5].mxu0 }
 0x41f   : > { %8895 = vpow2.f32 %v7262_v43  ;;  %v7263_v29 = vmul.f32 -1.442695, %v6154_v18  ;;  %v8346_v0 = vadd.f32 %v6067_v63, %v11108_v42  ;;  %v8332_v47 = vpop.f32.mrb[6].mxu0 }
 0x420   : > { %8897 = vpow2.f32 %v7265_v37  ;;  %v6143_v28 = vadd.f32 %v8345_v31, %v11146_v24  ;;  %v8347_v1 = vadd.f32 %v8332_v47, %v11111_v36  ;;  %v6070_v33 = vpop.f32.mrb[7].mxu0 }
 0x421   : > { %8899 = vpow2.f32 %v7263_v29  ;;  %v6141_v49 = vadd.f32 %v8346_v0, %v11146_v24  ;;  %v8348_v54 = vadd.f32 %v6070_v33, %v11114_v57 }
 0x422   : > { %v6159_v17 = vmax.f32 %v6143_v28, 0.0  ;;  %v6144_v9 = vadd.f32 %v8347_v1, %v11146_v24 }
 0x423   : > { %v6157_v25 = vmax.f32 %v6141_v49, 0.0  ;;  %v6142_v27 = vadd.f32 %v8348_v54, %v11146_v24 }
 0x424   : > { %v7268_v21 = vmul.f32 -1.442695, %v6159_v17  ;;  %v6160_v42 = vmax.f32 %v6144_v9, 0.0 }
 0x425   : > { %v7266_v53 = vmul.f32 -1.442695, %v6157_v25  ;;  %v6158_v19 = vmax.f32 %v6142_v27, 0.0  ;;  %v8335_v13 = vpop.f32.mrb[8].mxu0 }
 0x426   : > { %8901 = vpow2.f32 %v7268_v21  ;;  %v7269_v4 = vmul.f32 -1.442695, %v6160_v42  ;;  %v8349_v36 = vadd.f32 %v8335_v13, %v11117_v40  ;;  %v6083_v16 = vpop.f32.mrb[9].mxu0 }
 0x427   : > { %8903 = vpow2.f32 %v7266_v53  ;;  %v7267_v58 = vmul.f32 -1.442695, %v6158_v19  ;;  %v8350_v57 = vadd.f32 %v6083_v16, %v11120_v30  ;;  %v8336_v61 = vpop.f32.mrb[10].mxu0 }
 0x428   : > { %v8894_v15 = vpop.eup %8893  ;;  %8905 = vpow2.f32 %v7269_v4  ;;  %v6147_v34 = vadd.f32 %v8349_v36, %v11146_v24  ;;  %v8351_v3 = vadd.f32 %v8336_v61, %v11123_v44  ;;  %v6086_v22 = vpop.f32.mrb[11].mxu0 }
 0x429   : > { %v8896_v10 = vpop.eup %8895  ;;  %v6219_v23 = vadd.f32 1.0, %v8894_v15  ;;  %8907 = vpow2.f32 %v7267_v58  ;;  %v6145_v38 = vadd.f32 %v8350_v57, %v11146_v24  ;;  %v8352_v40 = vadd.f32 %v6086_v22, %v11126_v5 }
 0x42a   : > { %v8898_v55 = vpop.eup %8897  ;;  %v6217_v32 = vadd.f32 1.0, %v8896_v10  ;;  %v6163_v11 = vmax.f32 %v6147_v34, 0.0  ;;  %v6148_v30 = vadd.f32 %v8351_v3, %v11146_v24 }
 0x42b   : > { %v8900_v8 = vpop.eup %8899  ;;  %8909 = vrcp.f32 %v6219_v23  ;;  %v6220_v20 = vadd.f32 1.0, %v8898_v55  ;;  %v6161_v14 = vmax.f32 %v6145_v38, 0.0  ;;  %v6146_v48 = vadd.f32 %v8352_v40, %v11146_v24 }
 0x42c   : > { %8911 = vrcp.f32 %v6217_v32  ;;  %v6218_v44 = vadd.f32 1.0, %v8900_v8  ;;  %v7272_v51 = vmul.f32 -1.442695, %v6163_v11  ;;  %v6164_v7 = vmax.f32 %v6148_v30, 0.0 }
 0x42d   : > { %8913 = vrcp.f32 %v6220_v20  ;;  %v7270_v60 = vmul.f32 -1.442695, %v6161_v14  ;;  %v6162_v26 = vmax.f32 %v6146_v48, 0.0  ;;  %v8339_v56 = vpop.f32.mrb[12].mxu0 }
 0x42e   : > { %8915 = vrcp.f32 %v6218_v44  ;;  %v7273_v5 = vmul.f32 -1.442695, %v6164_v7  ;;  %v8353_v12 = vadd.f32 %v8339_v56, %v11129_v62  ;;  %v6099_v39 = vpop.f32.mrb[13].mxu0 }
 0x42f   : > { %8917 = vpow2.f32 %v7272_v51  ;;  %v7271_v35 = vmul.f32 -1.442695, %v6162_v26  ;;  %v8354_v6 = vadd.f32 %v6099_v39, %v11132_v41  ;;  %v8340_v50 = vpop.f32.mrb[14].mxu0 }
 0x430   : > { %v8902_v45 = vpop.eup %8901  ;;  %8919 = vpow2.f32 %v7270_v60  ;;  %v6151_v46 = vadd.f32 %v8353_v12, %v11146_v24  ;;  %v8355_v43 = vadd.f32 %v8340_v50, %v11135_v59  ;;  %v6102_v18 = vpop.f32.mrb[15].mxu0 }
 0x431   : > { %v8904_v52 = vpop.eup %8903  ;;  %v6223_v37 = vadd.f32 1.0, %v8902_v45  ;;  %8921 = vpow2.f32 %v7273_v5  ;;  %v6149_v31 = vadd.f32 %v8354_v6, %v11146_v24  ;;  %v8356_v62 = vadd.f32 %v6102_v18, %v11138_v2 }
 0x432   : > { %v8906_v63 = vpop.eup %8905  ;;  %v6221_v29 = vadd.f32 1.0, %v8904_v52  ;;  %8923 = vpow2.f32 %v7271_v35  ;;  %v6167_v0 = vmax.f32 %v6151_v46, 0.0  ;;  %v6152_v41 = vadd.f32 %v8355_v43, %v11146_v24 }
 0x433   : > { %v8908_v47 = vpop.eup %8907  ;;  %8925 = vrcp.f32 %v6223_v37  ;;  %v6224_v28 = vadd.f32 1.0, %v8906_v63  ;;  %v6165_v59 = vmax.f32 %v6149_v31, 0.0  ;;  %v6150_v1 = vadd.f32 %v8356_v62, %v11146_v24 }
 0x434   : > { %8927 = vrcp.f32 %v6221_v29  ;;  %v6222_v33 = vadd.f32 1.0, %v8908_v47  ;;  %v7276_v49 = vmul.f32 -1.442695, %v6167_v0  ;;  %v6168_v54 = vmax.f32 %v6152_v41, 0.0 }
 0x435   : > { %v8910_v2 = vpop.eup %8909  ;;  %8929 = vrcp.f32 %v6224_v28  ;;  %v7274_v17 = vmul.f32 -1.442695, %v6165_v59  ;;  %v6166_v9 = vmax.f32 %v6150_v1, 0.0 }
 0x436   : > { %v8912_v25 = vpop.eup %8911  ;;  %6267 = vst [vmem:[%s9117_s22 + $0x10] sm:$0xff] %v8910_v2  ;;  %8931 = vrcp.f32 %v6222_v33  ;;  %v7277_v27 = vmul.f32 -1.442695, %v6168_v54 }
 0x437   : > { %v8914_v21 = vpop.eup %8913  ;;  %6265 = vst [vmem:[%s9117_s22] sm:$0xff] %v8912_v25  ;;  %8933 = vpow2.f32 %v7276_v49  ;;  %v7275_v42 = vmul.f32 -1.442695, %v6166_v9 }
 0x438   : > { %v8916_v53 = vpop.eup %8915  ;;  %6268 = vst [vmem:[%s9117_s22 + $0x18] sm:$0xff] %v8914_v21  ;;  %8935 = vpow2.f32 %v7274_v17 }
 0x439   : > { %v8918_v24 = vpop.eup %8917  ;;  %6266 = vst [vmem:[%s9117_s22 + $0x8] sm:$0xff] %v8916_v53  ;;  %8937 = vpow2.f32 %v7277_v27 }
 0x43a   : > { %v8920_v19 = vpop.eup %8919  ;;  %v6227_v13 = vadd.f32 1.0, %v8918_v24  ;;  %8939 = vpow2.f32 %v7275_v42 }
 0x43b   : > { %v8922_v4 = vpop.eup %8921  ;;  %v6225_v36 = vadd.f32 1.0, %v8920_v19 }
 0x43c   : > { %v8924_v16 = vpop.eup %8923  ;;  %8941 = vrcp.f32 %v6227_v13  ;;  %v6228_v58 = vadd.f32 1.0, %v8922_v4 }
 0x43d   : > { %v8926_v57 = vpop.eup %8925  ;;  %8943 = vrcp.f32 %v6225_v36  ;;  %v6226_v61 = vadd.f32 1.0, %v8924_v16 }
 0x43e   : > { %v8928_v15 = vpop.eup %8927  ;;  %6271 = vst [vmem:[%s9117_s22 + $0x30] sm:$0xff] %v8926_v57  ;;  %8945 = vrcp.f32 %v6228_v58 }
 0x43f   : > { %v8930_v34 = vpop.eup %8929  ;;  %6269 = vst [vmem:[%s9117_s22 + $0x20] sm:$0xff] %v8928_v15  ;;  %8947 = vrcp.f32 %v6226_v61 }
 0x440   : > { %v8932_v3 = vpop.eup %8931  ;;  %6272 = vst [vmem:[%s9117_s22 + $0x38] sm:$0xff] %v8930_v34 }
 0x441   : > { %v8934_v22 = vpop.eup %8933  ;;  %6270 = vst [vmem:[%s9117_s22 + $0x28] sm:$0xff] %v8932_v3 }
 0x442   : > { %v8936_v10 = vpop.eup %8935  ;;  %v6231_v23 = vadd.f32 1.0, %v8934_v22 }
 0x443   : > { %v8938_v38 = vpop.eup %8937  ;;  %v6229_v40 = vadd.f32 1.0, %v8936_v10 }
 0x444   : > { %v8940_v55 = vpop.eup %8939  ;;  %8949 = vrcp.f32 %v6231_v23  ;;  %v6232_v32 = vadd.f32 1.0, %v8938_v38 }
 0x445   : > { %8951 = vrcp.f32 %v6229_v40  ;;  %v6230_v11 = vadd.f32 1.0, %v8940_v55 }
 0x446   : > { %v8942_v30 = vpop.eup %8941  ;;  %8953 = vrcp.f32 %v6232_v32 }
 0x447   : > { %v8944_v8 = vpop.eup %8943  ;;  %6275 = vst [vmem:[%s9117_s22 + $0x50] sm:$0xff] %v8942_v30  ;;  %8955 = vrcp.f32 %v6230_v11 }
 0x448   : > { %v8946_v20 = vpop.eup %8945  ;;  %6273 = vst [vmem:[%s9117_s22 + $0x40] sm:$0xff] %v8944_v8 }
 0x449   : > { %v8948_v14 = vpop.eup %8947  ;;  %6276 = vst [vmem:[%s9117_s22 + $0x58] sm:$0xff] %v8946_v20 }
 0x44a   : > { %6274 = vst [vmem:[%s9117_s22 + $0x48] sm:$0xff] %v8948_v14 }
 0x44e   : > { %v8950_v48 = vpop.eup %8949 }
 0x44f   : > { %v8952_v44 = vpop.eup %8951  ;;  %6279 = vst [vmem:[%s9117_s22 + $0x70] sm:$0xff] %v8950_v48 }
 0x450   : > { %v8954_v51 = vpop.eup %8953  ;;  %6277 = vst [vmem:[%s9117_s22 + $0x60] sm:$0xff] %v8952_v44 }
 0x451   : > { %v8956_v7 = vpop.eup %8955  ;;  %6280 = vst [vmem:[%s9117_s22 + $0x78] sm:$0xff] %v8954_v51 }
 0x452   : > { %6278 = vst [vmem:[%s9117_s22 + $0x68] sm:$0xff] %v8956_v7 }
 0x453 PF: > { %s17_s28 = sadd.s32 1, %s9025_s28   ;;  %s11365_s9 = sld [smem:[#allocation7_spill]] }
 0x454   : > { %p14_p11 = scmp.ge.s32.totalorder %s17_s28, 6   ;;  %s11366_s24 = smov %s9017_s26 }
 0x455   : > { %s11367_s25 = smov %s9021_s27  ;;  %s11368_s26 = smov %s11371_s29 }
 0x456   :  { %16 = sbr.rel (!%p14_p11) target bundleno = 3 (0x3), region = 178 }
 0x459   : > { %s11369_s27 = smov %s11365_s9 }
 0x45d   :  { %6313 = vsyncmov [#allocation3] }
 0x460   :  { %s6314_s12 = vpop.sfrf %6313 }
 0x461   :  { %p7280_p12 = scmp.ne.s32.totalorder %s6314_s12, 0 }
 0x463   :  { %6318 = shalt.err (%p7280_p12)  }
 0x464   :  { %6320 = vsyncmov [#allocation3 + $0x1] }
 0x467   :  { %s6321_s22 = vpop.sfrf %6320 }
 0x468   :  { %p7281_p13 = scmp.ne.s32.totalorder %s6321_s22, 0 }
 0x46a   :  { %6325 = shalt.err (%p7281_p13)  }

</bundles_post_ra>
